<compile_context>
chip_gen: v5e
topology: v5e:2x2
jax: 0.10.0
libtpu: 0.0.40
codegen_flags: <defaults>
</compile_context>

<pallas_src>
import math

import jax
import jax.numpy as jnp
from jax.experimental import pallas as pl
from jax.experimental.pallas import tpu as pltpu

NUM_GROUPS = 32
EPS = 1e-6


# ------------------------------ fused Pallas kernel ------------------------------ #
def _fused_resblock_kernel(x_ref, g1_ref, bt1_ref, proj_ref, k1_ref, b1_ref,
                           temb_ref, tw_ref, tb_ref, g2_ref, bt2_ref,
                           k2_ref, b2t_ref, o_ref, hp_ref):
    Nb, H, WC = o_ref.shape
    C = proj_ref.shape[0]
    W = WC // C

    # Zero only the 2 halo ROWS per sample (perf item 2).  Interior rows are
    # fully overwritten before every conv; the halo rows are never written.
    z = jnp.zeros((Nb, 1, WC), jnp.float32)
    hp_ref[:, 0:1, :] = z
    hp_ref[:, H + 1:H + 2, :] = z

    xb = x_ref[...].astype(jnp.float32)                    # (Nb, H, W*C) lane-dense

    def tile_c_to_wc(a):                                   # (Nb, C) -> (Nb, 1, W*C)
        return jnp.broadcast_to(a[:, None, :], (Nb, W, C)).reshape(Nb, 1, WC)

    def gn_swish(v, gamma, beta_w):
        # GroupNorm(32, eps=1e-6) + Swish entirely in the lane-dense layout;
        # only (Nb, C)-sized statistics ever leave it.  Two-pass variance.
        s = jnp.sum(jnp.sum(v, axis=1).reshape(Nb, W, C), axis=1)          # (Nb, C)
        mean = jnp.dot(s, proj_ref[...], preferred_element_type=jnp.float32)
        d = v - tile_c_to_wc(mean)
        ss = jnp.sum(jnp.sum(d * d, axis=1).reshape(Nb, W, C), axis=1)     # (Nb, C)
        var = jnp.dot(ss, proj_ref[...], preferred_element_type=jnp.float32)
        a = jax.lax.rsqrt(var + EPS) * gamma                               # (Nb, C)
        y = d * tile_c_to_wc(a) + beta_w
        return y * jax.nn.sigmoid(y)                                       # Swish

    def conv3x3(h, k_ref):
        # Lane-dense banded 3x3 conv: out[n, y, :] = sum_dy hpad[n, y+dy, :] @ K_dy.
        # bf16 MXU operands, f32 accumulation.  No strided taps, no im2col concat,
        # no (H,W*C)<->(HW,C) relayouts (perf items 6/7).
        hp_ref[:, 1:H + 1, :] = h                          # halo rows stay zero
        hpad = hp_ref[...].astype(jnp.bfloat16)            # (Nb, H+2, W*C)
        acc = jnp.zeros((Nb * H, WC), jnp.float32)
        for dy in range(3):
            lhs = hpad[:, dy:dy + H, :].reshape(Nb * H, WC)
            acc = acc + jnp.dot(lhs, k_ref[dy], preferred_element_type=jnp.float32)
        return acc.reshape(Nb, H, WC)

    # ---- h = conv1(act(norm1(x))) + b1 + temb_proj(act(temb)) ----
    h = gn_swish(xb, g1_ref[...], bt1_ref[...])
    h = conv3x3(h, k1_ref)
    t = temb_ref[...].reshape(Nb, tw_ref.shape[0]).astype(jnp.float32)
    t = t * jax.nn.sigmoid(t)
    tproj = jnp.dot(t, tw_ref[...], preferred_element_type=jnp.float32)   # (Nb, C)
    h = h + tile_c_to_wc(tproj + tb_ref[...] + b1_ref[...])

    # ---- h = act(norm2(h)); Dropout2d(p=0.0) == identity; out = conv2(h)+b2+x ----
    h = gn_swish(h, g2_ref[...], bt2_ref[...])
    h = conv3x3(h, k2_ref)
    o_ref[...] = (h + b2t_ref[...] + xb).astype(o_ref.dtype)   # lane-dense store


# --------------------------------- host helpers ----------------------------------- #
def _group_projector(C, H, W):
    g = C // NUM_GROUPS
    grp = jnp.arange(C, dtype=jnp.int32) // g
    mem = (grp[:, None] == grp[None, :]).astype(jnp.float32)
    return mem / float(H * W * g)                      # s @ proj == group mean


def _banded_conv_weights(w_oihw, W):
    """(Cout, Cin, 3, 3) -> (3, W*Cin, W*Cout) bf16 block-banded matrices K_dy with
       K_dy[q*Cin+ci, x*Cout+co] = w[co, ci, dy, q-x+1] (zero outside the 3-band),
       so conv(h)[n, y, x, :] = sum_dy hpad_rows[n, y+dy, :] @ K_dy operates directly
       on the lane-dense (..., W*C) layout (the W zero-padding is folded in)."""
    cout, cin = w_oihw.shape[0], w_oihw.shape[1]
    wk = jnp.transpose(w_oihw, (2, 3, 1, 0)).astype(jnp.float32)   # (dy, dx, Cin, Cout)
    q = jnp.arange(W)
    ks = []
    for dy in range(3):
        acc = jnp.zeros((W * cin, W * cout), jnp.float32)
        for dx in range(3):
            band = (q[:, None] == (q[None, :] + dx - 1)).astype(jnp.float32)   # (W, W)
            acc = acc + jnp.kron(band, wk[dy, dx])
        ks.append(acc)
    return jnp.stack(ks).astype(jnp.bfloat16)


def _pick_nb(N, H, W, C):
    """Samples per grid step (perf item 1): large enough to amortize step overhead
    and fill MXU/VPU tiles, small enough for VMEM, and grid length >= 2 when
    possible so both v7x TensorCores get work."""
    hw = H * W
    best = 1
    for nb in range(1, N + 1):
        if N % nb:
            continue
        if nb * hw > 1024 or nb * hw * C * 4 > (8 << 20):
            continue
        if N // nb >= 2 or N == 1:
            best = nb
    return best


def _vmem_cap_bytes():
    try:
        cap = int(pltpu.get_tpu_info().vmem_capacity_bytes)
    except Exception:
        cap = 128 << 20                                 # v5e/v6e default; v7x is 64 MiB
    return max(32 << 20, int(cap * 0.85))


# ----------------------------------- wrappers -------------------------------------- #
def residual_block_forward_nhwc(x_nhwc, temb, p, *, io_dtype=jnp.float32):
    """Fused ResidualBlock forward on NHWC activations (single pallas_call)."""
    N, H, W, C = x_nhwc.shape
    Cout = p["w1_oihw"].shape[0]
    assert Cout == C and C % NUM_GROUPS == 0, "identity-shortcut configuration"
    # TODO(synk): conv / 1x1 shortcut (in_ch != out_ch) and Dropout2d p>0 not implemented.
    # TODO(synk): for large W*C (realistic 64x64x256 DDPM shapes) switch the conv to a
    #             row-tiled im2col grid over H with a 1-row halo; the banded-weight form
    #             targets small W*C where the kernel is relayout/VPU bound, not MXU bound.
    # TODO(synk): single-buffer the grid-invariant weight inputs (pl.Buffered(1)) for v7x
    #             VMEM once that pipeline_mode is supported on top-level pallas_call specs.
    T = temb.shape[1]
    WC = W * C

    Nb = _pick_nb(N, H, W, C)
    grid_len = N // Nb

    proj = _group_projector(C, H, W)
    k1 = _banded_conv_weights(p["w1_oihw"], W)
    k2 = _banded_conv_weights(p["w2_oihw"], W)

    row = lambda a: jnp.asarray(a, jnp.float32).reshape(1, -1)          # (1, C)
    tile_w = lambda a: jnp.tile(row(a), (1, W))                         # (1, W*C)

    x_flat = x_nhwc.reshape(N, H, WC).astype(io_dtype)                  # lane-dense HBM blocks
    temb3 = jnp.asarray(temb, jnp.float32).reshape(N, 1, T)

    # VMEM budget (perf item 5): double-buffered I/O + weight blocks, padded-row
    # scratch, and the live f32 intermediates; clamped to the chip's VMEM.
    io_b = jnp.dtype(io_dtype).itemsize
    blk = Nb * H * WC
    need = (2 * 2 * blk * io_b                          # x / out blocks (2 buffers each)
            + 2 * 2 * (k1.size + k2.size)               # bf16 banded conv weights
            + 2 * 4 * (C * C + T * C + Nb * T + 3 * WC + 5 * C)
            + 4 * Nb * (H + 2) * WC                     # f32 padded-row scratch
            + 12 * 4 * blk                              # live f32 intermediates
            + (1 << 20))
    vmem_limit = int(min(max(need, 32 << 20), _vmem_cap_bytes()))

    out = pl.pallas_call(
        _fused_resblock_kernel,
        out_shape=jax.ShapeDtypeStruct((N, H, WC), io_dtype),
        grid_spec=pltpu.PrefetchScalarGridSpec(
            num_scalar_prefetch=0,
            grid=(grid_len,),
            in_specs=[
                pl.BlockSpec((Nb, H, WC), lambda b: (b, 0, 0)),    # x (lane-dense)
                pl.BlockSpec((1, C), lambda b: (0, 0)),            # gamma1
                pl.BlockSpec((1, WC), lambda b: (0, 0)),           # beta1 (W-tiled)
                pl.BlockSpec((C, C), lambda b: (0, 0)),            # GN group projector
                pl.BlockSpec((3, WC, WC), lambda b: (0, 0, 0)),    # banded conv1 weights
                pl.BlockSpec((1, C), lambda b: (0, 0)),            # b1
                pl.BlockSpec((Nb, 1, T), lambda b: (b, 0, 0)),     # temb rows
                pl.BlockSpec((T, C), lambda b: (0, 0)),            # temb_proj weight
                pl.BlockSpec((1, C), lambda b: (0, 0)),            # temb_proj bias
                pl.BlockSpec((1, C), lambda b: (0, 0)),            # gamma2
                pl.BlockSpec((1, WC), lambda b: (0, 0)),           # beta2 (W-tiled)
                pl.BlockSpec((3, WC, WC), lambda b: (0, 0, 0)),    # banded conv2 weights
                pl.BlockSpec((1, WC), lambda b: (0, 0)),           # b2 (W-tiled)
            ],
            out_specs=pl.BlockSpec((Nb, H, WC), lambda b: (b, 0, 0)),
            scratch_shapes=[pltpu.VMEM((Nb, H + 2, WC), jnp.float32)],
        ),
        compiler_params=pltpu.CompilerParams(
            dimension_semantics=("parallel",),
            vmem_limit_bytes=vmem_limit),
    )(x_flat, row(p["gamma1"]), tile_w(p["beta1"]), proj, k1, row(p["b1"]),
      temb3, p["tw"], row(p["tb"]), row(p["gamma2"]), tile_w(p["beta2"]),
      k2, tile_w(p["b2"]))

    return out.reshape(N, H, W, C)


def residual_block_forward(x_nchw, temb, p, *, io_dtype=jnp.float32):
    """PyTorch-layout (NCHW) entry point matching ResidualBlock.forward."""
    x = jnp.transpose(x_nchw, (0, 2, 3, 1))
    out = residual_block_forward_nhwc(x, temb, p, io_dtype=io_dtype)
    return jnp.transpose(out, (0, 3, 1, 2))


# --------------------------- deterministic parameter init -------------------------- #
def init_params(key, in_ch, out_ch, temb_ch):
    assert in_ch == out_ch and in_ch % NUM_GROUPS == 0
    k1, k2, k3 = jax.random.split(key, 3)

    def conv_w(k, cin, cout, gain):
        fan = cout * 9                                  # fan_avg path -> fan_out in the spec
        bound = math.sqrt(3.0 * gain / max(1.0, fan))
        return jax.random.uniform(k, (cout, cin, 3, 3), jnp.float32, -bound, bound)

    def lin_w(k, cin, cout, gain):
        bound = math.sqrt(3.0 * gain / max(1.0, cout))
        return jax.random.uniform(k, (cout, cin), jnp.float32, -bound, bound)

    w1 = conv_w(k1, in_ch, out_ch, 1.0)
    w2 = conv_w(k2, out_ch, out_ch, 1e-10)              # init_scale=0.0 -> gain=1e-10
    tw = lin_w(k3, temb_ch, out_ch, 1.0)

    return dict(
        w1_oihw=w1, b1=jnp.zeros((out_ch,), jnp.float32),
        w2_oihw=w2, b2=jnp.zeros((out_ch,), jnp.float32),
        tw=tw.T, tb=jnp.zeros((out_ch,), jnp.float32),
        gamma1=jnp.ones((in_ch,), jnp.float32), beta1=jnp.zeros((in_ch,), jnp.float32),
        gamma2=jnp.ones((out_ch,), jnp.float32), beta2=jnp.zeros((out_ch,), jnp.float32),
    )


def with_dense_conv2(params, key, out_ch):
    """Swap the near-zero conv2 weight for a full-scale one (stress check)."""
    bound = math.sqrt(3.0 / (out_ch * 9))
    w2b = jax.random.uniform(key, (out_ch, out_ch, 3, 3), jnp.float32, -bound, bound)
    q = dict(params)
    q["w2_oihw"] = w2b
    return q


# ------------------------------- pure-JAX reference -------------------------------- #
def ref_forward(x, temb, p):
    def swish(v):
        return v * jax.nn.sigmoid(v)

    def gn(v, gamma, beta):
        N, C, H, W = v.shape
        g = C // NUM_GROUPS
        vr = v.reshape(N, NUM_GROUPS, g * H * W)
        m = vr.mean(axis=2, keepdims=True)
        var = vr.var(axis=2, keepdims=True)
        vn = ((vr - m) / jnp.sqrt(var + EPS)).reshape(N, C, H, W)
        return vn * gamma[None, :, None, None] + beta[None, :, None, None]

    def conv(v, w, b):
        y = jax.lax.conv_general_dilated(v, w, (1, 1), ((1, 1), (1, 1)),
                                         dimension_numbers=("NCHW", "OIHW", "NCHW"))
        return y + b[None, :, None, None]

    h = swish(gn(x, p["gamma1"], p["beta1"]))
    h = conv(h, p["w1_oihw"], p["b1"])
    h = h + (swish(temb) @ p["tw"] + p["tb"])[:, :, None, None]
    h = swish(gn(h, p["gamma2"], p["beta2"]))
    h = conv(h, p["w2_oihw"], p["b2"])
    return x + h


# --------------------------------------- main --------------------------------------- #
if __name__ == "__main__":
    N, C, H, W, T = 4, 32, 8, 8, 32     # batch, channels (multiple of 32 groups), spatial, temb
    key = jax.random.PRNGKey(0)
    kx, kt, kp, kd = jax.random.split(key, 4)
    x = jax.random.normal(kx, (N, C, H, W), jnp.float32)
    temb = jax.random.normal(kt, (N, T), jnp.float32)
    params = init_params(kp, C, C, T)

    # 1) faithful module configuration (conv2 init_scale=0.0), f32 I/O, strict tolerance
    out = jax.block_until_ready(residual_block_forward(x, temb, params))
    ref = ref_forward(x, temb, params)
    assert out.shape == ref.shape == (N, C, H, W)
    err = float(jnp.max(jnp.abs(out - ref)))
    assert jnp.allclose(out, ref, atol=2e-3, rtol=2e-3), f"max err {err}"

    # 2) stress the conv2 path with a full-scale weight (bf16 MXU operands, f32 acc)
    params_b = with_dense_conv2(params, kd, C)
    out_b = jax.block_until_ready(residual_block_forward(x, temb, params_b))
    ref_b = ref_forward(x, temb, params_b)
    err_b = float(jnp.max(jnp.abs(out_b - ref_b)))
    assert jnp.allclose(out_b, ref_b, atol=3e-2, rtol=3e-2), f"max err {err_b}"

    # 3) bf16 at the HBM boundary (perf item 10); compare against ref on the rounded input
    x_bf = x.astype(jnp.bfloat16).astype(jnp.float32)
    out_c = jax.block_until_ready(
        residual_block_forward(x_bf, temb, params_b, io_dtype=jnp.bfloat16)
    ).astype(jnp.float32)
    ref_c = ref_forward(x_bf, temb, params_b)
    err_c = float(jnp.max(jnp.abs(out_c - ref_c)))
    assert jnp.allclose(out_c, ref_c, atol=6e-2, rtol=6e-2), f"max err {err_c}"

    print("KERNEL_OK")
</pallas_src>

<mosaic_0001>
module attributes {stable_mosaic.version = 11 : i64} {
  func.func @_fused_resblock_kernel(%arg0: i32, %arg1: memref<2x8x256xf32, #tpu.memory_space<vmem>>, %arg2: memref<1x32xf32, #tpu.memory_space<vmem>>, %arg3: memref<1x256xf32, #tpu.memory_space<vmem>>, %arg4: memref<32x32xf32, #tpu.memory_space<vmem>>, %arg5: memref<3x256x256xbf16, #tpu.memory_space<vmem>>, %arg6: memref<1x32xf32, #tpu.memory_space<vmem>>, %arg7: memref<2x1x32xf32, #tpu.memory_space<vmem>>, %arg8: memref<32x32xf32, #tpu.memory_space<vmem>>, %arg9: memref<1x32xf32, #tpu.memory_space<vmem>>, %arg10: memref<1x32xf32, #tpu.memory_space<vmem>>, %arg11: memref<1x256xf32, #tpu.memory_space<vmem>>, %arg12: memref<3x256x256xbf16, #tpu.memory_space<vmem>>, %arg13: memref<1x256xf32, #tpu.memory_space<vmem>>, %arg14: memref<2x8x256xf32, #tpu.memory_space<vmem>>, %arg15: memref<2x10x256xf32, #tpu.memory_space<vmem>>) attributes {dimension_semantics = [#tpu.dimension_semantics<parallel>], iteration_bounds = array<i64: 2>, scalar_prefetch = 0 : i64, scratch_operands = 1 : i64, tpu.core_type = #tpu.core_type<tc>, window_params = [{transform_indices = @transform_0, window_bounds = array<i64: 2, 8, 256>}, {pipeline_mode = #tpu.pipeline_mode<synchronous>, transform_indices = @transform_1, window_bounds = array<i64: 1, 32>}, {pipeline_mode = #tpu.pipeline_mode<synchronous>, transform_indices = @transform_2, window_bounds = array<i64: 1, 256>}, {pipeline_mode = #tpu.pipeline_mode<synchronous>, transform_indices = @transform_3, window_bounds = array<i64: 32, 32>}, {pipeline_mode = #tpu.pipeline_mode<synchronous>, transform_indices = @transform_4, window_bounds = array<i64: 3, 256, 256>}, {pipeline_mode = #tpu.pipeline_mode<synchronous>, transform_indices = @transform_5, window_bounds = array<i64: 1, 32>}, {transform_indices = @transform_6, window_bounds = array<i64: 2, 1, 32>}, {pipeline_mode = #tpu.pipeline_mode<synchronous>, transform_indices = @transform_7, window_bounds = array<i64: 32, 32>}, {pipeline_mode = #tpu.pipeline_mode<synchronous>, transform_indices = @transform_8, window_bounds = array<i64: 1, 32>}, {pipeline_mode = #tpu.pipeline_mode<synchronous>, transform_indices = @transform_9, window_bounds = array<i64: 1, 32>}, {pipeline_mode = #tpu.pipeline_mode<synchronous>, transform_indices = @transform_10, window_bounds = array<i64: 1, 256>}, {pipeline_mode = #tpu.pipeline_mode<synchronous>, transform_indices = @transform_11, window_bounds = array<i64: 3, 256, 256>}, {pipeline_mode = #tpu.pipeline_mode<synchronous>, transform_indices = @transform_12, window_bounds = array<i64: 1, 256>}, {transform_indices = @transform_13, window_bounds = array<i64: 2, 8, 256>}]} {
    %cst = arith.constant 0.000000e+00 : f32
    %0 = vector.broadcast %cst : f32 to vector<2x1x256xf32>
    %c0 = arith.constant 0 : index
    %c0_0 = arith.constant 0 : index
    %c0_1 = arith.constant 0 : index
    %1 = vector.load %arg15[%c0, %c0_0, %c0_1] : memref<2x10x256xf32, #tpu.memory_space<vmem>>, vector<2x1x256xf32>
    tpu.vector_store %arg15[%c0, %c0_0, %c0_1], %0 {strides = array<i32>} : memref<2x10x256xf32, #tpu.memory_space<vmem>>, vector<2x1x256xf32>,
    %c0_2 = arith.constant 0 : index
    %c9 = arith.constant 9 : index
    %c0_3 = arith.constant 0 : index
    %2 = vector.load %arg15[%c0_2, %c9, %c0_3] : memref<2x10x256xf32, #tpu.memory_space<vmem>>, vector<2x1x256xf32>
    tpu.vector_store %arg15[%c0_2, %c9, %c0_3], %0 {strides = array<i32>} : memref<2x10x256xf32, #tpu.memory_space<vmem>>, vector<2x1x256xf32>,
    %c0_4 = arith.constant 0 : index
    %c0_5 = arith.constant 0 : index
    %c0_6 = arith.constant 0 : index
    %3 = vector.load %arg1[%c0_4, %c0_5, %c0_6] : memref<2x8x256xf32, #tpu.memory_space<vmem>>, vector<2x8x256xf32>
    %c0_7 = arith.constant 0 : index
    %c0_8 = arith.constant 0 : index
    %4 = vector.load %arg2[%c0_7, %c0_8] : memref<1x32xf32, #tpu.memory_space<vmem>>, vector<1x32xf32>
    %c0_9 = arith.constant 0 : index
    %c0_10 = arith.constant 0 : index
    %5 = vector.load %arg3[%c0_9, %c0_10] : memref<1x256xf32, #tpu.memory_space<vmem>>, vector<1x256xf32>
    %cst_11 = arith.constant dense<0.000000e+00> : vector<2x256xf32>
    %6 = vector.multi_reduction <add>, %3, %cst_11 [1] : vector<2x8x256xf32> to vector<2x256xf32>
    %7 = vector.shape_cast %6 : vector<2x256xf32> to vector<2x8x32xf32>
    %cst_12 = arith.constant dense<0.000000e+00> : vector<2x32xf32>
    %8 = vector.multi_reduction <add>, %7, %cst_12 [1] : vector<2x8x32xf32> to vector<2x32xf32>
    %c0_13 = arith.constant 0 : index
    %c0_14 = arith.constant 0 : index
    %9 = vector.load %arg4[%c0_13, %c0_14] : memref<32x32xf32, #tpu.memory_space<vmem>>, vector<32x32xf32>
    %cst_15 = arith.constant dense<0.000000e+00> : vector<2x32xf32>
    %10 = tpu.matmul %8, %9, %cst_15 {dimension_numbers = #tpu.dot_dimension_numbers<[1], [0], [0], [1], [0, 0, 1, 1], [], []>} : vector<2x32xf32>, vector<32x32xf32>, vector<2x32xf32> -> vector<2x32xf32>
    %11 = vector.shape_cast %10 : vector<2x32xf32> to vector<2x1x32xf32>
    %12 = vector.shape_cast %11 : vector<2x1x32xf32> to vector<2x1x32xf32>
    %13 = vector.broadcast %12 : vector<2x1x32xf32> to vector<2x8x32xf32>
    %14 = vector.shape_cast %13 : vector<2x8x32xf32> to vector<2x1x256xf32>
    %15 = vector.broadcast %14 : vector<2x1x256xf32> to vector<2x8x256xf32>
    %16 = arith.subf %3, %15 : vector<2x8x256xf32>
    %17 = arith.mulf %16, %16 : vector<2x8x256xf32>
    %cst_16 = arith.constant dense<0.000000e+00> : vector<2x256xf32>
    %18 = vector.multi_reduction <add>, %17, %cst_16 [1] : vector<2x8x256xf32> to vector<2x256xf32>
    %19 = vector.shape_cast %18 : vector<2x256xf32> to vector<2x8x32xf32>
    %cst_17 = arith.constant dense<0.000000e+00> : vector<2x32xf32>
    %20 = vector.multi_reduction <add>, %19, %cst_17 [1] : vector<2x8x32xf32> to vector<2x32xf32>
    %c0_18 = arith.constant 0 : index
    %c0_19 = arith.constant 0 : index
    %21 = vector.load %arg4[%c0_18, %c0_19] : memref<32x32xf32, #tpu.memory_space<vmem>>, vector<32x32xf32>
    %cst_20 = arith.constant dense<0.000000e+00> : vector<2x32xf32>
    %22 = tpu.matmul %20, %21, %cst_20 {dimension_numbers = #tpu.dot_dimension_numbers<[1], [0], [0], [1], [0, 0, 1, 1], [], []>} : vector<2x32xf32>, vector<32x32xf32>, vector<2x32xf32> -> vector<2x32xf32>
    %cst_21 = arith.constant 9.99999997E-7 : f32
    %23 = vector.broadcast %cst_21 : f32 to vector<2x32xf32>
    %24 = arith.addf %22, %23 : vector<2x32xf32>
    %25 = math.rsqrt %24 : vector<2x32xf32>
    %26 = vector.broadcast %4 : vector<1x32xf32> to vector<2x32xf32>
    %27 = arith.mulf %25, %26 : vector<2x32xf32>
    %28 = vector.shape_cast %27 : vector<2x32xf32> to vector<2x1x32xf32>
    %29 = vector.shape_cast %28 : vector<2x1x32xf32> to vector<2x1x32xf32>
    %30 = vector.broadcast %29 : vector<2x1x32xf32> to vector<2x8x32xf32>
    %31 = vector.shape_cast %30 : vector<2x8x32xf32> to vector<2x1x256xf32>
    %32 = vector.broadcast %31 : vector<2x1x256xf32> to vector<2x8x256xf32>
    %33 = arith.mulf %16, %32 : vector<2x8x256xf32>
    %34 = vector.shape_cast %5 : vector<1x256xf32> to vector<1x1x256xf32>
    %35 = vector.broadcast %34 : vector<1x1x256xf32> to vector<2x8x256xf32>
    %36 = arith.addf %33, %35 : vector<2x8x256xf32>
    %37 = arith.negf %36 : vector<2x8x256xf32>
    %38 = math.exp %37 : vector<2x8x256xf32>
    %cst_22 = arith.constant 1.000000e+00 : f32
    %39 = vector.broadcast %cst_22 : f32 to vector<2x8x256xf32>
    %40 = arith.addf %39, %38 : vector<2x8x256xf32>
    %41 = arith.divf %39, %40 : vector<2x8x256xf32>
    %42 = arith.mulf %36, %41 : vector<2x8x256xf32>
    %c0_23 = arith.constant 0 : index
    %c1 = arith.constant 1 : index
    %c0_24 = arith.constant 0 : index
    %43 = vector.load %arg15[%c0_23, %c1, %c0_24] : memref<2x10x256xf32, #tpu.memory_space<vmem>>, vector<2x8x256xf32>
    tpu.vector_store %arg15[%c0_23, %c1, %c0_24], %42 {strides = array<i32>} : memref<2x10x256xf32, #tpu.memory_space<vmem>>, vector<2x8x256xf32>,
    %c0_25 = arith.constant 0 : index
    %c0_26 = arith.constant 0 : index
    %c0_27 = arith.constant 0 : index
    %44 = vector.load %arg15[%c0_25, %c0_26, %c0_27] : memref<2x10x256xf32, #tpu.memory_space<vmem>>, vector<2x10x256xf32>
    %45 = arith.truncf %44 : vector<2x10x256xf32> to vector<2x10x256xbf16>
    %cst_28 = arith.constant 0.000000e+00 : f32
    %46 = vector.broadcast %cst_28 : f32 to vector<16x256xf32>
    %47 = vector.extract_strided_slice %45 {offsets = [0, 0, 0], sizes = [2, 8, 256], strides = [1, 1, 1]} : vector<2x10x256xbf16> to vector<2x8x256xbf16>
    %48 = vector.shape_cast %47 : vector<2x8x256xbf16> to vector<16x256xbf16>
    %c0_29 = arith.constant 0 : index
    %c0_30 = arith.constant 0 : index
    %c0_31 = arith.constant 0 : index
    %49 = vector.load %arg5[%c0_29, %c0_30, %c0_31] : memref<3x256x256xbf16, #tpu.memory_space<vmem>>, vector<1x256x256xbf16>
    %50 = vector.shape_cast %49 : vector<1x256x256xbf16> to vector<256x256xbf16>
    %cst_32 = arith.constant dense<0.000000e+00> : vector<16x256xf32>
    %51 = tpu.matmul %48, %50, %cst_32 {dimension_numbers = #tpu.dot_dimension_numbers<[1], [0], [0], [1], [0, 0, 1, 1], [], []>} : vector<16x256xbf16>, vector<256x256xbf16>, vector<16x256xf32> -> vector<16x256xf32>
    %52 = arith.addf %46, %51 : vector<16x256xf32>
    %53 = vector.extract_strided_slice %45 {offsets = [0, 1, 0], sizes = [2, 8, 256], strides = [1, 1, 1]} : vector<2x10x256xbf16> to vector<2x8x256xbf16>
    %54 = vector.shape_cast %53 : vector<2x8x256xbf16> to vector<16x256xbf16>
    %c1_33 = arith.constant 1 : index
    %c0_34 = arith.constant 0 : index
    %c0_35 = arith.constant 0 : index
    %55 = vector.load %arg5[%c1_33, %c0_34, %c0_35] : memref<3x256x256xbf16, #tpu.memory_space<vmem>>, vector<1x256x256xbf16>
    %56 = vector.shape_cast %55 : vector<1x256x256xbf16> to vector<256x256xbf16>
    %cst_36 = arith.constant dense<0.000000e+00> : vector<16x256xf32>
    %57 = tpu.matmul %54, %56, %cst_36 {dimension_numbers = #tpu.dot_dimension_numbers<[1], [0], [0], [1], [0, 0, 1, 1], [], []>} : vector<16x256xbf16>, vector<256x256xbf16>, vector<16x256xf32> -> vector<16x256xf32>
    %58 = arith.addf %52, %57 : vector<16x256xf32>
    %59 = vector.extract_strided_slice %45 {offsets = [0, 2, 0], sizes = [2, 8, 256], strides = [1, 1, 1]} : vector<2x10x256xbf16> to vector<2x8x256xbf16>
    %60 = vector.shape_cast %59 : vector<2x8x256xbf16> to vector<16x256xbf16>
    %c2 = arith.constant 2 : index
    %c0_37 = arith.constant 0 : index
    %c0_38 = arith.constant 0 : index
    %61 = vector.load %arg5[%c2, %c0_37, %c0_38] : memref<3x256x256xbf16, #tpu.memory_space<vmem>>, vector<1x256x256xbf16>
    %62 = vector.shape_cast %61 : vector<1x256x256xbf16> to vector<256x256xbf16>
    %cst_39 = arith.constant dense<0.000000e+00> : vector<16x256xf32>
    %63 = tpu.matmul %60, %62, %cst_39 {dimension_numbers = #tpu.dot_dimension_numbers<[1], [0], [0], [1], [0, 0, 1, 1], [], []>} : vector<16x256xbf16>, vector<256x256xbf16>, vector<16x256xf32> -> vector<16x256xf32>
    %64 = arith.addf %58, %63 : vector<16x256xf32>
    %65 = vector.shape_cast %64 : vector<16x256xf32> to vector<2x8x256xf32>
    %c0_40 = arith.constant 0 : index
    %c0_41 = arith.constant 0 : index
    %c0_42 = arith.constant 0 : index
    %66 = vector.load %arg7[%c0_40, %c0_41, %c0_42] : memref<2x1x32xf32, #tpu.memory_space<vmem>>, vector<2x1x32xf32>
    %67 = vector.shape_cast %66 : vector<2x1x32xf32> to vector<2x32xf32>
    %68 = arith.negf %67 : vector<2x32xf32>
    %69 = math.exp %68 : vector<2x32xf32>
    %cst_43 = arith.constant 1.000000e+00 : f32
    %70 = vector.broadcast %cst_43 : f32 to vector<2x32xf32>
    %71 = arith.addf %70, %69 : vector<2x32xf32>
    %72 = arith.divf %70, %71 : vector<2x32xf32>
    %73 = arith.mulf %67, %72 : vector<2x32xf32>
    %c0_44 = arith.constant 0 : index
    %c0_45 = arith.constant 0 : index
    %74 = vector.load %arg8[%c0_44, %c0_45] : memref<32x32xf32, #tpu.memory_space<vmem>>, vector<32x32xf32>
    %cst_46 = arith.constant dense<0.000000e+00> : vector<2x32xf32>
    %75 = tpu.matmul %73, %74, %cst_46 {dimension_numbers = #tpu.dot_dimension_numbers<[1], [0], [0], [1], [0, 0, 1, 1], [], []>} : vector<2x32xf32>, vector<32x32xf32>, vector<2x32xf32> -> vector<2x32xf32>
    %c0_47 = arith.constant 0 : index
    %c0_48 = arith.constant 0 : index
    %76 = vector.load %arg9[%c0_47, %c0_48] : memref<1x32xf32, #tpu.memory_space<vmem>>, vector<1x32xf32>
    %77 = vector.broadcast %76 : vector<1x32xf32> to vector<2x32xf32>
    %78 = arith.addf %75, %77 : vector<2x32xf32>
    %c0_49 = arith.constant 0 : index
    %c0_50 = arith.constant 0 : index
    %79 = vector.load %arg6[%c0_49, %c0_50] : memref<1x32xf32, #tpu.memory_space<vmem>>, vector<1x32xf32>
    %80 = vector.broadcast %79 : vector<1x32xf32> to vector<2x32xf32>
    %81 = arith.addf %78, %80 : vector<2x32xf32>
    %82 = vector.shape_cast %81 : vector<2x32xf32> to vector<2x1x32xf32>
    %83 = vector.shape_cast %82 : vector<2x1x32xf32> to vector<2x1x32xf32>
    %84 = vector.broadcast %83 : vector<2x1x32xf32> to vector<2x8x32xf32>
    %85 = vector.shape_cast %84 : vector<2x8x32xf32> to vector<2x1x256xf32>
    %86 = vector.broadcast %85 : vector<2x1x256xf32> to vector<2x8x256xf32>
    %87 = arith.addf %65, %86 : vector<2x8x256xf32>
    %c0_51 = arith.constant 0 : index
    %c0_52 = arith.constant 0 : index
    %88 = vector.load %arg10[%c0_51, %c0_52] : memref<1x32xf32, #tpu.memory_space<vmem>>, vector<1x32xf32>
    %c0_53 = arith.constant 0 : index
    %c0_54 = arith.constant 0 : index
    %89 = vector.load %arg11[%c0_53, %c0_54] : memref<1x256xf32, #tpu.memory_space<vmem>>, vector<1x256xf32>
    %cst_55 = arith.constant dense<0.000000e+00> : vector<2x256xf32>
    %90 = vector.multi_reduction <add>, %87, %cst_55 [1] : vector<2x8x256xf32> to vector<2x256xf32>
    %91 = vector.shape_cast %90 : vector<2x256xf32> to vector<2x8x32xf32>
    %cst_56 = arith.constant dense<0.000000e+00> : vector<2x32xf32>
    %92 = vector.multi_reduction <add>, %91, %cst_56 [1] : vector<2x8x32xf32> to vector<2x32xf32>
    %c0_57 = arith.constant 0 : index
    %c0_58 = arith.constant 0 : index
    %93 = vector.load %arg4[%c0_57, %c0_58] : memref<32x32xf32, #tpu.memory_space<vmem>>, vector<32x32xf32>
    %cst_59 = arith.constant dense<0.000000e+00> : vector<2x32xf32>
    %94 = tpu.matmul %92, %93, %cst_59 {dimension_numbers = #tpu.dot_dimension_numbers<[1], [0], [0], [1], [0, 0, 1, 1], [], []>} : vector<2x32xf32>, vector<32x32xf32>, vector<2x32xf32> -> vector<2x32xf32>
    %95 = vector.shape_cast %94 : vector<2x32xf32> to vector<2x1x32xf32>
    %96 = vector.shape_cast %95 : vector<2x1x32xf32> to vector<2x1x32xf32>
    %97 = vector.broadcast %96 : vector<2x1x32xf32> to vector<2x8x32xf32>
    %98 = vector.shape_cast %97 : vector<2x8x32xf32> to vector<2x1x256xf32>
    %99 = vector.broadcast %98 : vector<2x1x256xf32> to vector<2x8x256xf32>
    %100 = arith.subf %87, %99 : vector<2x8x256xf32>
    %101 = arith.mulf %100, %100 : vector<2x8x256xf32>
    %cst_60 = arith.constant dense<0.000000e+00> : vector<2x256xf32>
    %102 = vector.multi_reduction <add>, %101, %cst_60 [1] : vector<2x8x256xf32> to vector<2x256xf32>
    %103 = vector.shape_cast %102 : vector<2x256xf32> to vector<2x8x32xf32>
    %cst_61 = arith.constant dense<0.000000e+00> : vector<2x32xf32>
    %104 = vector.multi_reduction <add>, %103, %cst_61 [1] : vector<2x8x32xf32> to vector<2x32xf32>
    %c0_62 = arith.constant 0 : index
    %c0_63 = arith.constant 0 : index
    %105 = vector.load %arg4[%c0_62, %c0_63] : memref<32x32xf32, #tpu.memory_space<vmem>>, vector<32x32xf32>
    %cst_64 = arith.constant dense<0.000000e+00> : vector<2x32xf32>
    %106 = tpu.matmul %104, %105, %cst_64 {dimension_numbers = #tpu.dot_dimension_numbers<[1], [0], [0], [1], [0, 0, 1, 1], [], []>} : vector<2x32xf32>, vector<32x32xf32>, vector<2x32xf32> -> vector<2x32xf32>
    %cst_65 = arith.constant 9.99999997E-7 : f32
    %107 = vector.broadcast %cst_65 : f32 to vector<2x32xf32>
    %108 = arith.addf %106, %107 : vector<2x32xf32>
    %109 = math.rsqrt %108 : vector<2x32xf32>
    %110 = vector.broadcast %88 : vector<1x32xf32> to vector<2x32xf32>
    %111 = arith.mulf %109, %110 : vector<2x32xf32>
    %112 = vector.shape_cast %111 : vector<2x32xf32> to vector<2x1x32xf32>
    %113 = vector.shape_cast %112 : vector<2x1x32xf32> to vector<2x1x32xf32>
    %114 = vector.broadcast %113 : vector<2x1x32xf32> to vector<2x8x32xf32>
    %115 = vector.shape_cast %114 : vector<2x8x32xf32> to vector<2x1x256xf32>
    %116 = vector.broadcast %115 : vector<2x1x256xf32> to vector<2x8x256xf32>
    %117 = arith.mulf %100, %116 : vector<2x8x256xf32>
    %118 = vector.shape_cast %89 : vector<1x256xf32> to vector<1x1x256xf32>
    %119 = vector.broadcast %118 : vector<1x1x256xf32> to vector<2x8x256xf32>
    %120 = arith.addf %117, %119 : vector<2x8x256xf32>
    %121 = arith.negf %120 : vector<2x8x256xf32>
    %122 = math.exp %121 : vector<2x8x256xf32>
    %cst_66 = arith.constant 1.000000e+00 : f32
    %123 = vector.broadcast %cst_66 : f32 to vector<2x8x256xf32>
    %124 = arith.addf %123, %122 : vector<2x8x256xf32>
    %125 = arith.divf %123, %124 : vector<2x8x256xf32>
    %126 = arith.mulf %120, %125 : vector<2x8x256xf32>
    %c0_67 = arith.constant 0 : index
    %c1_68 = arith.constant 1 : index
    %c0_69 = arith.constant 0 : index
    %127 = vector.load %arg15[%c0_67, %c1_68, %c0_69] : memref<2x10x256xf32, #tpu.memory_space<vmem>>, vector<2x8x256xf32>
    tpu.vector_store %arg15[%c0_67, %c1_68, %c0_69], %126 {strides = array<i32>} : memref<2x10x256xf32, #tpu.memory_space<vmem>>, vector<2x8x256xf32>,
    %c0_70 = arith.constant 0 : index
    %c0_71 = arith.constant 0 : index
    %c0_72 = arith.constant 0 : index
    %128 = vector.load %arg15[%c0_70, %c0_71, %c0_72] : memref<2x10x256xf32, #tpu.memory_space<vmem>>, vector<2x10x256xf32>
    %129 = arith.truncf %128 : vector<2x10x256xf32> to vector<2x10x256xbf16>
    %cst_73 = arith.constant 0.000000e+00 : f32
    %130 = vector.broadcast %cst_73 : f32 to vector<16x256xf32>
    %131 = vector.extract_strided_slice %129 {offsets = [0, 0, 0], sizes = [2, 8, 256], strides = [1, 1, 1]} : vector<2x10x256xbf16> to vector<2x8x256xbf16>
    %132 = vector.shape_cast %131 : vector<2x8x256xbf16> to vector<16x256xbf16>
    %c0_74 = arith.constant 0 : index
    %c0_75 = arith.constant 0 : index
    %c0_76 = arith.constant 0 : index
    %133 = vector.load %arg12[%c0_74, %c0_75, %c0_76] : memref<3x256x256xbf16, #tpu.memory_space<vmem>>, vector<1x256x256xbf16>
    %134 = vector.shape_cast %133 : vector<1x256x256xbf16> to vector<256x256xbf16>
    %cst_77 = arith.constant dense<0.000000e+00> : vector<16x256xf32>
    %135 = tpu.matmul %132, %134, %cst_77 {dimension_numbers = #tpu.dot_dimension_numbers<[1], [0], [0], [1], [0, 0, 1, 1], [], []>} : vector<16x256xbf16>, vector<256x256xbf16>, vector<16x256xf32> -> vector<16x256xf32>
    %136 = arith.addf %130, %135 : vector<16x256xf32>
    %137 = vector.extract_strided_slice %129 {offsets = [0, 1, 0], sizes = [2, 8, 256], strides = [1, 1, 1]} : vector<2x10x256xbf16> to vector<2x8x256xbf16>
    %138 = vector.shape_cast %137 : vector<2x8x256xbf16> to vector<16x256xbf16>
    %c1_78 = arith.constant 1 : index
    %c0_79 = arith.constant 0 : index
    %c0_80 = arith.constant 0 : index
    %139 = vector.load %arg12[%c1_78, %c0_79, %c0_80] : memref<3x256x256xbf16, #tpu.memory_space<vmem>>, vector<1x256x256xbf16>
    %140 = vector.shape_cast %139 : vector<1x256x256xbf16> to vector<256x256xbf16>
    %cst_81 = arith.constant dense<0.000000e+00> : vector<16x256xf32>
    %141 = tpu.matmul %138, %140, %cst_81 {dimension_numbers = #tpu.dot_dimension_numbers<[1], [0], [0], [1], [0, 0, 1, 1], [], []>} : vector<16x256xbf16>, vector<256x256xbf16>, vector<16x256xf32> -> vector<16x256xf32>
    %142 = arith.addf %136, %141 : vector<16x256xf32>
    %143 = vector.extract_strided_slice %129 {offsets = [0, 2, 0], sizes = [2, 8, 256], strides = [1, 1, 1]} : vector<2x10x256xbf16> to vector<2x8x256xbf16>
    %144 = vector.shape_cast %143 : vector<2x8x256xbf16> to vector<16x256xbf16>
    %c2_82 = arith.constant 2 : index
    %c0_83 = arith.constant 0 : index
    %c0_84 = arith.constant 0 : index
    %145 = vector.load %arg12[%c2_82, %c0_83, %c0_84] : memref<3x256x256xbf16, #tpu.memory_space<vmem>>, vector<1x256x256xbf16>
    %146 = vector.shape_cast %145 : vector<1x256x256xbf16> to vector<256x256xbf16>
    %cst_85 = arith.constant dense<0.000000e+00> : vector<16x256xf32>
    %147 = tpu.matmul %144, %146, %cst_85 {dimension_numbers = #tpu.dot_dimension_numbers<[1], [0], [0], [1], [0, 0, 1, 1], [], []>} : vector<16x256xbf16>, vector<256x256xbf16>, vector<16x256xf32> -> vector<16x256xf32>
    %148 = arith.addf %142, %147 : vector<16x256xf32>
    %149 = vector.shape_cast %148 : vector<16x256xf32> to vector<2x8x256xf32>
    %c0_86 = arith.constant 0 : index
    %c0_87 = arith.constant 0 : index
    %150 = vector.load %arg13[%c0_86, %c0_87] : memref<1x256xf32, #tpu.memory_space<vmem>>, vector<1x256xf32>
    %151 = vector.shape_cast %150 : vector<1x256xf32> to vector<1x1x256xf32>
    %152 = vector.broadcast %151 : vector<1x1x256xf32> to vector<2x8x256xf32>
    %153 = arith.addf %149, %152 : vector<2x8x256xf32>
    %154 = arith.addf %153, %3 : vector<2x8x256xf32>
    %c0_88 = arith.constant 0 : index
    %c0_89 = arith.constant 0 : index
    %c0_90 = arith.constant 0 : index
    %155 = vector.load %arg14[%c0_88, %c0_89, %c0_90] : memref<2x8x256xf32, #tpu.memory_space<vmem>>, vector<2x8x256xf32>
    tpu.vector_store %arg14[%c0_88, %c0_89, %c0_90], %154 {strides = array<i32>} : memref<2x8x256xf32, #tpu.memory_space<vmem>>, vector<2x8x256xf32>,
    return
  }
  func.func @transform_0(%arg0: i32) -> (i32, i32, i32) {
    %c0_i32 = arith.constant 0 : i32
    %c0_i32_0 = arith.constant 0 : i32
    %c0_i32_1 = arith.constant 0 : i32
    return %arg0, %c0_i32, %c0_i32_0 : i32, i32, i32
  }
  func.func @transform_1(%arg0: i32) -> (i32, i32) {
    %c0_i32 = arith.constant 0 : i32
    %c0_i32_0 = arith.constant 0 : i32
    %c0_i32_1 = arith.constant 0 : i32
    return %c0_i32, %c0_i32_0 : i32, i32
  }
  func.func @transform_2(%arg0: i32) -> (i32, i32) {
    %c0_i32 = arith.constant 0 : i32
    %c0_i32_0 = arith.constant 0 : i32
    %c0_i32_1 = arith.constant 0 : i32
    return %c0_i32, %c0_i32_0 : i32, i32
  }
  func.func @transform_3(%arg0: i32) -> (i32, i32) {
    %c0_i32 = arith.constant 0 : i32
    %c0_i32_0 = arith.constant 0 : i32
    %c0_i32_1 = arith.constant 0 : i32
    return %c0_i32, %c0_i32_0 : i32, i32
  }
  func.func @transform_4(%arg0: i32) -> (i32, i32, i32) {
    %c0_i32 = arith.constant 0 : i32
    %c0_i32_0 = arith.constant 0 : i32
    %c0_i32_1 = arith.constant 0 : i32
    %c0_i32_2 = arith.constant 0 : i32
    return %c0_i32, %c0_i32_0, %c0_i32_1 : i32, i32, i32
  }
  func.func @transform_5(%arg0: i32) -> (i32, i32) {
    %c0_i32 = arith.constant 0 : i32
    %c0_i32_0 = arith.constant 0 : i32
    %c0_i32_1 = arith.constant 0 : i32
    return %c0_i32, %c0_i32_0 : i32, i32
  }
  func.func @transform_6(%arg0: i32) -> (i32, i32, i32) {
    %c0_i32 = arith.constant 0 : i32
    %c0_i32_0 = arith.constant 0 : i32
    %c0_i32_1 = arith.constant 0 : i32
    return %arg0, %c0_i32, %c0_i32_0 : i32, i32, i32
  }
  func.func @transform_7(%arg0: i32) -> (i32, i32) {
    %c0_i32 = arith.constant 0 : i32
    %c0_i32_0 = arith.constant 0 : i32
    %c0_i32_1 = arith.constant 0 : i32
    return %c0_i32, %c0_i32_0 : i32, i32
  }
  func.func @transform_8(%arg0: i32) -> (i32, i32) {
    %c0_i32 = arith.constant 0 : i32
    %c0_i32_0 = arith.constant 0 : i32
    %c0_i32_1 = arith.constant 0 : i32
    return %c0_i32, %c0_i32_0 : i32, i32
  }
  func.func @transform_9(%arg0: i32) -> (i32, i32) {
    %c0_i32 = arith.constant 0 : i32
    %c0_i32_0 = arith.constant 0 : i32
    %c0_i32_1 = arith.constant 0 : i32
    return %c0_i32, %c0_i32_0 : i32, i32
  }
  func.func @transform_10(%arg0: i32) -> (i32, i32) {
    %c0_i32 = arith.constant 0 : i32
    %c0_i32_0 = arith.constant 0 : i32
    %c0_i32_1 = arith.constant 0 : i32
    return %c0_i32, %c0_i32_0 : i32, i32
  }
  func.func @transform_11(%arg0: i32) -> (i32, i32, i32) {
    %c0_i32 = arith.constant 0 : i32
    %c0_i32_0 = arith.constant 0 : i32
    %c0_i32_1 = arith.constant 0 : i32
    %c0_i32_2 = arith.constant 0 : i32
    return %c0_i32, %c0_i32_0, %c0_i32_1 : i32, i32, i32
  }
  func.func @transform_12(%arg0: i32) -> (i32, i32) {
    %c0_i32 = arith.constant 0 : i32
    %c0_i32_0 = arith.constant 0 : i32
    %c0_i32_1 = arith.constant 0 : i32
    return %c0_i32, %c0_i32_0 : i32, i32
  }
  func.func @transform_13(%arg0: i32) -> (i32, i32, i32) {
    %c0_i32 = arith.constant 0 : i32
    %c0_i32_0 = arith.constant 0 : i32
    %c0_i32_1 = arith.constant 0 : i32
    return %arg0, %c0_i32, %c0_i32_0 : i32, i32, i32
  }
}

</mosaic_0001>

<bundles_post_ra>
// kernel: tpu_custom_call.1
= control target key start
LH: loop header
LB: loop body
LE: loop exit
PB: predicated region body
PF: predicated region fallthrough
CT: control target
= control target key end

     0   :  { %s7155_s0 = inlined_call_operand.hbm [shape: f32[4,8,256], index: 0, kind: input, shape index: {}]   ;;  %s7156_s1 = inlined_call_operand.hbm [shape: f32[1,32], index: 1, kind: input, shape index: {}]   ;;  %s7157_s2 = inlined_call_operand.hbm [shape: f32[1,256], index: 2, kind: input, shape index: {}]   ;;  %s7158_s3 = inlined_call_operand.hbm [shape: f32[32,32], index: 3, kind: input, shape index: {}]   ;;  %s7159_s4 = inlined_call_operand.hbm [shape: bf16[3,256,256], index: 4, kind: input, shape index: {}]   ;;  %s7160_s5 = inlined_call_operand.hbm [shape: f32[1,32], index: 5, kind: input, shape index: {}]   ;;  %s7161_s6 = inlined_call_operand.vmem [shape: f32[4,1,32], index: 6, kind: input, shape index: {}]   ;;  %s7162_s7 = inlined_call_operand.hbm [shape: f32[32,32], index: 7, kind: input, shape index: {}]   ;;  %s7163_s8 = inlined_call_operand.hbm [shape: f32[1,32], index: 8, kind: input, shape index: {}]   ;;  %s7164_s9 = inlined_call_operand.hbm [shape: f32[1,32], index: 9, kind: input, shape index: {}]   ;;  %s7165_s10 = inlined_call_operand.vmem [shape: f32[1,256], index: 10, kind: input, shape index: {}]   ;;  %s7166_s11 = inlined_call_operand.hbm [shape: bf16[3,256,256], index: 11, kind: input, shape index: {}]   ;;  %s7167_s12 = inlined_call_operand.vmem [shape: f32[1,256], index: 12, kind: input, shape index: {}]   ;;  %s7168_s13 = inlined_call_operand.hbm [shape: f32[4,8,256], index: 13, kind: output, shape index: {}]  }
   0x1   :  { %7170 = sst [smem:[#allocation28_spill]] %s7156_s1 }
   0x2   :  { %7171 = sst [smem:[#allocation29_spill]] %s7157_s2 }
   0x3   :  { %7172 = sst [smem:[#allocation30_spill]] %s7158_s3 }
   0x4   :  { %7173 = sst [smem:[#allocation31_spill]] %s7159_s4 }
   0x5   :  { %7174 = sst [smem:[#allocation32_spill]] %s7160_s5 }
   0x6   :  { %7175 = sst [smem:[#allocation33_spill]] %s7165_s10 }
   0x7   :  { %7176 = sst [smem:[#allocation34_spill]] %s7167_s12 }
   0x8   :  { %7177 = sst [smem:[#allocation35_spill]] %s7168_s13 }
   0x9   :  { %18 = vsyncpa [#allocation4], 0 }
   0xa   :  { %20 = vsyncpa [#allocation4 + $0x1], 0 }
   0xb   :  { %21 = vsyncpa [#allocation7], 0 }
   0xc   :  { %22 = vsyncpa [#allocation10], 0 }
   0xd   :  { %23 = vsyncpa [#allocation13], 0 }
   0xe   :  { %24 = vsyncpa [#allocation16], 0 }
   0xf   :  { %25 = vsyncpa [#allocation19], 0 }
  0x10   :  { %26 = vsyncpa [#allocation5], 0 }
  0x11   :  { %28 = vsyncpa [#allocation5 + $0x1], 0  ;;  %s5924_s25 = smov 0   ;;  %s5926_s26 = smov 0  }
  0x12   :  { %s5928_s27 = smov 0   ;;  %s5930_s28 = smov 0  }
  0x13 LB: > { %s7178_s1 = sld [smem:[#allocation28_spill]]  ;;  %s5948_s15 = sadd.s32 4294967295, %s5831_s28   ;;  %s5831_s28 = sphi %s5930_s28, %s7229_s28   ;;  %s5827_s27 = sphi %s5928_s27, %s7228_s27   ;;  %s5823_s26 = sphi %s5926_s26, %s7227_s26   ;;  %s5819_s25 = sphi %s5924_s25, %s7226_s25  }
  0x14   : > { %p4227_p0 = scmp.ge.s32.totalorder %s5831_s28, 1  ;;  %p55_p1 = scmp.eq.s32.totalorder %s5948_s15, 0 }
  0x15   : > { %p348_p2 = scmp.lt.s32.totalorder %s5831_s28, 3  ;;  %s5833_s17 = smov [#allocation6]  }
  0x16   : > { %s362_s18 = sshll.u32 %s5833_s17, 4  ;;  %s7180_s3 = sld [smem:[#allocation30_spill]]  ;;  %s363_s18 = int_to_ptr.vmem [resolvable:$true] %s362_s18 }
  0x17   : > { %p5953_p3 = pnand %p4227_p0, %p348_p2  ;;  %s5834_s23 = smov [#allocation9]  }
  0x18   : > { %s385_s24 = sshll.u32 %s5834_s23, 4  ;;  %s5835_s29 = smov 128   ;;  %s386_s24 = int_to_ptr.vmem [resolvable:$true] %s385_s24 }
  0x19   : > { %s360_s14 = sshll.u32 %s7178_s1, 4  ;;  %p5284_p5 = pneg %p5953_p3  ;;  %s361_s14 = int_to_ptr.hbm [resolvable:$true] %s360_s14 }
  0x1a   : > { %s5836_s30 = smov 8   ;;  %s7182_s5 = sld [smem:[#allocation32_spill]] }
  0x1b   : > { %p5965_p6 = pnand %p5284_p5, %p55_p1  ;;  %s5837_s1 = smov [#allocation12]  }
  0x1c   : > { %s383_s21 = sshll.u32 %s7180_s3, 4  ;;  %s414_s3 = sshll.u32 %s5837_s1, 4  ;;  %s384_s21 = int_to_ptr.hbm [resolvable:$true] %s383_s21  ;;  %s415_s3 = int_to_ptr.vmem [resolvable:$true] %s414_s3 }
  0x1d   : > { %5287 = dma.hbm_to_vmem [thread:$0]  (!%p5965_p6), %s361_s14, 16, %s363_s18, [#allocation7]  }
  0x1e   : > { %5293 = dma.hbm_to_vmem [thread:$0]  (!%p5965_p6), %s384_s21, 512, %s386_s24, [#allocation10], %s5835_s29, %s5835_s29, %s5836_s30  }
  0x1f   : > { %s438_s14 = sshll.u32 %s7163_s8, 4  ;;  %s5838_s18 = smov [#allocation15]   ;;  %s439_s14 = int_to_ptr.hbm [resolvable:$true] %s438_s14 }
  0x20   : > { %s412_s20 = sshll.u32 %s7182_s5, 4  ;;  %s440_s12 = sshll.u32 %s5838_s18, 4  ;;  %s413_s20 = int_to_ptr.hbm [resolvable:$true] %s412_s20  ;;  %s441_s12 = int_to_ptr.vmem [resolvable:$true] %s440_s12 }
  0x21   : > { %5299 = dma.hbm_to_vmem [thread:$0]  (!%p5965_p6), %s413_s20, 16, %s415_s3, [#allocation13]  }
  0x22   : > { %s7183_s2 = sld [smem:[#allocation29_spill]]  ;;  %s5839_s13 = smov [#allocation8]  }
  0x23   : > { %5305 = dma.hbm_to_vmem [thread:$0]  (!%p5965_p6), %s439_s14, 16, %s441_s12, [#allocation16]  }
  0x24   : > { %s7184_s4 = sld [smem:[#allocation31_spill]]  ;;  %s374_s23 = sshll.u32 %s5839_s13, 4  ;;  %s375_s23 = int_to_ptr.vmem [resolvable:$true] %s374_s23 }
  0x25   : > { %s5840_s3 = smov [#allocation11]   ;;  %s423_s21 = sshll.u32 %s7162_s7, 4  ;;  %s424_s21 = int_to_ptr.hbm [resolvable:$true] %s423_s21 }
  0x26   : > { %s399_s20 = sshll.u32 %s5840_s3, 4  ;;  %s450_s1 = sshll.u32 %s7164_s9, 4  ;;  %s400_s20 = int_to_ptr.vmem [resolvable:$true] %s399_s20  ;;  %s451_s1 = int_to_ptr.hbm [resolvable:$true] %s450_s1 }
  0x27   : > { %s5843_s10 = smov [#allocation18]   ;;  %s6022_s12 = sadd.s32 1, %s5831_s28  }
  0x28   : > { %s372_s24 = sshll.u32 %s7183_s2, 4  ;;  %s466_s18 = sshll.u32 %s5843_s10, 4  ;;  %s373_s24 = int_to_ptr.hbm [resolvable:$true] %s372_s24  ;;  %s467_s18 = int_to_ptr.vmem [resolvable:$true] %s466_s18 }
  0x29   : > { %5290 = dma.hbm_to_vmem [thread:$0]  (!%p5965_p6), %s373_s24, 32, %s375_s23, [#allocation7]  }
  0x2a   : > { %s397_s19 = sshll.u32 %s7184_s4, 4  ;;  %s5841_s24 = smov [#allocation14]   ;;  %s398_s19 = int_to_ptr.hbm [resolvable:$true] %s397_s19 }
  0x2b   : > { %5296 = dma.hbm_to_vmem [thread:$0]  (!%p5965_p6), %s398_s19, 12288, %s400_s20, [#allocation10], %s5835_s29, %s5835_s29, %s5836_s30  }
  0x2c   : > { %s425_s17 = sshll.u32 %s5841_s24, 4  ;;  %s5842_s19 = smov [#allocation17]   ;;  %s426_s17 = int_to_ptr.vmem [resolvable:$true] %s425_s17 }
  0x2d   : > { %5302 = dma.hbm_to_vmem [thread:$0]  (!%p5965_p6), %s424_s21, 512, %s426_s17, [#allocation13], %s5835_s29, %s5835_s29, %s5836_s30  }
  0x2e   : > { %s452_s13 = sshll.u32 %s5842_s19, 4  ;;  %s464_s20 = sshll.u32 %s7166_s11, 4  ;;  %s453_s13 = int_to_ptr.vmem [resolvable:$true] %s452_s13  ;;  %s465_s20 = int_to_ptr.hbm [resolvable:$true] %s464_s20 }
  0x2f   : > { %5308 = dma.hbm_to_vmem [thread:$0]  (!%p5965_p6), %s451_s1, 16, %s453_s13, [#allocation16]  }
  0x30   : > { %5311 = dma.hbm_to_vmem [thread:$0]  (!%p5965_p6), %s465_s20, 12288, %s467_s18, [#allocation19], %s5835_s29, %s5835_s29, %s5836_s30  }
  0x31   : > { %s4226_s21 = sadd.s32 4294967294, %s5831_s28   ;;  %s41_s14 = sadd.s32 1, %s5827_s27 }
  0x32   : > { %s38_s24 = ssub.s32 %s5831_s28, %s6022_s12  ;;  %p48_p7 = scmp.ne.s32.totalorder %s5827_s27, %s5823_s26 }
  0x33   : > { %p39_p8 = scmp.eq.s32.totalorder %s38_s24, 0  ;;  %p49_p9 = scmp.eq.s32.totalorder %s5831_s28, 0 }
  0x34   : > { %p54_p10 = scmp.ne.s32.totalorder %s5823_s26, %s5819_s25  ;;  %p335_p11 = scmp.eq.s32.totalorder %s5948_s15, 1 }
  0x35   : > { %s6034_s1 = scalar_select %p39_p8, %s5827_s27, %s41_s14  }
  0x36   : > { %p6036_p12 = por %p49_p9, %p48_p7  ;;  %p6042_p13 = por %p55_p1, %p54_p10 }
  0x37   : > { %p6046_p0 = por %p335_p11, %p48_p7  ;;  %p341_p2 = scmp.eq.s32.totalorder %s4226_s21, 1 }
  0x38   : > { %p5329_p5 = scmp.lt.s32.totalorder %s5831_s28, 2  ;;  %s483_s17 = sand.u32 1, %s5827_s27  }
  0x39   : > { %p6052_p6 = por %p341_p2, %p54_p10  ;;  %s4238_s13 = sshll.u32 %s483_s17, 5 }
  0x3a   : > { %s5049_s23 = sshll.u32 %s5831_s28, 5  ;;  %s487_s14 = scalar_lea.vmem [#allocation3], %s4238_s13 }
  0x3b   : > { %s493_s10 = scalar_lea.hbm %s7155_s0, %s5049_s23  ;;  %s496_s24 = sshll.u32 %s487_s14, 4  ;;  %s497_s24 = int_to_ptr.vmem [resolvable:$true] %s496_s24 }
  0x3c   : > { %s494_s18 = sshll.u32 %s493_s10, 4  ;;  %p6062_p7 = pnand %p5329_p5, %p6036_p12  ;;  %s495_s18 = int_to_ptr.hbm [resolvable:$true] %s494_s18 }
  0x3d   : > { %s484_s2 = scalar_lea.sflag [#allocation4], %s483_s17  ;;  %s5715_s4 = sshra.s32 %s495_s18, 4  ;;  %s5716_s4 = int_to_ptr.hbm [resolvable:$true] %s5715_s4 }
  0x3e   : > { %s5717_s5 = scalar_lea.hbm %s5716_s4, 32  ;;  %p5719_p9 = pneg %p6062_p7 }
  0x3f   : > { %p5718_p8 = scmp.ne.s32.totalorder %s5716_s4, %s5717_s5  ;;  %s5722_s3 = scalar_lea.hbm %s7155_s0, 64 }
  0x40   : > { %p5723_p12 = scmp.lt.s32.totalorder %s5716_s4, %s7155_s0  ;;  %p5724_p2 = scmp.lt.s32.totalorder %s5722_s3, %s5717_s5 }
  0x41   : > { %p5720_p10 = pnand %p5719_p9, %p5718_p8 }
  0x42   : > { %p5725_p5 = por %p5724_p2, %p5723_p12 }
  0x43   : > { %p5721_p11 = pneg %p5720_p10 }
  0x45   : > { %p5726_p4 = pnand %p5725_p5, %p5721_p11 }
  0x47   : > { %5729 = shalt.err (!%p5726_p4)
}
  0x48   : > { %s5844_s17 = smov 256   ;;  %s5845_s10 = smov 16  }
  0x49   : > { %5315 = dma.hbm_to_vmem [thread:$0]  (!%p6062_p7), %s495_s18, 512, %s497_s24, %s484_s2, %s5844_s17, %s5844_s17, %s5845_s10  }
  0x4a   : > { %516 = sbr.rel (%p5953_p3) target bundleno = 2613 (0xa35), region = 72  ;;  %s6079_s14 = sand.u32 (!%p5953_p3), 1, %s5823_s26  }
  0x4b   : > { %s4243_s4 = sshll.u32 (!%p5953_p3), %s6079_s14, 5  ;;  %s519_s5 = scalar_lea.sflag (!%p5953_p3), [#allocation4], %s6079_s14 }
  0x4c   : > { %s6085_s23 = scalar_lea.vmem (!%p5953_p3), [#allocation3], %s4243_s4 }
  0x4f   : > { %5790 = dma.done.wait (%p6042_p13), %s519_s5, 512  }
  0x50   : > { %5792 = vsyncadd (%p6042_p13), %s519_s5, 4294966784 }
  0x51   : > { %5794 = dma.done.wait (%p55_p1), [#allocation7], 48  }
  0x52   : > { %5796 = vsyncadd (%p55_p1), [#allocation7], 4294967248 }
  0x53   : > { %5798 = dma.done.wait (%p55_p1), [#allocation10], 12800  }
  0x54   : > { %5800 = vsyncadd (%p55_p1), [#allocation10], 4294954496 }
  0x55   : > { %5802 = dma.done.wait (%p55_p1), [#allocation13], 528  }
  0x56   : > { %5804 = vsyncadd (%p55_p1), [#allocation13], 4294966768 }
  0x57   : > { %5806 = dma.done.wait (%p55_p1), [#allocation16], 32  }
  0x58   : > { %5808 = vsyncadd (%p55_p1), [#allocation16], 4294967264 }
  0x59   : > { %5810 = dma.done.wait (%p55_p1), [#allocation19], 12288  }
  0x5a   : > { %5812 = vsyncadd (%p55_p1), [#allocation19], 4294955008  ;;  %v6112_v0 = vld [vmem:[%s6085_s23 + $0x10] sm:$0xff]  ;;  %v6115_v1 = vld [vmem:[%s6085_s23 + $0x18] sm:$0xff]  ;;  %s5846_s2 = smov 96   ;;  %s5847_s16 = smov 32  }
  0x5b   : > { %v6118_v2 = vld [vmem:[%s6085_s23] sm:$0xff]  ;;  %v655_v3 = vrot.slane %v6112_v0, 4  ;;  %v661_v4 = vrot.slane %v6115_v1, 4  ;;  %v6124_v6 = vld [vmem:[%s6085_s23 + $0x8] sm:$0xff]  ;;  %s5848_s29 = smov 64   ;;  %v778_v33 = vld [vmem:[#allocation9 + $0x10] sm:$0xff] }
  0x5c   : > { %v643_v5 = vrot.slane %v6118_v2, 4  ;;  %v649_v13 = vrot.slane %v6124_v6, 4  ;;  %v779_v32 = vld [vmem:[#allocation9 + $0x18] sm:$0xff]  ;;  %v777_v34 = vld [vmem:[#allocation9 + $0x8] sm:$0xff]  ;;  %v776_v35 = vld [vmem:[#allocation9] sm:$0xff]  ;;  %vm696_vm0 = vcmask 1041409  }
  0x5d   : > { %v656_v7 = vadd.f32 %v655_v3, %v6112_v0  ;;  %v662_v8 = vadd.f32 %v661_v4, %v6115_v1  ;;  %797 = vmatpush.msra.mxu1 %v779_v32  ;;  %v5849_v42 = vmov 1983009808   ;;  %vm721_vm1 = vcmask 1047556   ;;  %s4254_s18 = sshll.u32 %s5948_s15, 1  ;;  %s7208_s22 = sld [smem:[#allocation33_spill]] }
  0x5e   : > { %v644_v9 = vadd.f32 %v643_v5, %v6118_v2  ;;  %v650_v19 = vadd.f32 %v649_v13, %v6124_v6  ;;  %v724_v43 = vunpack.c.l.s4 %v5849_v42  ;;  %v5850_v62 = vmov 1934713408   ;;  %p617_p1 = scmp.lt.s32.totalorder %s4254_s18, 3  ;;  %s7223_s5 = sld [smem:[#allocation34_spill]] }
  0x5f   : > { %v657_v10 = vrot.slane %v656_v7, 2  ;;  %v663_v11 = vrot.slane %v662_v8, 2  ;;  %798 = vmatpush.msra.mxu1 %v778_v33  ;;  %v748_v63 = vunpack.c.l.s4 %v5850_v62  ;;  %vm761_vm2 = vcmask 261120   ;;  %s7224_s24 = sld [smem:[#allocation35_spill]] }
  0x60   : > { %v645_v12 = vrot.slane %v644_v9, 2  ;;  %v651_v23 = vrot.slane %v650_v19, 2  ;;  %v6155_v52 = vunpack.c.0.s8 %v724_v43  ;;  %vm940_vm3 = vcmask 785408   ;;  %s7231_s18 = smov (!%p617_p1, %s4254_s18), 3 }
  0x61   : > { %v658_v14 = vadd.f32 %v657_v10, %v656_v7  ;;  %v664_v17 = vadd.f32 %v663_v11, %v662_v8  ;;  %799 = vmatpush.msra.mxu1 %v777_v34  ;;  %vm937_vm4 = vcmask 523264   ;;  %s619_s13 = scalar_lea.vmem %s7161_s6, %s7231_s18 }
  0x62   : > { %v646_v15 = vadd.f32 %v645_v12, %v644_v9  ;;  %v652_v25 = vadd.f32 %v651_v23, %v650_v19 }
  0x63   : > { %v659_v16 = vrot.slane %v658_v14, 1  ;;  %v665_v22 = vrot.slane %v664_v17, 1  ;;  %800 = vmatpush.msra.mxu1 %v776_v35 }
  0x64   : > { %v647_v18 = vrot.slane %v646_v15, 1  ;;  %v653_v26 = vrot.slane %v652_v25, 1 }
  0x65   : > { %v6131_v20 = vadd.f32 %v659_v16, %v658_v14  ;;  %v666_v24 = vadd.f32 %v665_v22, %v664_v17  ;;  %1108 = vmatpush.msrb.mxu1 %v779_v32  ;;  %v6170_v14 = vunpack.c.0.s8 %v748_v63  ;;  %s5765_s10 = scalar_lea.hbm %s7224_s24, 64 }
  0x66   : > { %v6133_v21 = vadd.f32 %v647_v18, %v646_v15  ;;  %v654_v27 = vadd.f32 %v653_v26, %v652_v25 }
  0x67   : > { %671 = vrot.lane.b32.xlu1 %v6131_v20, %s5846_s2  ;;  %679 = vrot.lane.b32.xlu0 %v6131_v20, %s5847_s16  ;;  %v704_v50 = vrot.slane %v666_v24, 7  ;;  %v695_v55 = vrot.slane %v6131_v20, 7 }
  0x68   : > { %677 = vrot.lane.b32.xlu2 %v6133_v21, %s5847_s16  ;;  %1109 = vmatpush.msrb.mxu1 %v778_v33 }
  0x69   : > { %v705_v60 = vsel %vm696_vm0, %v704_v50, %v654_v27  ;;  %v697_v8 = vsel %vm696_vm0, %v695_v55, %v6133_v21 }
  0x6a   : > { %1110 = vmatpush.msrb.mxu1 %v777_v34 }
  0x6c   : > { %1111 = vmatpush.msrb.mxu1 %v776_v35 }
  0x6f   : > { %675 = vrot.lane.b32.xlu1 %v6131_v20, %s5848_s29  ;;  %693 = vrot.lane.b32.xlu0 %v666_v24, %s5847_s16 }
  0x70   : > { %685 = vrot.lane.b32.xlu2 %v666_v24, %s5846_s2 }
  0x77   : > { %689 = vrot.lane.b32.xlu0 %v666_v24, %s5848_s29  ;;  %691 = vrot.lane.b32.xlu1 %v654_v27, %s5847_s16 }
  0x78   : > { %669 = vrot.lane.b32.xlu2 %v6133_v21, %s5846_s2 }
  0x7f   : > { %683 = vrot.lane.b32.xlu1 %v654_v27, %s5846_s2  ;;  %673 = vrot.lane.b32.xlu0 %v6133_v21, %s5848_s29 }
  0x80   : > { %687 = vrot.lane.b32.xlu2 %v654_v27, %s5848_s29 }
  0xc2   : > { %v678_v28 = vpop.permute.xlu2 %677 }
  0xca   : > { %v686_v29 = vpop.permute.xlu2 %685 }
  0xcb   : > { %v706_v58 = vrot.slane %v686_v29, 7 }
  0xd2   : > { %v670_v36 = vpop.permute.xlu2 %669 }
  0xd9   : > { %v672_v30 = vpop.permute.xlu1 %671  ;;  %v680_v31 = vpop.permute.xlu0 %679 }
  0xda   : > { %v702_v39 = vrot.slane %v680_v31, 7  ;;  %v688_v41 = vpop.permute.xlu2 %687  ;;  %v698_v46 = vrot.slane %v672_v30, 7 }
  0xdc   : > { %v703_v40 = vsel %vm696_vm0, %v702_v39, %v678_v28  ;;  %v699_v53 = vsel %vm696_vm0, %v698_v46, %v670_v36 }
  0xdd   : > { %v727_v48 = vrot.slane %v703_v40, 4 }
  0xdf   : > { %v728_v56 = vsel %vm721_vm1, %v727_v48, %v699_v53 }
  0xe0   : > { %v732_v5 = vperm.slane %v728_v56, %v6155_v52 }
  0xe1   : > { %v676_v37 = vpop.permute.xlu1 %675  ;;  %v694_v38 = vpop.permute.xlu0 %693 }
  0xe2   : > { %v710_v49 = vrot.slane %v694_v38, 7  ;;  %v700_v59 = vrot.slane %v676_v37, 7  ;;  %v745_v16 = vrot.slane %v732_v5, 4 }
  0xe9   : > { %v690_v44 = vpop.permute.xlu0 %689  ;;  %v692_v45 = vpop.permute.xlu1 %691 }
  0xea   : > { %v708_v47 = vrot.slane %v690_v44, 7  ;;  %v711_v54 = vsel %vm696_vm0, %v710_v49, %v692_v45 }
  0xeb   : > { %v739_v61 = vrot.slane %v711_v54, 4 }
  0xec   : > { %v709_v51 = vsel %vm696_vm0, %v708_v47, %v688_v41 }
  0xed   : > { %v733_v57 = vrot.slane %v709_v51, 4 }
  0xef   : > { %v734_v10 = vsel %vm721_vm1, %v733_v57, %v705_v60 }
  0xf0   : > { %v738_v17 = vperm.slane %v734_v10, %v6155_v52 }
  0xf1   : > { %v684_v3 = vpop.permute.xlu1 %683  ;;  %v674_v4 = vpop.permute.xlu0 %673 }
  0xf2   : > { %v707_v7 = vsel %vm696_vm0, %v706_v58, %v684_v3  ;;  %v701_v9 = vsel %vm696_vm0, %v700_v59, %v674_v4 }
  0xf3   : > { %v740_v11 = vsel %vm721_vm1, %v739_v61, %v707_v7  ;;  %v720_v12 = vrot.slane %v701_v9, 4 }
  0xf4   : > { %v744_v13 = vperm.slane %v740_v11, %v6155_v52 }
  0xf5   : > { %v722_v15 = vsel %vm721_vm1, %v720_v12, %v697_v8 }
  0xf6   : > { %v751_v18 = vrot.slane %v744_v13, 4  ;;  %v726_v19 = vperm.slane %v722_v15, %v6155_v52 }
  0xf8   : > { %v752_v20 = vsel %vm721_vm1, %v751_v18, %v738_v17  ;;  %v746_v21 = vsel %vm721_vm1, %v745_v16, %v726_v19 }
  0xf9   : > { %v756_v22 = vperm.slane %v752_v20, %v6170_v14  ;;  %v750_v23 = vperm.slane %v746_v21, %v6170_v14 }
  0xfb   : > { %v757_v24 = vrot.slane %v756_v22, 4  ;;  %v759_v25 = vrot.slane %v750_v23, 4 }
  0xfd   : > { %v758_v26 = vsel %vm721_vm1, %v757_v24, %v750_v23  ;;  %v760_v27 = vsel %vm721_vm1, %v756_v22, %v759_v25 }
  0xfe   : > { %v762_v28 = vsel %vm761_vm2, %v758_v26, 0.0  ;;  %v769_v29 = vsel %vm761_vm2, %v760_v27, 0.0 }
  0xff   : > { %v763_v30 = vrot.slane %v762_v28, 4  ;;  %v770_v31 = vrot.slane %v769_v29, 4 }
 0x101   : > { %v764_v32 = vadd.f32 %v763_v30, %v762_v28  ;;  %v771_v33 = vadd.f32 %v770_v31, %v769_v29 }
 0x103   : > { %v765_v34 = vrot.slane %v764_v32, 2  ;;  %v772_v35 = vrot.slane %v771_v33, 2 }
 0x105   : > { %v766_v36 = vadd.f32 %v765_v34, %v764_v32  ;;  %v773_v37 = vadd.f32 %v772_v35, %v771_v33 }
 0x107   : > { %v767_v38 = vrot.slane %v766_v36, 1  ;;  %v774_v39 = vrot.slane %v773_v37, 1 }
 0x109   : > { %v768_v40 = vadd.f32 %v767_v38, %v766_v36  ;;  %v775_v41 = vadd.f32 %v774_v39, %v773_v37 }
 0x10b   : > { %v782_v42 = vsel %vm696_vm0, %v775_v41, %v768_v40 }
 0x10c   : > { %4255 = vmatmul.msk.f32.vlgmr.msra.gmra.mxu1 %vm761_vm2, %v782_v42 }
 0x189   : > { %v802_v43 = vpop.f32.mrf.mxu1 }
 0x18a   : > { %v806_v44 = vrot.slane %v802_v43, 1  ;;  %v807_v45 = vperm.slane %v802_v43, 0 }
 0x18c   : > { %v808_v46 = vperm.slane %v806_v44, 0  ;;  %v811_v47 = vrot.slane %v807_v45, 4  ;;  %v816_v48 = vperm.slane %v807_v45, %v6155_v52 }
 0x18e   : > { %v812_v49 = vsel %vm721_vm1, 0.0, %v811_v47  ;;  %v821_v50 = vrot.slane %v816_v48, 4  ;;  %v849_v51 = vrot.slane %v808_v46, 4  ;;  %v854_v53 = vperm.slane %v808_v46, %v6155_v52 }
 0x18f   : > { %v6189_v54 = vperm.slane %v816_v48, %v6170_v14  ;;  %v820_v55 = vperm.slane %v812_v49, %v6155_v52 }
 0x190   : > { %v850_v56 = vsel %vm721_vm1, 0.0, %v849_v51  ;;  %v822_v57 = vsel %vm721_vm1, 0.0, %v821_v50  ;;  %v864_v58 = vperm.slane %v854_v53, %v6170_v14  ;;  %v859_v62 = vrot.slane %v854_v53, 4 }
 0x191   : > { %v858_v59 = vperm.slane %v850_v56, %v6155_v52  ;;  %v841_v60 = vrot.slane %v6189_v54, 4  ;;  %v830_v61 = vperm.slane %v822_v57, %v6170_v14  ;;  %v6204_v7 = vperm.slane %v820_v55, %v6170_v14 }
 0x192   : > { %v879_v63 = vrot.slane %v864_v58, 4  ;;  %v860_v9 = vsel %vm721_vm1, 0.0, %v859_v62  ;;  %v831_v17 = vrot.slane %v820_v55, 4 }
 0x193   : > { %v842_v3 = vsel %vm721_vm1, 0.0, %v841_v60  ;;  %897 = vrot.lane.b32.xlu2 %v830_v61, %s5848_s29  ;;  %v874_v4 = vperm.slane %v858_v59, %v6170_v14  ;;  %v869_v8 = vrot.slane %v858_v59, 4  ;;  %v845_v11 = vrot.slane %v6204_v7, 4 }
 0x194   : > { %889 = vrot.lane.b32.xlu1 %v842_v3, %s5847_s16  ;;  %v880_v5 = vsel %vm721_vm1, 0.0, %v879_v63  ;;  %v868_v13 = vperm.slane %v860_v9, %v6170_v14  ;;  %v832_v21 = vsel %vm721_vm1, 0.0, %v831_v17  ;;  %v843_v26 = vrot.slane %v830_v61, 4 }
 0x195   : > { %891 = vrot.lane.b32.xlu0 %v880_v5, %s5847_s16  ;;  %v883_v10 = vrot.slane %v874_v4, 4  ;;  %v870_v12 = vsel %vm721_vm1, 0.0, %v869_v8  ;;  %v846_v18 = vsel %vm721_vm1, 0.0, %v845_v11  ;;  %v840_v23 = vperm.slane %v832_v21, %v6170_v14 }
 0x196   : > { %v878_v16 = vperm.slane %v870_v12, %v6170_v14  ;;  %v881_v19 = vrot.slane %v868_v13, 4  ;;  %v844_v28 = vsel %vm721_vm1, 0.0, %v843_v26 }
 0x197   : > { %v884_v15 = vsel %vm721_vm1, 0.0, %v883_v10  ;;  %v847_v25 = vrot.slane %v840_v23, 4 }
 0x198   : > { %v885_v20 = vrot.slane %v878_v16, 4  ;;  %v882_v22 = vsel %vm721_vm1, 0.0, %v881_v19 }
 0x199   : > { %v848_v27 = vsel %vm721_vm1, 0.0, %v847_v25 }
 0x19a   : > { %v886_v24 = vsel %vm721_vm1, 0.0, %v885_v20 }
 0x19b   : > { %899 = vrot.lane.b32.xlu2 %v868_v13, %s5848_s29 }
 0x19c   : > { %915 = vrot.lane.b32.xlu1 %v884_v15, %s5847_s16 }
 0x19d   : > { %913 = vrot.lane.b32.xlu0 %v846_v18, %s5847_s16 }
 0x1a3   : > { %907 = vrot.lane.b32.xlu2 %v882_v22, %s5846_s2 }
 0x1a4   : > { %931 = vrot.lane.b32.xlu1 %v886_v24, %s5846_s2 }
 0x1a5   : > { %923 = vrot.lane.b32.xlu0 %v878_v16, %s5848_s29 }
 0x1ab   : > { %929 = vrot.lane.b32.xlu2 %v848_v27, %s5846_s2 }
 0x1ac   : > { %905 = vrot.lane.b32.xlu1 %v844_v28, %s5846_s2 }
 0x1ad   : > { %921 = vrot.lane.b32.xlu0 %v840_v23, %s5848_s29 }
 0x1ed   : > { %v898_v29 = vpop.permute.xlu2 %897 }
 0x1f5   : > { %v900_v30 = vpop.permute.xlu2 %899 }
 0x1fd   : > { %v908_v34 = vpop.permute.xlu2 %907 }
 0x205   : > { %v930_v63 = vpop.permute.xlu2 %929 }
 0x206   : > { %v890_v31 = vpop.permute.xlu1 %889 }
 0x207   : > { %v892_v32 = vpop.permute.xlu0 %891  ;;  %v935_v53 = vsel %vm761_vm2, %v6189_v54, %v890_v31 }
 0x208   : > { %v936_v33 = vsel %vm761_vm2, %v864_v58, %v892_v32  ;;  %v938_v58 = vsel %vm937_vm4, %v935_v53, %v898_v29 }
 0x209   : > { %v939_v35 = vsel %vm937_vm4, %v936_v33, %v900_v30 }
 0x20a   : > { %v942_v36 = vsel %vm940_vm3, %v939_v35, %v908_v34 }
 0x20b   : > { %v951_v37 = vperm.slane %v942_v36, 0 }
 0x20d   : > { %v6233_v38 = vsub.f32 %v6112_v0, %v951_v37 }
 0x20e   : > { %v916_v39 = vpop.permute.xlu1 %915 }
 0x20f   : > { %v959_v40 = vmul.f32 %v6233_v38, %v6233_v38  ;;  %v914_v41 = vpop.permute.xlu0 %913  ;;  %v944_v46 = vsel %vm761_vm2, %v874_v4, %v916_v39 }
 0x210   : > { %v943_v60 = vsel %vm761_vm2, %v6204_v7, %v914_v41 }
 0x211   : > { %v973_v42 = vrot.slane %v959_v40, 4 }
 0x213   : > { %v974_v43 = vadd.f32 %v973_v42, %v959_v40 }
 0x215   : > { %v975_v44 = vrot.slane %v974_v43, 2 }
 0x216   : > { %v932_v45 = vpop.permute.xlu1 %931 }
 0x217   : > { %v924_v47 = vpop.permute.xlu0 %923  ;;  %v976_v48 = vadd.f32 %v975_v44, %v974_v43 }
 0x218   : > { %v946_v49 = vsel %vm937_vm4, %v944_v46, %v924_v47 }
 0x219   : > { %v948_v50 = vsel %vm940_vm3, %v946_v49, %v932_v45  ;;  %v977_v51 = vrot.slane %v976_v48, 1 }
 0x21a   : > { %v952_v0 = vperm.slane %v948_v50, 0 }
 0x21b   : > { %v978_v55 = vadd.f32 %v977_v51, %v976_v48 }
 0x21c   : > { %v6243_v56 = vsub.f32 %v6115_v1, %v952_v0 }
 0x21d   : > { %997 = vrot.lane.b32.xlu0 %v978_v55, %s5847_s16  ;;  %v1013_v26 = vrot.slane %v978_v55, 7 }
 0x21e   : > { %v960_v57 = vmul.f32 %v6243_v56, %v6243_v56  ;;  %v906_v59 = vpop.permute.xlu1 %905 }
 0x21f   : > { %v941_v61 = vsel %vm940_vm3, %v938_v58, %v906_v59  ;;  %v922_v62 = vpop.permute.xlu0 %921 }
 0x220   : > { %v979_v54 = vrot.slane %v960_v57, 4  ;;  %v949_v3 = vperm.slane %v941_v61, 0  ;;  %v945_v1 = vsel %vm937_vm4, %v943_v60, %v922_v62 }
 0x221   : > { %v947_v4 = vsel %vm940_vm3, %v945_v1, %v930_v63 }
 0x222   : > { %v980_v5 = vadd.f32 %v979_v54, %v960_v57  ;;  %v6255_v8 = vsub.f32 %v6118_v2, %v949_v3  ;;  %v950_v9 = vperm.slane %v947_v4, 0 }
 0x224   : > { %v957_v10 = vmul.f32 %v6255_v8, %v6255_v8  ;;  %v6260_v7 = vsub.f32 %v6124_v6, %v950_v9  ;;  %v981_v11 = vrot.slane %v980_v5, 2 }
 0x225   : > { %993 = vrot.lane.b32.xlu0 %v978_v55, %s5848_s29 }
 0x226   : > { %v961_v12 = vrot.slane %v957_v10, 4  ;;  %v958_v13 = vmul.f32 %v6260_v7, %v6260_v7  ;;  %v982_v15 = vadd.f32 %v981_v11, %v980_v5 }
 0x228   : > { %v962_v16 = vadd.f32 %v961_v12, %v957_v10  ;;  %v967_v17 = vrot.slane %v958_v13, 4  ;;  %v983_v18 = vrot.slane %v982_v15, 1 }
 0x22a   : > { %v963_v2 = vrot.slane %v962_v16, 2  ;;  %v968_v19 = vadd.f32 %v967_v17, %v958_v13  ;;  %v984_v20 = vadd.f32 %v983_v18, %v982_v15 }
 0x22c   : > { %v964_v21 = vadd.f32 %v963_v2, %v962_v16  ;;  %v969_v22 = vrot.slane %v968_v19, 2  ;;  %v1021_v28 = vrot.slane %v984_v20, 7 }
 0x22d   : > { %1007 = vrot.lane.b32.xlu0 %v984_v20, %s5848_s29 }
 0x22e   : > { %v965_v6 = vrot.slane %v964_v21, 1  ;;  %v970_v23 = vadd.f32 %v969_v22, %v968_v19 }
 0x230   : > { %v966_v24 = vadd.f32 %v965_v6, %v964_v21  ;;  %v971_v25 = vrot.slane %v970_v23, 1 }
 0x232   : > { %987 = vrot.lane.b32.xlu2 %v966_v24, %s5846_s2  ;;  %995 = vrot.lane.b32.xlu1 %v966_v24, %s5847_s16  ;;  %v972_v27 = vadd.f32 %v971_v25, %v970_v23  ;;  %v1014_v29 = vsel %vm696_vm0, %v1013_v26, %v966_v24 }
 0x234   : > { %v1022_v30 = vsel %vm696_vm0, %v1021_v28, %v972_v27 }
 0x235   : > { %991 = vrot.lane.b32.xlu0 %v966_v24, %s5848_s29 }
 0x23a   : > { %989 = vrot.lane.b32.xlu2 %v978_v55, %s5846_s2  ;;  %1009 = vrot.lane.b32.xlu1 %v972_v27, %s5847_s16 }
 0x242   : > { %1003 = vrot.lane.b32.xlu2 %v984_v20, %s5846_s2  ;;  %1011 = vrot.lane.b32.xlu1 %v984_v20, %s5847_s16 }
 0x24a   : > { %1005 = vrot.lane.b32.xlu2 %v972_v27, %s5848_s29  ;;  %1001 = vrot.lane.b32.xlu1 %v972_v27, %s5846_s2 }
 0x28c   : > { %v988_v32 = vpop.permute.xlu2 %987 }
 0x28f   : > { %v998_v31 = vpop.permute.xlu0 %997 }
 0x290   : > { %v1019_v39 = vrot.slane %v998_v31, 7 }
 0x294   : > { %v990_v34 = vpop.permute.xlu2 %989 }
 0x295   : > { %v1015_v44 = vrot.slane %v990_v34, 7 }
 0x297   : > { %v994_v33 = vpop.permute.xlu0 %993  ;;  %v1016_v48 = vsel %vm696_vm0, %v1015_v44, %v988_v32 }
 0x298   : > { %v1017_v42 = vrot.slane %v994_v33, 7 }
 0x29c   : > { %v1004_v37 = vpop.permute.xlu2 %1003 }
 0x29d   : > { %v1023_v62 = vrot.slane %v1004_v37, 7 }
 0x29f   : > { %v1008_v35 = vpop.permute.xlu0 %1007 }
 0x2a0   : > { %v1025_v0 = vrot.slane %v1008_v35, 7 }
 0x2a4   : > { %v996_v36 = vpop.permute.xlu1 %995  ;;  %v1006_v49 = vpop.permute.xlu2 %1005 }
 0x2a5   : > { %v1020_v43 = vsel %vm696_vm0, %v1019_v39, %v996_v36  ;;  %v1026_v57 = vsel %vm696_vm0, %v1025_v0, %v1006_v49 }
 0x2a6   : > { %v1043_v46 = vrot.slane %v1020_v43, 4  ;;  %v1049_v61 = vrot.slane %v1026_v57, 4 }
 0x2a7   : > { %v992_v40 = vpop.permute.xlu0 %991 }
 0x2a8   : > { %v1018_v45 = vsel %vm696_vm0, %v1017_v42, %v992_v40  ;;  %v1044_v50 = vsel %vm721_vm1, %v1043_v46, %v1016_v48  ;;  %v1050_v5 = vsel %vm721_vm1, %v1049_v61, %v1022_v30  ;;  %v5393_v42 = vld [vmem:[#allocation6] ss:$0 sm:$0xff] }
 0x2a9   : > { %v1037_v47 = vrot.slane %v1018_v45, 4  ;;  %v1048_v58 = vperm.slane %v1044_v50, %v6155_v52  ;;  %v1054_v12 = vperm.slane %v1050_v5, %v6155_v52 }
 0x2ab   : > { %v1038_v55 = vsel %vm721_vm1, %v1037_v47, %v1014_v29  ;;  %v1061_v63 = vrot.slane %v1048_v58, 4 }
 0x2ac   : > { %v1010_v41 = vpop.permute.xlu1 %1009  ;;  %v1042_v59 = vperm.slane %v1038_v55, %v6155_v52 }
 0x2ae   : > { %v1062_v1 = vsel %vm721_vm1, %v1061_v63, %v1042_v59 }
 0x2af   : > { %v1066_v11 = vperm.slane %v1062_v1, %v6170_v14 }
 0x2b1   : > { %v1075_v16 = vrot.slane %v1066_v11, 4 }
 0x2b4   : > { %v1012_v51 = vpop.permute.xlu1 %1011 }
 0x2b5   : > { %v1027_v53 = vrot.slane %v1012_v51, 7 }
 0x2b7   : > { %v1028_v60 = vsel %vm696_vm0, %v1027_v53, %v1010_v41 }
 0x2b8   : > { %v1055_v54 = vrot.slane %v1028_v60, 4 }
 0x2bc   : > { %v1002_v3 = vpop.permute.xlu1 %1001 }
 0x2bd   : > { %v1024_v4 = vsel %vm696_vm0, %v1023_v62, %v1002_v3 }
 0x2be   : > { %v1056_v9 = vsel %vm721_vm1, %v1055_v54, %v1024_v4 }
 0x2bf   : > { %v1060_v10 = vperm.slane %v1056_v9, %v6155_v52 }
 0x2c1   : > { %v1067_v13 = vrot.slane %v1060_v10, 4 }
 0x2c3   : > { %v1068_v15 = vsel %vm721_vm1, %v1067_v13, %v1054_v12 }
 0x2c4   : > { %v1072_v17 = vperm.slane %v1068_v15, %v6170_v14 }
 0x2c6   : > { %v1073_v18 = vrot.slane %v1072_v17, 4  ;;  %v1076_v2 = vsel %vm721_vm1, %v1072_v17, %v1075_v16 }
 0x2c7   : > { %v1084_v19 = vsel %vm761_vm2, %v1076_v2, 0.0 }
 0x2c8   : > { %v1074_v20 = vsel %vm721_vm1, %v1073_v18, %v1066_v11  ;;  %v1085_v21 = vrot.slane %v1084_v19, 4 }
 0x2c9   : > { %v1077_v22 = vsel %vm761_vm2, %v1074_v20, 0.0 }
 0x2ca   : > { %v1078_v6 = vrot.slane %v1077_v22, 4  ;;  %v1086_v23 = vadd.f32 %v1085_v21, %v1084_v19 }
 0x2cc   : > { %v1079_v24 = vadd.f32 %v1078_v6, %v1077_v22  ;;  %v1087_v25 = vrot.slane %v1086_v23, 2 }
 0x2ce   : > { %v1080_v26 = vrot.slane %v1079_v24, 2  ;;  %v1088_v27 = vadd.f32 %v1087_v25, %v1086_v23 }
 0x2d0   : > { %v1081_v28 = vadd.f32 %v1080_v26, %v1079_v24  ;;  %v1089_v29 = vrot.slane %v1088_v27, 1 }
 0x2d2   : > { %v1082_v30 = vrot.slane %v1081_v28, 1  ;;  %v1090_v32 = vadd.f32 %v1089_v29, %v1088_v27 }
 0x2d4   : > { %v1083_v31 = vadd.f32 %v1082_v30, %v1081_v28 }
 0x2d6   : > { %v1093_v33 = vsel %vm696_vm0, %v1090_v32, %v1083_v31  ;;  %v4319_v32 = vld [vmem:[#allocation11 + $0x170] sm:$0xf] }
 0x2d7   : > { %4256 = vmatmul.msk.f32.vlgmr.msrb.gmra.mxu1 %vm761_vm2, %v1093_v33  ;;  %v5097_v33 = vld [vmem:[#allocation11 + $0x174] sm:$0xf0] }
 0x354   : > { %v1113_v34 = vpop.f32.mrf.mxu1 }
 0x355   : > { %v1114_v35 = vadd.f32 1e-06, %v1113_v34  ;;  %v4383_v34 = vld [vmem:[#allocation11 + $0x1f0] sm:$0xf] }
 0x357   : > { %5397 = vrsqrt.f32 %v1114_v35  ;;  %vm1122_vm6 = vweird.f32 %v1114_v35 }
 0x35d   : > { %v5398_v36 = vpop.eup %5397 }
 0x35e   : > { %v1117_v37 = vmul.f32 %v5398_v36, %v1114_v35  ;;  %vm1123_vm5 = vweird.f32 %v5398_v36  ;;  %v4320_v35 = vor.u32 %v5097_v33, %v4319_v32  ;;  %v4359_v32 = vld [vmem:[#allocation11 + $0x1c0] sm:$0xf]  ;;  %v5107_v33 = vld [vmem:[#allocation11 + $0x1c4] sm:$0xf0] }
 0x35f   : > { %vm1124_vm7 = vmor %vm1122_vm6, %vm1123_vm5 }
 0x360   : > { %v1118_v39 = vmul.f32 %v5398_v36, %v1117_v37  ;;  %v5096_v37 = vld [vmem:[#allocation11 + $0x174] sm:$0xf]  ;;  %1665 = vmatpush.bf16.msra.mxu2 %v4320_v35  ;;  %v4360_v35 = vor.u32 %v5107_v33, %v4359_v32  ;;  %v4271_v32 = vld [vmem:[#allocation11 + $0x110] sm:$0xf]  ;;  %v5085_v33 = vld [vmem:[#allocation11 + $0x114] sm:$0xf0] }
 0x362   : > { %v1119_v40 = vmul.f32 0.5, %v1118_v39  ;;  %v4321_v39 = vld [vmem:[#allocation11 + $0x178] sm:$0xf0] }
 0x364   : > { %v1120_v41 = vsub.f32 1.5, %v1119_v40 }
 0x366   : > { %v1121_v43 = vmul.f32 %v5398_v36, %v1120_v41 }
 0x368   : > { %v1125_v44 = vsel %vm1124_vm7, %v5398_v36, %v1121_v43  ;;  %v5113_v36 = vld [vmem:[#allocation11 + $0x1f4] sm:$0xf0]  ;;  %v4324_v43 = vor.u32 %v5096_v37, %v4321_v39  ;;  %v5106_v37 = vld [vmem:[#allocation11 + $0x1c4] sm:$0xf]  ;;  %v4361_v39 = vld [vmem:[#allocation11 + $0x1c8] sm:$0xf0] }
 0x369   : > { %v1129_v45 = vmul.f32 %v5393_v42, %v1125_v44  ;;  %v4384_v42 = vor.u32 %v5113_v36, %v4383_v34  ;;  %v5112_v44 = vld [vmem:[#allocation11 + $0x1f4] sm:$0xf]  ;;  %v5090_v34 = vld [vmem:[#allocation11 + $0x144] sm:$0xf]  ;;  %v4297_v36 = vld [vmem:[#allocation11 + $0x148] sm:$0xf0] }
 0x36a   : > { %1693 = vmatpush.bf16.msra.mxu0 %v4324_v43  ;;  %v4287_v43 = vld [vmem:[#allocation11 + $0x130] sm:$0xf] }
 0x36b   : > { %v1131_v46 = vrot.slane %v1129_v45, 1  ;;  %v1132_v47 = vperm.slane %v1129_v45, 0  ;;  %v4385_v45 = vld [vmem:[#allocation11 + $0x1f8] sm:$0xf0]  ;;  %1679 = vmatpush.bf16.msra.mxu3 %v4384_v42  ;;  %v5067_v42 = vld [vmem:[#allocation11 + $0x84] sm:$0xf0] }
 0x36d   : > { %v1141_v48 = vperm.slane %v1132_v47, %v6155_v52  ;;  %v1136_v49 = vrot.slane %v1132_v47, 4  ;;  %v1133_v50 = vperm.slane %v1131_v46, 0  ;;  %v6357_v47 = vld [vmem:[#allocation8] sm:$0x3] }
 0x36f   : > { %v6303_v51 = vperm.slane %v1141_v48, %v6170_v14  ;;  %v1146_v0 = vrot.slane %v1141_v48, 4  ;;  %v1179_v53 = vperm.slane %v1133_v50, %v6155_v52  ;;  %v1137_v55 = vsel %vm721_vm1, 0.0, %v1136_v49 }
 0x370   : > { %v1145_v57 = vperm.slane %v1137_v55, %v6155_v52  ;;  %v1174_v58 = vrot.slane %v1133_v50, 4  ;;  %v4388_v48 = vor.u32 %v5112_v44, %v4385_v45  ;;  %v4375_v55 = vld [vmem:[#allocation11 + $0x1e0] sm:$0xf]  ;;  %v5089_v44 = vld [vmem:[#allocation11 + $0x134] sm:$0xf0] }
 0x371   : > { %v1166_v59 = vrot.slane %v6303_v51, 4  ;;  %v1147_v60 = vsel %vm721_vm1, 0.0, %v1146_v0  ;;  %v1184_v61 = vrot.slane %v1179_v53, 4  ;;  %v6314_v1 = vperm.slane %v1179_v53, %v6170_v14  ;;  %v4311_v0 = vld [vmem:[#allocation11 + $0x160] sm:$0xf] }
 0x372   : > { %v1155_v62 = vperm.slane %v1147_v60, %v6170_v14  ;;  %v1156_v3 = vrot.slane %v1145_v57, 4  ;;  %v1175_v5 = vsel %vm721_vm1, 0.0, %v1174_v58  ;;  %v6321_v9 = vperm.slane %v1145_v57, %v6170_v14  ;;  %v5095_v53 = vld [vmem:[#allocation11 + $0x164] sm:$0xf0]  ;;  %1707 = vmatpush.bf16.msra.mxu1 %v4388_v48  ;;  %v5094_v60 = vld [vmem:[#allocation11 + $0x164] sm:$0xf] }
 0x373   : > { %v1167_v63 = vsel %vm721_vm1, 0.0, %v1166_v59  ;;  %v1185_v54 = vsel %vm721_vm1, 0.0, %v1184_v61  ;;  %v1204_v11 = vrot.slane %v6314_v1, 4  ;;  %v1183_v12 = vperm.slane %v1175_v5, %v6155_v52  ;;  %v5111_v59 = vld [vmem:[#allocation11 + $0x1e4] sm:$0xf0] }
 0x374   : > { %1214 = vrot.lane.b32.xlu0 %v1167_v63, %s5847_s16  ;;  %1222 = vrot.lane.b32.xlu1 %v1155_v62, %s5848_s29  ;;  %v1193_v4 = vperm.slane %v1185_v54, %v6170_v14  ;;  %v1157_v10 = vsel %vm721_vm1, 0.0, %v1156_v3  ;;  %v1170_v13 = vrot.slane %v6321_v9, 4  ;;  %v1168_v21 = vrot.slane %v1155_v62, 4  ;;  %v4313_v61 = vld [vmem:[#allocation11 + $0x168] sm:$0xf0] }
 0x375   : > { %v1165_v15 = vperm.slane %v1157_v10, %v6170_v14  ;;  %v1205_v16 = vsel %vm721_vm1, 0.0, %v1204_v11  ;;  %v6331_v17 = vperm.slane %v1183_v12, %v6170_v14  ;;  %v1194_v18 = vrot.slane %v1183_v12, 4  ;;  %v5110_v3 = vld [vmem:[#allocation11 + $0x1e4] sm:$0xf]  ;;  %v4303_v11 = vld [vmem:[#allocation11 + $0x150] sm:$0xf] }
 0x376   : > { %1224 = vrot.lane.b32.xlu2 %v1193_v4, %s5848_s29  ;;  %v1171_v2 = vsel %vm721_vm1, 0.0, %v1170_v13  ;;  %v1169_v23 = vsel %vm721_vm1, 0.0, %v1168_v21  ;;  %v1206_v24 = vrot.slane %v1193_v4, 4  ;;  %v4312_v58 = vor.u32 %v5095_v53, %v4311_v0  ;;  %v4377_v4 = vld [vmem:[#allocation11 + $0x1e8] sm:$0xf0] }
 0x377   : > { %v1208_v19 = vrot.slane %v6331_v17, 4  ;;  %v1195_v20 = vsel %vm721_vm1, 0.0, %v1194_v18  ;;  %v1172_v25 = vrot.slane %v1165_v15, 4  ;;  %v1281_v62 = vperm.slane %v6357_v47, 0  ;;  %v5093_v12 = vld [vmem:[#allocation11 + $0x154] sm:$0xf0] }
 0x378   : > { %v1203_v22 = vperm.slane %v1195_v20, %v6170_v14  ;;  %v1207_v27 = vsel %vm721_vm1, 0.0, %v1206_v24  ;;  %v4376_v63 = vor.u32 %v5111_v59, %v4375_v55  ;;  %v4316_v54 = vor.u32 %v5094_v60, %v4313_v61  ;;  %1666 = vmatpush.bf16.msra.mxu2 %v4312_v58  ;;  %v4367_v13 = vld [vmem:[#allocation11 + $0x1d0] sm:$0xf]  ;;  %v5092_v18 = vld [vmem:[#allocation11 + $0x154] sm:$0xf] }
 0x379   : > { %v1209_v6 = vsel %vm721_vm1, 0.0, %v1208_v19  ;;  %v1173_v28 = vsel %vm721_vm1, 0.0, %v1172_v25  ;;  %v4380_v5 = vor.u32 %v5110_v3, %v4377_v4  ;;  %v4351_v45 = vld [vmem:[#allocation11 + $0x1b0] sm:$0xf]  ;;  %v5105_v48 = vld [vmem:[#allocation11 + $0x1b4] sm:$0xf0] }
 0x37a   : > { %v1210_v26 = vrot.slane %v1203_v22, 4  ;;  %1680 = vmatpush.bf16.msra.mxu3 %v4376_v63  ;;  %1694 = vmatpush.bf16.msra.mxu0 %v4316_v54  ;;  %v4352_v55 = vor.u32 %v5105_v48, %v4351_v45  ;;  %v5104_v58 = vld [vmem:[#allocation11 + $0x1b4] sm:$0xf]  ;;  %v4353_v59 = vld [vmem:[#allocation11 + $0x1b8] sm:$0xf0] }
 0x37b   : > { %1708 = vmatpush.bf16.msra.mxu1 %v4380_v5  ;;  %v4356_v61 = vor.u32 %v5104_v58, %v4353_v59  ;;  %v4279_v4 = vld [vmem:[#allocation11 + $0x120] sm:$0xf]  ;;  %v5087_v5 = vld [vmem:[#allocation11 + $0x124] sm:$0xf0] }
 0x37c   : > { %1246 = vrot.lane.b32.xlu0 %v1165_v15, %s5848_s29  ;;  %1216 = vrot.lane.b32.xlu1 %v1205_v16, %s5847_s16  ;;  %v1211_v29 = vsel %vm721_vm1, 0.0, %v1210_v26  ;;  %v4304_v15 = vor.u32 %v5093_v12, %v4303_v11  ;;  %v5109_v16 = vld [vmem:[#allocation11 + $0x1d4] sm:$0xf0]  ;;  %v4295_v26 = vld [vmem:[#allocation11 + $0x140] sm:$0xf] }
 0x37d   : > { %v5099_v58 = vld [vmem:[#allocation11 + $0x184] sm:$0xf0] }
 0x37e   : > { %1238 = vrot.lane.b32.xlu2 %v1171_v2, %s5847_s16  ;;  %v4305_v2 = vld [vmem:[#allocation11 + $0x158] sm:$0xf0]  ;;  %1667 = vmatpush.bf16.msra.mxu2 %v4304_v15  ;;  %v5086_v15 = vld [vmem:[#allocation11 + $0x124] sm:$0xf] }
 0x384   : > { %1240 = vrot.lane.b32.xlu0 %v1209_v6, %s5847_s16  ;;  %1248 = vrot.lane.b32.xlu1 %v1203_v22, %s5848_s29  ;;  %v4368_v22 = vor.u32 %v5109_v16, %v4367_v13  ;;  %v5108_v6 = vld [vmem:[#allocation11 + $0x1d4] sm:$0xf]  ;;  %v5103_v13 = vld [vmem:[#allocation11 + $0x1a4] sm:$0xf0] }
 0x386   : > { %1230 = vrot.lane.b32.xlu2 %v1169_v23, %s5846_s2  ;;  %v4369_v23 = vld [vmem:[#allocation11 + $0x1d8] sm:$0xf0]  ;;  %1681 = vmatpush.bf16.msra.mxu3 %v4368_v22  ;;  %v4281_v22 = vld [vmem:[#allocation11 + $0x128] sm:$0xf0] }
 0x387   : > { %v4372_v24 = vor.u32 %v5108_v6, %v4369_v23 }
 0x389   : > { %1709 = vmatpush.bf16.msra.mxu1 %v4372_v24 }
 0x38a   : > { %1682 = vmatpush.bf16.msra.mxu3 %v4360_v35  ;;  %v4272_v35 = vor.u32 %v5085_v33, %v4271_v32  ;;  %v5063_v32 = vld [vmem:[#allocation11 + $0x64] sm:$0xf0] }
 0x38c   : > { %1232 = vrot.lane.b32.xlu0 %v1207_v27, %s5846_s2  ;;  %1254 = vrot.lane.b32.xlu1 %v1173_v28, %s5846_s2  ;;  %v5091_v27 = vld [vmem:[#allocation11 + $0x144] sm:$0xf0]  ;;  %v622_v28 = vlaneseq }
 0x38e   : > { %1256 = vrot.lane.b32.xlu2 %v1211_v29, %s5846_s2  ;;  %v4296_v29 = vor.u32 %v5091_v27, %v4295_v26  ;;  %vm6372_vm8 = vcmp.lt.s32.totalorder %v622_v28, 256  ;;  %1683 = vmatpush.bf16.msra.mxu3 %v4352_v55  ;;  %v4284_v28 = vor.u32 %v5086_v15, %v4281_v22  ;;  %v5083_v55 = vld [vmem:[#allocation11 + $0x104] sm:$0xf0]  ;;  %v4511_v22 = vld [vmem:[#allocation11 + $0xf0] sm:$0xf] }
 0x390   : > { %1668 = vmatpush.bf16.msra.mxu2 %v4296_v29 }
 0x3d0   : > { %v6351_v30 = vpop.permute.xlu2 %1224 }
 0x3d8   : > { %v6353_v31 = vpop.permute.xlu2 %1238 }
 0x3d9   : > { %v1266_v26 = vsel %vm761_vm2, %v6321_v9, %v6353_v31 }
 0x3e0   : > { %v1231_v49 = vpop.permute.xlu2 %1230 }
 0x3e6   : > { %v1215_v40 = vpop.permute.xlu0 %1214  ;;  %v1223_v41 = vpop.permute.xlu1 %1222 }
 0x3e7   : > { %v1260_v46 = vsel %vm761_vm2, %v6303_v51, %v1215_v40  ;;  %v4300_v40 = vor.u32 %v5090_v34, %v4297_v36  ;;  %v5101_v36 = vld [vmem:[#allocation11 + $0x194] sm:$0xf0] }
 0x3e8   : > { %v1262_v50 = vsel %vm937_vm4, %v1260_v46, %v1223_v41  ;;  %v4364_v41 = vor.u32 %v5106_v37, %v4361_v39  ;;  %v4288_v46 = vor.u32 %v5089_v44, %v4287_v43  ;;  %v1257_v54 = vpop.permute.xlu2 %1256  ;;  %v5084_v37 = vld [vmem:[#allocation11 + $0x114] sm:$0xf] }
 0x3e9   : > { %v1264_v57 = vsel %vm940_vm3, %v1262_v50, %v1231_v49  ;;  %v5088_v49 = vld [vmem:[#allocation11 + $0x134] sm:$0xf]  ;;  %v4289_v50 = vld [vmem:[#allocation11 + $0x138] sm:$0xf0] }
 0x3ea   : > { %v1272_v51 = vperm.slane %v1264_v57, 0  ;;  %1710 = vmatpush.bf16.msra.mxu1 %v4364_v41  ;;  %v4292_v57 = vor.u32 %v5088_v49, %v4289_v50  ;;  %1669 = vmatpush.bf16.msra.mxu2 %v4288_v46  ;;  %v4273_v41 = vld [vmem:[#allocation11 + $0x118] sm:$0xf0]  ;;  %v5100_v43 = vld [vmem:[#allocation11 + $0x194] sm:$0xf] }
 0x3eb   : > { %v4276_v46 = vor.u32 %v5084_v37, %v4273_v41  ;;  %v5062_v37 = vld [vmem:[#allocation11 + $0x64] sm:$0xf]  ;;  %v4505_v41 = vld [vmem:[#allocation11 + $0xe8] sm:$0xf0] }
 0x3ec   : > { %v1276_v10 = vmul.f32 %v1272_v51, %v6255_v8  ;;  %v4308_v8 = vor.u32 %v5092_v18, %v4305_v2  ;;  %v5851_v51 = vmov 0.0   ;;  %v1282_v18 = vperm.slane %v6357_v47, 1 }
 0x3ed   : > { %626 = vst.msk [vmem:[#allocation2] ss:$8 sm:$0x3] %vm6372_vm8, %v5851_v51 }
 0x3ee   : > { %v6363_v19 = vpop.permute.xlu0 %1246  ;;  %v6365_v20 = vpop.permute.xlu1 %1216  ;;  %v6369_v21 = vadd.f32 %v1281_v62, %v1276_v10  ;;  %1695 = vmatpush.bf16.msra.mxu0 %v4308_v8  ;;  %v4343_v10 = vld [vmem:[#allocation11 + $0x1a0] sm:$0xf]  ;;  %1711 = vmatpush.bf16.msra.mxu1 %v4356_v61  ;;  %v5102_v8 = vld [vmem:[#allocation11 + $0x1a4] sm:$0xf] }
 0x3ef   : > { %v4344_v2 = vor.u32 %v5103_v13, %v4343_v10  ;;  %v1261_v6 = vsel %vm761_vm2, %v6314_v1, %v6365_v20  ;;  %v4335_v1 = vld [vmem:[#allocation11 + $0x190] sm:$0xf]  ;;  %v1268_v20 = vsel %vm937_vm4, %v1266_v26, %v6363_v19  ;;  %v4337_v19 = vld [vmem:[#allocation11 + $0x198] sm:$0xf0]  ;;  %v5080_v26 = vld [vmem:[#allocation11 + $0xf4] sm:$0xf] }
 0x3f0   : > { %v4257_v25 = vmul.f32 -1.442695, %v6369_v21  ;;  %v1263_v39 = vsel %vm937_vm4, %v1261_v6, %v6351_v30  ;;  %v4340_v48 = vor.u32 %v5100_v43, %v4337_v19  ;;  %v4447_v13 = vld [vmem:[#allocation11 + $0x70] sm:$0xf]  ;;  %v5081_v6 = vld [vmem:[#allocation11 + $0xf4] sm:$0xf0] }
 0x3f1   : > { %1684 = vmatpush.bf16.msra.mxu3 %v4344_v2  ;;  %v5065_v2 = vld [vmem:[#allocation11 + $0x74] sm:$0xf0]  ;;  %629 = vst.msk [vmem:[#allocation2 + $0x20] ss:$8 sm:$0x3] %vm6372_vm8, %v5851_v51 }
 0x3f2   : > { %5399 = vpow2.f32 %v4257_v25  ;;  %1696 = vmatpush.bf16.msra.mxu0 %v4300_v40  ;;  %v4345_v25 = vld [vmem:[#allocation11 + $0x1a8] sm:$0xf0]  ;;  %v4336_v40 = vor.u32 %v5101_v36, %v4335_v1  ;;  %v5079_v36 = vld [vmem:[#allocation11 + $0xe4] sm:$0xf0] }
 0x3f3   : > { %v4348_v29 = vor.u32 %v5102_v8, %v4345_v25  ;;  %v4448_v8 = vor.u32 %v5065_v2, %v4447_v13  ;;  %v5075_v13 = vld [vmem:[#allocation11 + $0xc4] sm:$0xf0]  ;;  %632 = vst.msk [vmem:[#allocation2 + $0x11] ss:$8 sm:$0x3] %vm6372_vm8, %v5851_v51 }
 0x3f4   : > { %635 = vst.msk [vmem:[#allocation2 + $0x31] ss:$8 sm:$0x3] %vm6372_vm8, %v5851_v51  ;;  %vm1433_vm8 = vsmask.f32 3328 }
 0x3f5   : > { %1712 = vmatpush.bf16.msra.mxu1 %v4348_v29  ;;  %1685 = vmatpush.bf16.msra.mxu3 %v4336_v40  ;;  %v4439_v29 = vld [vmem:[#allocation11 + $0x60] sm:$0xf]  ;;  %v5078_v40 = vld [vmem:[#allocation11 + $0xe4] sm:$0xf] }
 0x3f6   : > { %v1241_v0 = vpop.permute.xlu0 %1240  ;;  %v1249_v53 = vpop.permute.xlu1 %1248  ;;  %1697 = vmatpush.bf16.msra.mxu0 %v4292_v57  ;;  %v4327_v57 = vld [vmem:[#allocation11 + $0x180] sm:$0xf] }
 0x3f7   : > { %v1267_v60 = vsel %vm761_vm2, %v6331_v17, %v1241_v0  ;;  %v4280_v17 = vor.u32 %v5087_v5, %v4279_v4  ;;  %v4263_v0 = vld [vmem:[#allocation11 + $0x100] sm:$0xf]  ;;  %v5098_v4 = vld [vmem:[#allocation11 + $0x184] sm:$0xf]  ;;  %v4328_v10 = vor.u32 %v5099_v58, %v4327_v57  ;;  %v5076_v58 = vld [vmem:[#allocation11 + $0xd4] sm:$0xf] }
 0x3f8   : > { %v5400_v63 = vpop.eup %5399  ;;  %v1269_v3 = vsel %vm937_vm4, %v1267_v60, %v1249_v53  ;;  %v4264_v5 = vor.u32 %v5083_v55, %v4263_v0  ;;  %v5077_v0 = vld [vmem:[#allocation11 + $0xd4] sm:$0xf0]  ;;  %v5060_v55 = vld [vmem:[#allocation11 + $0x54] sm:$0xf] }
 0x3f9   : > { %v1271_v11 = vsel %vm940_vm3, %v1269_v3, %v1257_v54  ;;  %v6383_v12 = vadd.f32 1.0, %v5400_v63  ;;  %1670 = vmatpush.bf16.msra.mxu2 %v4280_v17  ;;  %1713 = vmatpush.bf16.msra.mxu1 %v4340_v48  ;;  %v5082_v54 = vld [vmem:[#allocation11 + $0x104] sm:$0xf]  ;;  %v4265_v3 = vld [vmem:[#allocation11 + $0x108] sm:$0xf0] }
 0x3fa   : > { %v1275_v16 = vperm.slane %v1271_v11, 0  ;;  %1698 = vmatpush.bf16.msra.mxu0 %v4284_v28  ;;  %v4268_v11 = vor.u32 %v5082_v54, %v4265_v3  ;;  %v4329_v17 = vld [vmem:[#allocation11 + $0x188] sm:$0xf0]  ;;  %1686 = vmatpush.bf16.msra.mxu3 %v4328_v10  ;;  %v4513_v28 = vld [vmem:[#allocation11 + $0xf8] sm:$0xf0] }
 0x3fb   : > { %5401 = vrcp.f32 %v6383_v12  ;;  %v1314_v23 = vand.u32 2147483647, %v6383_v12  ;;  %v1316_v24 = vand.u32 2147483648, %v6383_v12  ;;  %vm1310_vm11 = vweird.f32 %v6383_v12  ;;  %v5061_v48 = vld [vmem:[#allocation11 + $0x54] sm:$0xf0] }
 0x3fc   : > { %v1279_v27 = vmul.f32 %v1275_v16, %v6243_v56  ;;  %v4516_v1 = vor.u32 %v5080_v26, %v4513_v28  ;;  %v4423_v54 = vld [vmem:[#allocation11 + $0x40] sm:$0xf]  ;;  %v4479_v28 = vld [vmem:[#allocation11 + $0xb0] sm:$0xf] }
 0x3fd   : > { %v6398_v34 = vor.u32 1.1754944e-38, %v1316_v24  ;;  %1671 = vmatpush.bf16.msra.mxu2 %v4272_v35  ;;  %vm6414_vm10 = vcmp.eq.f32.partialorder %v1314_v23, 8.507059e+37  ;;  %v5064_v23 = vld [vmem:[#allocation11 + $0x74] sm:$0xf]  ;;  %v4449_v24 = vld [vmem:[#allocation11 + $0x78] sm:$0xf0] }
 0x3fe   : > { %v1233_v9 = vpop.permute.xlu0 %1232  ;;  %v1255_v31 = vpop.permute.xlu1 %1254  ;;  %v6404_v56 = vadd.f32 %v1282_v18, %v1279_v27  ;;  %1699 = vmatpush.bf16.msra.mxu0 %v4276_v46  ;;  %v4452_v27 = vor.u32 %v5064_v23, %v4449_v24  ;;  %v4503_v35 = vld [vmem:[#allocation11 + $0xe0] sm:$0xf]  ;;  %v4431_v46 = vld [vmem:[#allocation11 + $0x50] sm:$0xf]  ;;  %v5074_v23 = vld [vmem:[#allocation11 + $0xc4] sm:$0xf] }
 0x3ff   : > { %v1265_v44 = vsel %vm940_vm3, %v1263_v39, %v1233_v9  ;;  %v1270_v45 = vsel %vm940_vm3, %v1268_v20, %v1255_v31  ;;  %v4440_v20 = vor.u32 %v5063_v32, %v4439_v29  ;;  %v4504_v9 = vor.u32 %v5079_v36, %v4503_v35  ;;  %v4441_v31 = vld [vmem:[#allocation11 + $0x68] sm:$0xf0]  ;;  %v4417_v36 = vld [vmem:[#allocation11 + $0x38] sm:$0xf0] }
 0x400   : > { %v1274_v30 = vperm.slane %v1265_v44, 0  ;;  %v1273_v49 = vperm.slane %v1270_v45, 0  ;;  %v4260_v50 = vmul.f32 -1.442695, %v6404_v56  ;;  %v4444_v44 = vor.u32 %v5062_v37, %v4441_v31  ;;  %v5072_v37 = vld [vmem:[#allocation11 + $0xb4] sm:$0xf] }
 0x401   : > { %v6409_v53 = vpop.eup %5401  ;;  %1672 = vmatpush.bf16.msra.mxu2 %v4264_v5  ;;  %v4508_v45 = vor.u32 %v5078_v40, %v4505_v41  ;;  %v4487_v5 = vld [vmem:[#allocation11 + $0xc0] sm:$0xf] }
 0x402   : > { %v1306_v59 = vmul.f32 %v6409_v53, %v6383_v12  ;;  %vm1311_vm9 = vweird.f32 %v6409_v53  ;;  %v1278_v61 = vmul.f32 %v1274_v30, %v6233_v38  ;;  %v1277_v63 = vmul.f32 %v1273_v49, %v6260_v7  ;;  %1700 = vmatpush.bf16.msra.mxu0 %v4268_v11 }
 0x403   : > { %5403 = vpow2.f32 %v4260_v50  ;;  %v4332_v7 = vor.u32 %v5098_v4, %v4329_v17  ;;  %vm6432_vm12 = vmor %vm1310_vm11, %vm1311_vm9  ;;  %v4512_v12 = vor.u32 %v5081_v6, %v4511_v22  ;;  %v4432_v49 = vor.u32 %v5061_v48, %v4431_v46  ;;  %v4495_v50 = vld [vmem:[#allocation11 + $0xd0] sm:$0xf]  ;;  %v5059_v4 = vld [vmem:[#allocation11 + $0x44] sm:$0xf0] }
 0x404   : > { %v1307_v15 = vsub.f32 1.0, %v1306_v59  ;;  %v6422_v16 = vadd.f32 %v1281_v62, %v1278_v61  ;;  %v6426_v38 = vadd.f32 %v1282_v18, %v1277_v63  ;;  %v4496_v59 = vor.u32 %v5077_v0, %v4495_v50  ;;  %v4497_v63 = vld [vmem:[#allocation11 + $0xd8] sm:$0xf0]  ;;  %v5058_v22 = vld [vmem:[#allocation11 + $0x44] sm:$0xf] }
 0x405   : > { %1714 = vmatpush.bf16.msra.mxu1 %v4332_v7  ;;  %1891 = vmatpush.bf16.msrb.mxu2 %v4448_v8  ;;  %v4424_v17 = vor.u32 %v5059_v4, %v4423_v54  ;;  %v4488_v2 = vor.u32 %v5075_v13, %v4487_v5  ;;  %v4425_v8 = vld [vmem:[#allocation11 + $0x48] sm:$0xf0]  ;;  %v5054_v50 = vld [vmem:[#allocation11 + $0x24] sm:$0xf]  ;;  %v5053_v4 = vld [vmem:[#allocation11 + $0x14] sm:$0xf0] }
 0x406   : > { %v1308_v25 = vmul.f32 %v6409_v53, %v1307_v15  ;;  %v4259_v47 = vmul.f32 -1.442695, %v6422_v16  ;;  %v4258_v18 = vmul.f32 -1.442695, %v6426_v38  ;;  %1905 = vmatpush.bf16.msrb.mxu3 %v4512_v12  ;;  %1919 = vmatpush.bf16.msrb.mxu0 %v4452_v27  ;;  %v4489_v62 = vld [vmem:[#allocation11 + $0xc8] sm:$0xf0]  ;;  %v4428_v12 = vor.u32 %v5058_v22, %v4425_v8 }
 0x407   : > { %v4492_v26 = vor.u32 %v5074_v23, %v4489_v62  ;;  %v5057_v27 = vld [vmem:[#allocation11 + $0x34] sm:$0xf0]  ;;  %v4409_v0 = vld [vmem:[#allocation11 + $0x28] sm:$0xf0]  ;;  %v4463_v13 = vld [vmem:[#allocation11 + $0x90] sm:$0xf] }
 0x408   : > { %v1309_v33 = vadd.f32 %v6409_v53, %v1308_v25  ;;  %5405 = vpow2.f32 %v4259_v47  ;;  %v4415_v47 = vld [vmem:[#allocation11 + $0x30] sm:$0xf]  ;;  %v5052_v23 = vld [vmem:[#allocation11 + $0x14] sm:$0xf] }
 0x409   : > { %v5404_v39 = vpop.eup %5403  ;;  %5407 = vpow2.f32 %v4258_v18  ;;  %1933 = vmatpush.bf16.msrb.mxu1 %v4516_v1  ;;  %1892 = vmatpush.bf16.msrb.mxu2 %v4440_v20  ;;  %v5073_v1 = vld [vmem:[#allocation11 + $0xb4] sm:$0xf0]  ;;  %v5056_v20 = vld [vmem:[#allocation11 + $0x34] sm:$0xf] }
 0x40a   : > { %v1313_v43 = vsel %vm6432_vm12, %v6409_v53, %v1309_v33  ;;  %v6442_v19 = vadd.f32 1.0, %v5404_v39  ;;  %1906 = vmatpush.bf16.msrb.mxu3 %v4504_v9  ;;  %v4433_v53 = vld [vmem:[#allocation11 + $0x58] sm:$0xf0]  ;;  %1920 = vmatpush.bf16.msrb.mxu0 %v4444_v44  ;;  %v4416_v33 = vor.u32 %v5057_v27, %v4415_v47  ;;  %v4480_v35 = vor.u32 %v5073_v1, %v4479_v28  ;;  %v5055_v44 = vld [vmem:[#allocation11 + $0x24] sm:$0xf0] }
 0x40b   : > { %v1318_v30 = vsel %vm6414_vm10, %v6398_v34, %v1313_v43  ;;  %v4436_v61 = vor.u32 %v5060_v55, %v4433_v53  ;;  %v4500_v34 = vor.u32 %v5076_v58, %v4497_v63  ;;  %v4481_v39 = vld [vmem:[#allocation11 + $0xb8] sm:$0xf0]  ;;  %v4420_v40 = vor.u32 %v5056_v20, %v4417_v36  ;;  %v4407_v43 = vld [vmem:[#allocation11 + $0x20] sm:$0xf]  ;;  %v5068_v62 = vld [vmem:[#allocation11 + $0x94] sm:$0xf] }
 0x40c   : > { %v1365_v57 = vmul.f32 %v1318_v30, %v6369_v21  ;;  %5409 = vrcp.f32 %v6442_v19  ;;  %v1359_v21 = vand.u32 2147483647, %v6442_v19  ;;  %v1361_v7 = vand.u32 2147483648, %v6442_v19  ;;  %v4455_v36 = vld [vmem:[#allocation11 + $0x80] sm:$0xf] }
 0x40d   : > { %1934 = vmatpush.bf16.msrb.mxu1 %v4508_v45  ;;  %1893 = vmatpush.bf16.msrb.mxu2 %v4432_v49  ;;  %v4484_v41 = vor.u32 %v5072_v37, %v4481_v39  ;;  %v4471_v45 = vld [vmem:[#allocation11 + $0xa0] sm:$0xf]  ;;  %vm1355_vm5 = vweird.f32 %v6442_v19  ;;  %v4408_v30 = vor.u32 %v5055_v44, %v4407_v43  ;;  %v5071_v49 = vld [vmem:[#allocation11 + $0xa4] sm:$0xf0]  ;;  %v5050_v39 = vld [vmem:[#allocation11 + $0x4] sm:$0xf] }
 0x40e   : > { %v5406_v3 = vpop.eup %5405  ;;  %v1373_v60 = vrot.slane %v1365_v57, 7  ;;  %1907 = vmatpush.bf16.msrb.mxu3 %v4496_v59  ;;  %1921 = vmatpush.bf16.msrb.mxu0 %v4436_v61  ;;  %vm6461_vm13 = vcmp.eq.f32.partialorder %v1359_v21, 8.507059e+37  ;;  %v1362_v32 = vor.u32 1.1754944e-38, %v1361_v7  ;;  %v4472_v58 = vor.u32 %v5071_v49, %v4471_v45  ;;  %v5070_v59 = vld [vmem:[#allocation11 + $0xa4] sm:$0xf] }
 0x40f   : > { %v5408_v10 = vpop.eup %5407  ;;  %v6449_v11 = vadd.f32 1.0, %v5406_v3  ;;  %v4473_v61 = vld [vmem:[#allocation11 + $0xa8] sm:$0xf0]  ;;  %v4412_v3 = vor.u32 %v5054_v50, %v4409_v0  ;;  %v5069_v7 = vld [vmem:[#allocation11 + $0x94] sm:$0xf0] }
 0x410   : > { %1381 = vst [vmem:[#allocation2] sm:$0xfe] %v1373_v60  ;;  %v6452_v15 = vadd.f32 1.0, %v5408_v10  ;;  %v4464_v8 = vor.u32 %v5069_v7, %v4463_v13  ;;  %v4457_v43 = vld [vmem:[#allocation11 + $0x88] sm:$0xf0] }
 0x411   : > { %1383 = vst [vmem:[#allocation2 + $0x10] sm:$0x1] %v1373_v60  ;;  %5411 = vrcp.f32 %v6449_v11  ;;  %1935 = vmatpush.bf16.msrb.mxu1 %v4500_v34  ;;  %1894 = vmatpush.bf16.msrb.mxu2 %v4424_v17  ;;  %v1344_v18 = vand.u32 2147483647, %v6449_v11  ;;  %vm1340_vm15 = vweird.f32 %v6449_v11  ;;  %v1346_v54 = vand.u32 2147483648, %v6449_v11 }
 0x412   : > { %v6456_v6 = vpop.eup %5409  ;;  %5413 = vrcp.f32 %v6452_v15  ;;  %1908 = vmatpush.bf16.msrb.mxu3 %v4488_v2  ;;  %1922 = vmatpush.bf16.msrb.mxu0 %v4428_v12  ;;  %v1329_v57 = vand.u32 2147483647, %v6452_v15  ;;  %v4476_v60 = vor.u32 %v5070_v59, %v4473_v61  ;;  %v4399_v34 = vld [vmem:[#allocation11 + $0x10] sm:$0xf]  ;;  %v1331_v10 = vand.u32 2147483648, %v6452_v15 }
 0x413   : > { %v1351_v24 = vmul.f32 %v6456_v6, %v6442_v19  ;;  %vm1356_vm14 = vweird.f32 %v6456_v6  ;;  %v4400_v17 = vor.u32 %v5053_v4, %v4399_v34  ;;  %vm1325_vm9 = vweird.f32 %v6452_v15  ;;  %v4465_v12 = vld [vmem:[#allocation11 + $0x98] sm:$0xf0] }
 0x414   : > { %vm6483_vm6 = vmor %vm1355_vm5, %vm1356_vm14  ;;  %v4468_v27 = vor.u32 %v5068_v62, %v4465_v12  ;;  %vm1345_vm12 = vcmp.eq.f32.partialorder %v1344_v18, 8.507059e+37  ;;  %vm1330_vm14 = vcmp.eq.f32.partialorder %v1329_v57, 8.507059e+37  ;;  %v5051_v18 = vld [vmem:[#allocation11 + $0x4] sm:$0xf0] }
 0x415   : > { %v1352_v29 = vsub.f32 1.0, %v1351_v24  ;;  %1936 = vmatpush.bf16.msrb.mxu1 %v4492_v26  ;;  %1895 = vmatpush.bf16.msrb.mxu2 %v4416_v33  ;;  %v4401_v24 = vld [vmem:[#allocation11 + $0x18] sm:$0xf0]  ;;  %v1332_v33 = vor.u32 1.1754944e-38, %v1331_v10 }
 0x416   : > { %1909 = vmatpush.bf16.msrb.mxu3 %v4480_v35  ;;  %1923 = vmatpush.bf16.msrb.mxu0 %v4420_v40  ;;  %v4404_v26 = vor.u32 %v5052_v23, %v4401_v24 }
 0x417   : > { %v6466_v9 = vpop.eup %5411  ;;  %v1353_v31 = vmul.f32 %v6456_v6, %v1352_v29 }
 0x418   : > { %v6470_v46 = vpop.eup %5413  ;;  %v1336_v48 = vmul.f32 %v6466_v9, %v6449_v11  ;;  %vm1341_vm7 = vweird.f32 %v6466_v9  ;;  %v4391_v11 = vld [vmem:[#allocation11] sm:$0xf]  ;;  %v1391_v57 = vld [vmem:[#allocation2 + $0x10] sm:$0x3] }
 0x419   : > { %v1321_v55 = vmul.f32 %v6470_v46, %v6452_v15  ;;  %v1354_v53 = vadd.f32 %v6456_v6, %v1353_v31  ;;  %1937 = vmatpush.bf16.msrb.mxu1 %v4484_v41  ;;  %1896 = vmatpush.bf16.msrb.mxu2 %v4408_v30  ;;  %vm1326_vm10 = vweird.f32 %v6470_v46  ;;  %vm1342_vm11 = vmor %vm1340_vm15, %vm1341_vm7  ;;  %v4392_v35 = vor.u32 %v5051_v18, %v4391_v11  ;;  %v5066_v41 = vld [vmem:[#allocation11 + $0x84] sm:$0xf] }
 0x41a   : > { %v1337_v63 = vsub.f32 1.0, %v1336_v48  ;;  %1910 = vmatpush.bf16.msrb.mxu3 %v4472_v58  ;;  %1924 = vmatpush.bf16.msrb.mxu0 %v4412_v3  ;;  %v4456_v15 = vor.u32 %v5067_v42, %v4455_v36  ;;  %v4460_v45 = vor.u32 %v5066_v41, %v4457_v43  ;;  %vm1434_vm15 = vsmask.f32 7440  ;;  %v5127_v36 = vld [vmem:[#allocation11 + $0x264] sm:$0xf0] }
 0x41b   : > { %v1322_v5 = vsub.f32 1.0, %v1321_v55  ;;  %v1358_v21 = vsel %vm6483_vm6, %v6456_v6, %v1354_v53  ;;  %vm6539_vm5 = vmor %vm1433_vm8, %vm1434_vm15  ;;  %v4561_v41 = vld [vmem:[#allocation11 + $0x250] sm:$0xf]  ;;  %v5125_v43 = vld [vmem:[#allocation11 + $0x254] sm:$0xf0]  ;;  %vm1949_vm6 = vcmask 1042432  }
 0x41c   : > { %v1338_v2 = vmul.f32 %v6466_v9, %v1337_v63  ;;  %v1363_v22 = vsel %vm6461_vm13, %v1362_v32, %v1358_v21  ;;  %vm1327_vm13 = vmor %vm1325_vm9, %vm1326_vm10  ;;  %vm1950_vm7 = vcmask 1046532  }
 0x41d   : > { %v1323_v47 = vmul.f32 %v6470_v46, %v1322_v5  ;;  %v1368_v6 = vmul.f32 %v1363_v22, %v6404_v56  ;;  %1938 = vmatpush.bf16.msrb.mxu1 %v4476_v60  ;;  %v1347_v56 = vor.u32 1.1754944e-38, %v1346_v54  ;;  %1897 = vmatpush.bf16.msrb.mxu2 %v4400_v17  ;;  %vm6576_vm9 = vmor %vm1949_vm6, %vm1950_vm7  ;;  %v5222_v17 = vld [vmem:[#allocation18 + $0x264] sm:$0xf] }
 0x41e   : > { %v1339_v25 = vadd.f32 %v6466_v9, %v1338_v2  ;;  %1911 = vmatpush.bf16.msrb.mxu3 %v4464_v8  ;;  %1925 = vmatpush.bf16.msrb.mxu0 %v4404_v26  ;;  %v5145_v26 = vld [vmem:[#allocation11 + $0x2f4] sm:$0xf0] }
 0x41f   : > { %v1324_v28 = vadd.f32 %v6470_v46, %v1323_v47  ;;  %v1376_v29 = vrot.slane %v1368_v6, 7  ;;  %v4577_v47 = vld [vmem:[#allocation11 + $0x270] sm:$0xf]  ;;  %v5129_v6 = vld [vmem:[#allocation11 + $0x274] sm:$0xf0] }
 0x420   : > { %v1343_v32 = vsel %vm1342_vm11, %v6466_v9, %v1339_v25  ;;  %v4393_v9 = vld [vmem:[#allocation11 + $0x8] sm:$0xf0]  ;;  %v4641_v25 = vld [vmem:[#allocation11 + $0x2f0] sm:$0xf] }
 0x421   : > { %v1348_v1 = vsel %vm1345_vm12, %v1347_v56, %v1343_v32  ;;  %v1328_v20 = vsel %vm1327_vm13, %v6470_v46, %v1324_v28  ;;  %1386 = vst [vmem:[#allocation2 + $0x28] sm:$0xfe] %v1376_v29  ;;  %1939 = vmatpush.bf16.msrb.mxu1 %v4468_v27  ;;  %1898 = vmatpush.bf16.msrb.mxu2 %v4392_v35  ;;  %v5128_v27 = vld [vmem:[#allocation11 + $0x274] sm:$0xf]  ;;  %v4569_v35 = vld [vmem:[#allocation11 + $0x260] sm:$0xf] }
 0x422   : > { %v1367_v51 = vmul.f32 %v1348_v1, %v6422_v16  ;;  %v1333_v37 = vsel %vm1330_vm14, %v1332_v33, %v1328_v20  ;;  %1388 = vst [vmem:[#allocation2 + $0x38] sm:$0x1] %v1376_v29  ;;  %v4396_v40 = vor.u32 %v5050_v39, %v4393_v9  ;;  %1912 = vmatpush.bf16.msrb.mxu3 %v4456_v15  ;;  %v4579_v29 = vld [vmem:[#allocation11 + $0x278] sm:$0xf0]  ;;  %v5144_v32 = vld [vmem:[#allocation11 + $0x2f4] sm:$0xf] }
 0x423   : > { %v1366_v31 = vmul.f32 %v1333_v37, %v6426_v38  ;;  %v1389_v38 = vld [vmem:[#allocation2] sm:$0xff]  ;;  %v4578_v1 = vor.u32 %v5129_v6, %v4577_v47  ;;  %v4642_v20 = vor.u32 %v5145_v26, %v4641_v25  ;;  %v4582_v42 = vor.u32 %v5128_v27, %v4579_v29  ;;  %v5143_v15 = vld [vmem:[#allocation11 + $0x2e4] sm:$0xf0]  ;;  %v5126_v39 = vld [vmem:[#allocation11 + $0x264] sm:$0xf] }
 0x424   : > { %v1375_v44 = vrot.slane %v1367_v51, 7  ;;  %1926 = vmatpush.bf16.msrb.mxu0 %v4396_v40  ;;  %v4643_v33 = vld [vmem:[#allocation11 + $0x2f8] sm:$0xf0]  ;;  %v4633_v37 = vld [vmem:[#allocation11 + $0x2e0] sm:$0xf] }
 0x425   : > { %v1374_v46 = vrot.slane %v1366_v31, 7  ;;  %1940 = vmatpush.bf16.msrb.mxu1 %v4460_v45  ;;  %v4646_v51 = vor.u32 %v5144_v32, %v4643_v33  ;;  %v4571_v9 = vld [vmem:[#allocation11 + $0x268] sm:$0xf0]  ;;  %v5142_v31 = vld [vmem:[#allocation11 + $0x2e4] sm:$0xf]  ;;  %v4634_v45 = vor.u32 %v5143_v15, %v4633_v37 }
 0x426   : > { %1385 = vst [vmem:[#allocation2 + $0x20] sm:$0xfe] %v1375_v44  ;;  %v4635_v40 = vld [vmem:[#allocation11 + $0x2e8] sm:$0xf0]  ;;  %v4545_v25 = vld [vmem:[#allocation11 + $0x230] sm:$0xf] }
 0x427   : > { %1387 = vst [vmem:[#allocation2 + $0x30] sm:$0x1] %v1375_v44  ;;  %v4570_v44 = vor.u32 %v5127_v36, %v4569_v35  ;;  %v5121_v26 = vld [vmem:[#allocation11 + $0x234] sm:$0xf0]  ;;  %v4609_v27 = vld [vmem:[#allocation11 + $0x2b0] sm:$0xf] }
 0x428   : > { %1382 = vst [vmem:[#allocation2 + $0x8] sm:$0xfe] %v1374_v46  ;;  %v1394_v48 = vld [vmem:[#allocation2 + $0x28] sm:$0xff]  ;;  %v5137_v32 = vld [vmem:[#allocation11 + $0x2b4] sm:$0xf0] }
 0x429   : > { %1384 = vst [vmem:[#allocation2 + $0x18] sm:$0x1] %v1374_v46  ;;  %v1396_v49 = vld [vmem:[#allocation2 + $0x38] sm:$0x3]  ;;  %v4625_v46 = vld [vmem:[#allocation11 + $0x2d0] sm:$0xf] }
 0x42a   : > { %v5120_v33 = vld [vmem:[#allocation11 + $0x234] sm:$0xf]  ;;  %v4537_v37 = vld [vmem:[#allocation11 + $0x220] sm:$0xf]  ;;  %v5119_v15 = vld [vmem:[#allocation11 + $0x224] sm:$0xf0] }
 0x42d   : > { %v1393_v16 = vld [vmem:[#allocation2 + $0x20] sm:$0xff] }
 0x42e   : > { %v1395_v30 = vld [vmem:[#allocation2 + $0x30] sm:$0x3]  ;;  %v6524_v50 = vpack.c.bf16 %v1394_v48, %v1393_v16  ;;  %v5141_v16 = vld [vmem:[#allocation11 + $0x2d4] sm:$0xf0]  ;;  %v6550_v48 = vld [vmem:[%s619_s13] sm:$0x1] }
 0x42f   : > { %v1390_v0 = vld [vmem:[#allocation2 + $0x8] sm:$0xff]  ;;  %v6526_v55 = vpack.c.bf16 %v1396_v49, %v1395_v30  ;;  %v4574_v30 = vor.u32 %v5126_v39, %v4571_v9  ;;  %v4638_v49 = vor.u32 %v5142_v31, %v4635_v40  ;;  %v4601_v39 = vld [vmem:[#allocation11 + $0x2a0] sm:$0xf]  ;;  %v4610_v40 = vor.u32 %v5137_v32, %v4609_v27  ;;  %v4587_v27 = vld [vmem:[#allocation11 + $0x288] sm:$0xf0] }
 0x430   : > { %v1392_v53 = vld [vmem:[#allocation2 + $0x18] sm:$0x3]  ;;  %v6528_v58 = vpack.c.bf16 %v1390_v0, %v1389_v38  ;;  %v1451_v59 = vshrl.u32 %v6524_v50, 16  ;;  %v1454_v61 = vshll.u32 %v6524_v50, 16  ;;  %v5135_v9 = vld [vmem:[#allocation11 + $0x2a4] sm:$0xf0] }
 0x431   : > { %v6532_v63 = vpack.c.bf16 %v1392_v53, %v1391_v57  ;;  %v1460_v54 = vshll.u32 %v6526_v55, 16  ;;  %v5124_v38 = vld [vmem:[#allocation11 + $0x254] sm:$0xf]  ;;  %v4647_v57 = vmul.f32 -1.442695, %v6550_v48 }
 0x432   : > { %v1437_v19 = vshrl.u32 %v6528_v58, 16  ;;  %v1440_v3 = vshll.u32 %v6528_v58, 16  ;;  %v1453_v60 = vrot.slane %v1451_v59, 4  ;;  %v1456_v34 = vrot.slane %v1454_v61, 5  ;;  %v6552_v0 = vld [vmem:[%s619_s13 + $0x1] sm:$0x1] }
 0x433   : > { %v1446_v10 = vshll.u32 %v6532_v63, 16  ;;  %v1462_v2 = vrot.slane %v1460_v54, 5  ;;  %v4563_v53 = vld [vmem:[#allocation11 + $0x258] sm:$0xf0]  ;;  %v5140_v59 = vld [vmem:[#allocation11 + $0x2d4] sm:$0xf]  ;;  %5415 = vpow2.f32 %v4647_v57  ;;  %v1724_v6 = vunpack.c.h.b16 %v6528_v58 }
 0x434   : > { %v1439_v4 = vrot.slane %v1437_v19, 4  ;;  %v1442_v5 = vrot.slane %v1440_v3, 5  ;;  %v1457_v21 = vor.u32 %v1456_v34, %v1453_v60  ;;  %v4627_v61 = vld [vmem:[#allocation11 + $0x2d8] sm:$0xf0]  ;;  %v4648_v54 = vmul.f32 -1.442695, %v6552_v0 }
 0x435   : > { %v1448_v8 = vrot.slane %v1446_v10, 5  ;;  %v4562_v19 = vor.u32 %v5125_v43, %v4561_v41  ;;  %v4626_v3 = vor.u32 %v5141_v16, %v4625_v46  ;;  %v4553_v60 = vld [vmem:[#allocation11 + $0x240] sm:$0xf]  ;;  %v5123_v34 = vld [vmem:[#allocation11 + $0x244] sm:$0xf0]  ;;  %s4042_s13 = scalar_lea.sflag [#allocation5], %s6079_s14 }
 0x436   : > { %v1443_v13 = vor.u32 %v1442_v5, %v1439_v4  ;;  %v1458_v7 = vrot.slane %v1457_v21, 4  ;;  %v4566_v4 = vor.u32 %v5124_v38, %v4563_v53  ;;  %v4630_v5 = vor.u32 %v5140_v59, %v4627_v61  ;;  %v4617_v10 = vld [vmem:[#allocation11 + $0x2c0] sm:$0xf]  ;;  %v5139_v21 = vld [vmem:[#allocation11 + $0x2c4] sm:$0xf0] }
 0x437   : > { %5417 = vpow2.f32 %v4648_v54  ;;  %v4618_v47 = vor.u32 %v5139_v21, %v4617_v10  ;;  %v5118_v41 = vld [vmem:[#allocation11 + $0x224] sm:$0xf]  ;;  %v4539_v43 = vld [vmem:[#allocation11 + $0x228] sm:$0xf0]  ;;  %v5117_v38 = vld [vmem:[#allocation11 + $0x214] sm:$0xf0] }
 0x438   : > { %v1444_v22 = vrot.slane %v1443_v13, 4  ;;  %v1463_v23 = vsel %vm6539_vm5, %v1458_v7, %v1462_v2  ;;  %v5122_v13 = vld [vmem:[#allocation11 + $0x244] sm:$0xf]  ;;  %v4555_v7 = vld [vmem:[#allocation11 + $0x248] sm:$0xf0]  ;;  %v4517_v21 = vrot.slane %v6528_v58, 9 }
 0x439   : > { %v1499_v24 = vunpack.c.l.b16 %v1463_v23  ;;  %v1500_v62 = vunpack.c.h.b16 %v1463_v23  ;;  %v5138_v2 = vld [vmem:[#allocation11 + $0x2c4] sm:$0xf]  ;;  %v1723_v23 = vunpack.c.l.b16 %v6528_v58  ;;  %v4593_v57 = vld [vmem:[#allocation11 + $0x290] sm:$0xf]  ;;  %v5133_v53 = vld [vmem:[#allocation11 + $0x294] sm:$0xf0] }
 0x43a   : > { %v1449_v12 = vsel %vm6539_vm5, %v1444_v22, %v1448_v8  ;;  %v4619_v22 = vld [vmem:[#allocation11 + $0x2c8] sm:$0xf0]  ;;  %v1958_v8 = vrot.slane %v6526_v55, 5  ;;  %v5116_v59 = vld [vmem:[#allocation11 + $0x214] sm:$0xf] }
 0x43b   : > { %v1497_v56 = vunpack.c.l.b16 %v1449_v12  ;;  %v1498_v28 = vunpack.c.h.b16 %v1449_v12  ;;  %v1726_v12 = vunpack.c.h.b16 %v6524_v50  ;;  %v4622_v29 = vor.u32 %v5138_v2, %v4619_v22  ;;  %v4531_v61 = vld [vmem:[#allocation11 + $0x218] sm:$0xf0]  ;;  %v5132_v54 = vld [vmem:[#allocation11 + $0x294] sm:$0xf]  ;;  %v5131_v10 = vld [vmem:[#allocation11 + $0x284] sm:$0xf0] }
 0x43d   : > { %v1501_v11 = vpack.c.b16 %v1499_v24, %v1497_v56  ;;  %v1502_v18 = vpack.c.b16 %v1500_v62, %v1498_v28  ;;  %v1725_v24 = vunpack.c.l.b16 %v6524_v50  ;;  %v4554_v62 = vor.u32 %v5123_v34, %v4553_v60  ;;  %v5416_v56 = vpop.eup %5415  ;;  %v6570_v60 = vld [vmem:[#allocation11 + $0x204] sm:$0xf0] }
 0x43e   : > { %v4558_v28 = vor.u32 %v5122_v13, %v4555_v7  ;;  %v6562_v35 = vadd.f32 1.0, %v5416_v56  ;;  %v5418_v36 = vpop.eup %5417  ;;  %v1728_v31 = vpack.c.b16 %v1726_v12, %v1724_v6  ;;  %v4538_v34 = vor.u32 %v5119_v15, %v4537_v37  ;;  %v5114_v6 = vld [vmem:[#allocation11 + $0x204] sm:$0xf] }
 0x43f   : > { %1673 = vmatmul.bf16.vlgmr.msra.gmra.mxu2 %v1501_v11  ;;  %1687 = vmatmul.bf16.vlgmr.msra.gmra.mxu3 %v1502_v18  ;;  %v6564_v46 = vadd.f32 1.0, %v5418_v36  ;;  %v4518_v13 = vrot.slane %v6524_v50, 9  ;;  %v4542_v7 = vor.u32 %v5118_v41, %v4539_v43 }
 0x440   : > { %1701 = vmatmul.bf16.vlgmr.msra.gmra.mxu0 %v1501_v11  ;;  %1715 = vmatmul.bf16.vlgmr.msra.gmra.mxu1 %v1502_v18  ;;  %v4547_v11 = vld [vmem:[#allocation11 + $0x238] sm:$0xf0]  ;;  %v1954_v18 = vrot.slane %v6532_v63, 5  ;;  %5419 = vrcp.f32 %v6562_v35  ;;  %vm2236_vm10 = vweird.f32 %v6562_v35 }
 0x441   : > { %2161 = vmatpush.bf16.msra.mxu2 %v4578_v1  ;;  %2175 = vmatpush.bf16.msra.mxu3 %v4642_v20  ;;  %v5136_v1 = vld [vmem:[#allocation11 + $0x2b4] sm:$0xf]  ;;  %v4611_v20 = vld [vmem:[#allocation11 + $0x2b8] sm:$0xf0]  ;;  %v4550_v16 = vor.u32 %v5120_v33, %v4547_v11  ;;  %5421 = vrcp.f32 %v6564_v46  ;;  %v1959_v32 = vsel %vm6576_vm9, %v4518_v13, %v1958_v8  ;;  %v2242_v33 = vand.u32 2147483648, %v6562_v35 }
 0x442   : > { %2189 = vmatpush.bf16.msra.mxu0 %v4582_v42  ;;  %2203 = vmatpush.bf16.msra.mxu1 %v4646_v51  ;;  %v1727_v42 = vpack.c.b16 %v1725_v24, %v1723_v23  ;;  %v4546_v51 = vor.u32 %v5121_v26, %v4545_v25  ;;  %v4523_v25 = vld [vmem:[#allocation11 + $0x208] sm:$0xf0]  ;;  %v5130_v26 = vld [vmem:[#allocation11 + $0x284] sm:$0xf]  ;;  %vm2251_vm12 = vweird.f32 %v6564_v46  ;;  %v2257_v55 = vand.u32 2147483648, %v6564_v46 }
 0x443   : > { %v4590_v36 = vor.u32 %v5130_v26, %v4587_v27  ;;  %v1995_v37 = vunpack.c.l.b16 %v1959_v32 }
 0x445   : > { %2162 = vmatpush.bf16.msra.mxu2 %v4570_v44  ;;  %2176 = vmatpush.bf16.msra.mxu3 %v4634_v45  ;;  %v5134_v44 = vld [vmem:[#allocation11 + $0x2a4] sm:$0xf]  ;;  %v4603_v45 = vld [vmem:[#allocation11 + $0x2a8] sm:$0xf0] }
 0x446   : > { %2190 = vmatpush.bf16.msra.mxu0 %v4574_v30  ;;  %2204 = vmatpush.bf16.msra.mxu1 %v4638_v49  ;;  %v4614_v30 = vor.u32 %v5136_v1, %v4611_v20  ;;  %v4529_v49 = vld [vmem:[#allocation11 + $0x210] sm:$0xf]  ;;  %v4606_v2 = vor.u32 %v5134_v44, %v4603_v45  ;;  %v5420_v23 = vpop.eup %5419  ;;  %v2240_v1 = vand.u32 2147483647, %v6562_v35  ;;  %v4526_v20 = vor.u32 %v5114_v6, %v4523_v25 }
 0x447   : > { %v4530_v24 = vor.u32 %v5117_v38, %v4529_v49  ;;  %v2232_v56 = vmul.f32 %v5420_v23, %v6562_v35  ;;  %vm2237_vm11 = vweird.f32 %v5420_v23  ;;  %v2258_v44 = vor.u32 1.1754944e-38, %v2257_v55  ;;  %v2266_v35 = vld [vmem:[#allocation14 + $0x18] sm:$0xff] }
 0x448   : > { %vm6601_vm14 = vmor %vm2236_vm10, %vm2237_vm11  ;;  %vm2241_vm8 = vcmp.eq.f32.partialorder %v2240_v1, 8.507059e+37 }
 0x449   : > { %2163 = vmatpush.bf16.msra.mxu2 %v4562_v19  ;;  %2177 = vmatpush.bf16.msra.mxu3 %v4626_v3  ;;  %v4595_v19 = vld [vmem:[#allocation11 + $0x298] sm:$0xf0]  ;;  %v6568_v3 = vld [vmem:[#allocation11 + $0x200] sm:$0xf]  ;;  %v2233_v11 = vsub.f32 1.0, %v2232_v56 }
 0x44a   : > { %2191 = vmatpush.bf16.msra.mxu0 %v4566_v4  ;;  %2205 = vmatpush.bf16.msra.mxu1 %v4630_v5  ;;  %v4602_v4 = vor.u32 %v5135_v9, %v4601_v39  ;;  %v4585_v5 = vld [vmem:[#allocation11 + $0x280] sm:$0xf]  ;;  %v4598_v12 = vor.u32 %v5132_v54, %v4595_v19  ;;  %v4522_v58 = vor.u32 %v6570_v60, %v6568_v3  ;;  %v2243_v9 = vor.u32 1.1754944e-38, %v2242_v33  ;;  %v2264_v54 = vld [vmem:[#allocation14 + $0x8] sm:$0xff] }
 0x44b   : > { %v4586_v50 = vor.u32 %v5131_v10, %v4585_v5  ;;  %v2263_v19 = vld [vmem:[#allocation14] sm:$0xff] }
 0x44c   : > { %v5394_v56 = vld [vmem:[#allocation15] ss:$0 sm:$0xff] }
 0x44d   : > { %2164 = vmatpush.bf16.msra.mxu2 %v4554_v62  ;;  %2178 = vmatpush.bf16.msra.mxu3 %v4618_v47  ;;  %v4594_v62 = vor.u32 %v5133_v53, %v4593_v57  ;;  %v4534_v47 = vor.u32 %v5116_v59, %v4531_v61  ;;  %v2265_v53 = vld [vmem:[#allocation14 + $0x10] sm:$0xff] }
 0x44e   : > { %2192 = vmatpush.bf16.msra.mxu0 %v4558_v28  ;;  %2206 = vmatpush.bf16.msra.mxu1 %v4622_v29  ;;  %v5422_v28 = vpop.eup %5421  ;;  %v1955_v29 = vsel %vm6576_vm9, %v4517_v21, %v1954_v18  ;;  %v2234_v18 = vmul.f32 %v5420_v23, %v2233_v11 }
 0x44f   : > { %1899 = vmatmul.bf16.vlgmr.msrb.gmra.mxu2 %v1727_v42  ;;  %1913 = vmatmul.bf16.vlgmr.msrb.gmra.mxu3 %v1728_v31  ;;  %v2247_v63 = vmul.f32 %v5422_v28, %v6564_v46  ;;  %vm2252_vm13 = vweird.f32 %v5422_v28  ;;  %v1994_v15 = vunpack.c.h.b16 %v1955_v29 }
 0x450   : > { %1927 = vmatmul.bf16.vlgmr.msrb.gmra.mxu0 %v1727_v42  ;;  %1941 = vmatmul.bf16.vlgmr.msrb.gmra.mxu1 %v1728_v31  ;;  %v2255_v42 = vand.u32 2147483647, %v6564_v46  ;;  %v1996_v31 = vunpack.c.h.b16 %v1959_v32  ;;  %vm6608_vm15 = vmor %vm2251_vm12, %vm2252_vm13 }
 0x451   : > { %2165 = vmatpush.bf16.msra.mxu2 %v4546_v51  ;;  %2179 = vmatpush.bf16.msra.mxu3 %v4610_v40  ;;  %v2248_v8 = vsub.f32 1.0, %v2247_v63  ;;  %v1993_v51 = vunpack.c.l.b16 %v1955_v29  ;;  %v2235_v40 = vadd.f32 %v5420_v23, %v2234_v18 }
 0x452   : > { %2193 = vmatpush.bf16.msra.mxu0 %v4550_v16  ;;  %2207 = vmatpush.bf16.msra.mxu1 %v4614_v30  ;;  %vm2256_vm6 = vcmp.eq.f32.partialorder %v2255_v42, 8.507059e+37  ;;  %v1998_v38 = vpack.c.b16 %v1996_v31, %v1994_v15 }
 0x453   : > { %v2249_v41 = vmul.f32 %v5422_v28, %v2248_v8  ;;  %v2239_v45 = vsel %vm6601_vm14, %v5420_v23, %v2235_v40  ;;  %v1997_v30 = vpack.c.b16 %v1995_v37, %v1993_v51 }
 0x454   : > { %v2244_v49 = vsel %vm2241_vm8, %v2243_v9, %v2239_v45 }
 0x455   : > { %2166 = vmatpush.bf16.msra.mxu2 %v4538_v34  ;;  %2180 = vmatpush.bf16.msra.mxu3 %v4602_v4  ;;  %v2250_v16 = vadd.f32 %v5422_v28, %v2249_v41  ;;  %v2261_v57 = vmul.f32 %v2244_v49, %v6550_v48 }
 0x456   : > { %2194 = vmatpush.bf16.msra.mxu0 %v4542_v7  ;;  %2208 = vmatpush.bf16.msra.mxu1 %v4606_v2 }
 0x457   : > { %v2254_v46 = vsel %vm6608_vm15, %v5422_v28, %v2250_v16  ;;  %2273 = vst [vmem:[#allocation1] ss:$9 sm:$0xff] %v2261_v57  ;;  %v5395_v28 = vld [vmem:[#allocation12] ss:$0 sm:$0xff] }
 0x458   : > { %v2259_v59 = vsel %vm2256_vm6, %v2258_v44, %v2254_v46 }
 0x459   : > { %2167 = vmatpush.bf16.msra.mxu2 %v4530_v24  ;;  %2181 = vmatpush.bf16.msra.mxu3 %v4594_v62  ;;  %v2262_v61 = vmul.f32 %v2259_v59, %v6552_v0 }
 0x45a   : > { %2195 = vmatpush.bf16.msra.mxu0 %v4534_v47  ;;  %2209 = vmatpush.bf16.msra.mxu1 %v4598_v12 }
 0x45b   : > { %2275 = vst [vmem:[#allocation1 + $0x1] ss:$9 sm:$0xff] %v2262_v61 }
 0x45d   : > { %2168 = vmatpush.bf16.msra.mxu2 %v4522_v58  ;;  %2182 = vmatpush.bf16.msra.mxu3 %v4586_v50 }
 0x45e   : > { %2196 = vmatpush.bf16.msra.mxu0 %v4526_v20  ;;  %2210 = vmatpush.bf16.msra.mxu1 %v4590_v36 }
 0x460   : > { %2169 = vmatmul.bf16.vlgmr.msra.gmra.mxu2 %v1997_v30  ;;  %2183 = vmatmul.bf16.vlgmr.msra.gmra.mxu3 %v1998_v38 }
 0x461   : > { %2291 = vmatpush.msrb.mxu2 %v2266_v35  ;;  %2197 = vmatmul.bf16.vlgmr.msra.gmra.mxu0 %v1997_v30 }
 0x462   : > { %2211 = vmatmul.bf16.vlgmr.msra.gmra.mxu1 %v1998_v38  ;;  %v2276_v3 = vld [vmem:[#allocation1] sm:$0xff] }
 0x463   : > { %2292 = vmatpush.msrb.mxu2 %v2265_v53 }
 0x465   : > { %2293 = vmatpush.msrb.mxu2 %v2264_v54 }
 0x467   : > { %2294 = vmatpush.msrb.mxu2 %v2263_v19 }
 0x470   : > { %4649 = vmatmul.msk.f32.vlgmr.msrb.gmra.mxu2 %vm761_vm2, %v2276_v3 }
 0x4c2   : > { %v1674_v48 = vpop.f32.mrf.mxu2  ;;  %v1688_v60 = vpop.f32.mrf.mxu3 }
 0x4c3   : > { %v1689_v5 = vadd.f32 %v1688_v60, %v1674_v48 }
 0x4ca   : > { %v1676_v34 = vpop.f32.mrf.mxu2  ;;  %v1690_v4 = vpop.f32.mrf.mxu3 }
 0x4cb   : > { %v1691_v13 = vadd.f32 %v1690_v4, %v1676_v34 }
 0x4d2   : > { %v1900_v10 = vpop.f32.mrf.mxu2  ;;  %v1914_v21 = vpop.f32.mrf.mxu3 }
 0x4d3   : > { %v1901_v0 = vadd.f32 %v1900_v10, %v1689_v5 }
 0x4d5   : > { %v1915_v47 = vadd.f32 %v1914_v21, %v1901_v0 }
 0x4da   : > { %v1902_v7 = vpop.f32.mrf.mxu2  ;;  %v1916_v2 = vpop.f32.mrf.mxu3 }
 0x4db   : > { %v1903_v23 = vadd.f32 %v1902_v7, %v1691_v13 }
 0x4dd   : > { %v1917_v25 = vadd.f32 %v1916_v2, %v1903_v23  ;;  %v1702_v2 = vpop.f32.mrf.mxu0  ;;  %v1716_v23 = vpop.f32.mrf.mxu1 }
 0x4e3   : > { %v2170_v24 = vpop.f32.mrf.mxu2  ;;  %v2184_v62 = vpop.f32.mrf.mxu3 }
 0x4e4   : > { %v2185_v6 = vadd.f32 %v2184_v62, %v2170_v24 }
 0x4e5   : > { %v1704_v24 = vpop.f32.mrf.mxu0  ;;  %v1718_v62 = vpop.f32.mrf.mxu1 }
 0x4e6   : > { %v6619_v12 = vadd.f32 %v2185_v6, %v1915_v47 }
 0x4eb   : > { %v2172_v58 = vpop.f32.mrf.mxu2  ;;  %v2186_v50 = vpop.f32.mrf.mxu3 }
 0x4ec   : > { %v2187_v26 = vadd.f32 %v2186_v50, %v2172_v58 }
 0x4ed   : > { %v1928_v47 = vpop.f32.mrf.mxu0  ;;  %v1942_v6 = vpop.f32.mrf.mxu1 }
 0x4ee   : > { %v6621_v27 = vadd.f32 %v2187_v26, %v1917_v25 }
 0x4f3   : > { %v2296_v29 = vpop.f32.mrf.mxu2 }
 0x4f4   : > { %v2297_v32 = vadd.f32 %v5394_v56, %v2296_v29 }
 0x4f5   : > { %v1930_v50 = vpop.f32.mrf.mxu0  ;;  %v1944_v25 = vpop.f32.mrf.mxu1 }
 0x4f6   : > { %v2303_v33 = vadd.f32 %v5395_v28, %v2297_v32 }
 0x4f8   : > { %v2305_v11 = vrot.slane %v2303_v33, 1  ;;  %v2306_v1 = vperm.slane %v2303_v33, 0 }
 0x4fa   : > { %v2307_v63 = vperm.slane %v2305_v11, 0  ;;  %v2310_v20 = vrot.slane %v2306_v1, 4  ;;  %v2315_v36 = vperm.slane %v2306_v1, %v6155_v52 }
 0x4fc   : > { %v2311_v55 = vsel %vm721_vm1, 0.0, %v2310_v20  ;;  %v2348_v18 = vrot.slane %v2307_v63, 4  ;;  %v2353_v8 = vperm.slane %v2307_v63, %v6155_v52  ;;  %v6627_v42 = vperm.slane %v2315_v36, %v6170_v14 }
 0x4fd   : > { %v2320_v51 = vrot.slane %v2315_v36, 4  ;;  %v2319_v9 = vperm.slane %v2311_v55, %v6155_v52  ;;  %v2198_v29 = vpop.f32.mrf.mxu0  ;;  %v2212_v33 = vpop.f32.mrf.mxu1 }
 0x4fe   : > { %v2340_v37 = vrot.slane %v6627_v42, 4  ;;  %v2363_v15 = vperm.slane %v2353_v8, %v6170_v14  ;;  %v2349_v39 = vsel %vm721_vm1, 0.0, %v2348_v18  ;;  %v2358_v35 = vrot.slane %v2353_v8, 4 }
 0x4ff   : > { %v2321_v31 = vsel %vm721_vm1, 0.0, %v2320_v51  ;;  %v2357_v40 = vperm.slane %v2349_v39, %v6155_v52  ;;  %v6644_v49 = vperm.slane %v2319_v9, %v6170_v14  ;;  %v2330_v3 = vrot.slane %v2319_v9, 4 }
 0x500   : > { %v2341_v41 = vsel %vm721_vm1, 0.0, %v2340_v37  ;;  %v2329_v43 = vperm.slane %v2321_v31, %v6170_v14  ;;  %v2378_v44 = vrot.slane %v2363_v15, 4  ;;  %v2359_v46 = vsel %vm721_vm1, 0.0, %v2358_v35 }
 0x501   : > { %2388 = vrot.lane.b32.xlu1 %v2341_v41, %s5847_s16  ;;  %v6639_v45 = vperm.slane %v2357_v40, %v6170_v14  ;;  %v2368_v16 = vrot.slane %v2357_v40, 4  ;;  %v2344_v53 = vrot.slane %v6644_v49, 4  ;;  %v2367_v59 = vperm.slane %v2359_v46, %v6170_v14 }
 0x502   : > { %2396 = vrot.lane.b32.xlu2 %v2329_v43, %s5848_s29  ;;  %v2379_v30 = vsel %vm721_vm1, 0.0, %v2378_v44  ;;  %v2331_v34 = vsel %vm721_vm1, 0.0, %v2330_v3  ;;  %v2342_v21 = vrot.slane %v2329_v43, 4  ;;  %v1719_v37 = vadd.f32 %v1718_v62, %v1704_v24 }
 0x503   : > { %2390 = vrot.lane.b32.xlu0 %v2379_v30, %s5847_s16  ;;  %v2382_v38 = vrot.slane %v6639_v45, 4  ;;  %v2369_v57 = vsel %vm721_vm1, 0.0, %v2368_v16  ;;  %v2345_v19 = vsel %vm721_vm1, 0.0, %v2344_v53  ;;  %v2380_v60 = vrot.slane %v2367_v59, 4 }
 0x504   : > { %v2377_v54 = vperm.slane %v2369_v57, %v6170_v14  ;;  %v2339_v10 = vperm.slane %v2331_v34, %v6170_v14  ;;  %v2343_v13 = vsel %vm721_vm1, 0.0, %v2342_v21  ;;  %v1931_v31 = vadd.f32 %v1930_v50, %v1719_v37 }
 0x505   : > { %v2383_v61 = vsel %vm721_vm1, 0.0, %v2382_v38  ;;  %v2381_v5 = vsel %vm721_vm1, 0.0, %v2380_v60  ;;  %v2200_v39 = vpop.f32.mrf.mxu0  ;;  %v2214_v9 = vpop.f32.mrf.mxu1  ;;  %v1717_v57 = vadd.f32 %v1716_v23, %v1702_v2 }
 0x506   : > { %v2384_v48 = vrot.slane %v2377_v54, 4  ;;  %v2346_v0 = vrot.slane %v2339_v10, 4  ;;  %v2215_v43 = vadd.f32 %v2214_v9, %v2200_v39  ;;  %v1945_v16 = vadd.f32 %v1944_v25, %v1931_v31 }
 0x508   : > { %v2385_v4 = vsel %vm721_vm1, 0.0, %v2384_v48  ;;  %v2347_v7 = vsel %vm721_vm1, 0.0, %v2346_v0  ;;  %v2220_v53 = vadd.f32 %v2215_v43, %v1945_v16  ;;  %v2213_v48 = vadd.f32 %v2212_v33, %v2198_v29  ;;  %v2587_v43 = vld [vmem:[#allocation9 + $0x8] sm:$0xff] }
 0x509   : > { %2414 = vrot.lane.b32.xlu1 %v2383_v61, %s5847_s16 }
 0x50a   : > { %2398 = vrot.lane.b32.xlu2 %v2367_v59, %s5848_s29 }
 0x50b   : > { %2412 = vrot.lane.b32.xlu0 %v2345_v19, %s5847_s16 }
 0x511   : > { %2430 = vrot.lane.b32.xlu1 %v2385_v4, %s5846_s2 }
 0x512   : > { %2406 = vrot.lane.b32.xlu2 %v2381_v5, %s5846_s2 }
 0x513   : > { %2422 = vrot.lane.b32.xlu0 %v2377_v54, %s5848_s29  ;;  %v1929_v54 = vadd.f32 %v1928_v47, %v1717_v57 }
 0x519   : > { %2404 = vrot.lane.b32.xlu1 %v2343_v13, %s5846_s2 }
 0x51a   : > { %2428 = vrot.lane.b32.xlu2 %v2347_v7, %s5846_s2 }
 0x51b   : > { %2420 = vrot.lane.b32.xlu0 %v2339_v10, %s5848_s29 }
 0x55c   : > { %v2397_v58 = vpop.permute.xlu2 %2396 }
 0x564   : > { %v2399_v26 = vpop.permute.xlu2 %2398 }
 0x56c   : > { %v2407_v11 = vpop.permute.xlu2 %2406 }
 0x573   : > { %v2389_v56 = vpop.permute.xlu1 %2388 }
 0x574   : > { %v2434_v59 = vsel %vm761_vm2, %v6627_v42, %v2389_v56  ;;  %v1943_v42 = vadd.f32 %v1942_v6, %v1929_v54  ;;  %v2429_v21 = vpop.permute.xlu2 %2428 }
 0x575   : > { %v2391_v28 = vpop.permute.xlu0 %2390 }
 0x576   : > { %v2435_v32 = vsel %vm761_vm2, %v2363_v15, %v2391_v28  ;;  %v2218_v23 = vadd.f32 %v2213_v48, %v1943_v42 }
 0x577   : > { %v2437_v1 = vsel %vm937_vm4, %v2435_v32, %v2399_v26 }
 0x578   : > { %v2439_v63 = vsel %vm940_vm3, %v2437_v1, %v2407_v11 }
 0x579   : > { %v2448_v20 = vperm.slane %v2439_v63, 0 }
 0x57b   : > { %v6674_v36 = vadd.f32 %v2448_v20, %v6621_v27  ;;  %v2415_v55 = vpop.permute.xlu1 %2414 }
 0x57c   : > { %v2441_v44 = vsel %vm761_vm2, %v6639_v45, %v2415_v55  ;;  %v2436_v45 = vsel %vm937_vm4, %v2434_v59, %v2397_v58 }
 0x57d   : > { %v2468_v18 = vrot.slane %v6674_v36, 4  ;;  %v2413_v8 = vpop.permute.xlu0 %2412 }
 0x57e   : > { %v2440_v4 = vsel %vm761_vm2, %v6644_v49, %v2413_v8 }
 0x57f   : > { %v2469_v51 = vadd.f32 %v2468_v18, %v6674_v36 }
 0x581   : > { %v2470_v15 = vrot.slane %v2469_v51, 2 }
 0x583   : > { %v2431_v40 = vpop.permute.xlu1 %2430  ;;  %v2471_v41 = vadd.f32 %v2470_v15, %v2469_v51 }
 0x585   : > { %v2423_v35 = vpop.permute.xlu0 %2422  ;;  %v2472_v27 = vrot.slane %v2471_v41, 1 }
 0x586   : > { %v2443_v30 = vsel %vm937_vm4, %v2441_v44, %v2423_v35  ;;  %v2586_v35 = vld [vmem:[#allocation9] sm:$0xff] }
 0x587   : > { %v2445_v38 = vsel %vm940_vm3, %v2443_v30, %v2431_v40  ;;  %v2473_v46 = vadd.f32 %v2472_v27, %v2471_v41  ;;  %v2589_v40 = vld [vmem:[#allocation9 + $0x18] sm:$0xff]  ;;  %v2588_v41 = vld [vmem:[#allocation9 + $0x10] sm:$0xff] }
 0x588   : > { %v2449_v61 = vperm.slane %v2445_v38, 0  ;;  %2607 = vmatpush.msrb.mxu3 %v2589_v40  ;;  %2916 = vmatpush.msrb.mxu0 %v2589_v40 }
 0x589   : > { %2492 = vrot.lane.b32.xlu0 %v2473_v46, %s5847_s16  ;;  %v2508_v1 = vrot.slane %v2473_v46, 7 }
 0x58a   : > { %v6685_v19 = vadd.f32 %v2449_v61, %v2220_v53  ;;  %2608 = vmatpush.msrb.mxu3 %v2588_v41  ;;  %2917 = vmatpush.msrb.mxu0 %v2588_v41 }
 0x58b   : > { %v2405_v3 = vpop.permute.xlu1 %2404 }
 0x58c   : > { %v2474_v60 = vrot.slane %v6685_v19, 4  ;;  %v2438_v34 = vsel %vm940_vm3, %v2436_v45, %v2405_v3  ;;  %2609 = vmatpush.msrb.mxu3 %v2587_v43  ;;  %2918 = vmatpush.msrb.mxu0 %v2587_v43 }
 0x58d   : > { %v2446_v5 = vperm.slane %v2438_v34, 0  ;;  %v2421_v10 = vpop.permute.xlu0 %2420 }
 0x58e   : > { %v2475_v0 = vadd.f32 %v2474_v60, %v6685_v19  ;;  %v2442_v13 = vsel %vm937_vm4, %v2440_v4, %v2421_v10  ;;  %2610 = vmatpush.msrb.mxu3 %v2586_v35  ;;  %2919 = vmatpush.msrb.mxu0 %v2586_v35 }
 0x58f   : > { %v6695_v7 = vadd.f32 %v2446_v5, %v6619_v12  ;;  %v2444_v2 = vsel %vm940_vm3, %v2442_v13, %v2429_v21 }
 0x590   : > { %v2447_v24 = vperm.slane %v2444_v2, 0  ;;  %v2476_v62 = vrot.slane %v2475_v0, 2 }
 0x591   : > { %v2456_v47 = vrot.slane %v6695_v7, 4  ;;  %2488 = vrot.lane.b32.xlu0 %v2473_v46, %s5848_s29 }
 0x592   : > { %v6700_v49 = vadd.f32 %v2447_v24, %v2218_v23  ;;  %v2477_v6 = vadd.f32 %v2476_v62, %v2475_v0 }
 0x593   : > { %v2457_v58 = vadd.f32 %v2456_v47, %v6695_v7 }
 0x594   : > { %v2462_v50 = vrot.slane %v6700_v49, 4  ;;  %v2478_v25 = vrot.slane %v2477_v6, 1 }
 0x595   : > { %v2458_v26 = vrot.slane %v2457_v58, 2 }
 0x596   : > { %v2463_v12 = vadd.f32 %v2462_v50, %v6700_v49  ;;  %v2479_v56 = vadd.f32 %v2478_v25, %v2477_v6 }
 0x597   : > { %v2459_v28 = vadd.f32 %v2458_v26, %v2457_v58 }
 0x598   : > { %v2464_v29 = vrot.slane %v2463_v12, 2  ;;  %v2516_v18 = vrot.slane %v2479_v56, 7 }
 0x599   : > { %2502 = vrot.lane.b32.xlu0 %v2479_v56, %s5848_s29  ;;  %v2460_v32 = vrot.slane %v2459_v28, 1 }
 0x59a   : > { %v2465_v33 = vadd.f32 %v2464_v29, %v2463_v12 }
 0x59b   : > { %v2461_v11 = vadd.f32 %v2460_v32, %v2459_v28 }
 0x59c   : > { %v2466_v63 = vrot.slane %v2465_v33, 1 }
 0x59d   : > { %2482 = vrot.lane.b32.xlu2 %v2461_v11, %s5846_s2  ;;  %2490 = vrot.lane.b32.xlu1 %v2461_v11, %s5847_s16  ;;  %v2509_v20 = vsel %vm696_vm0, %v2508_v1, %v2461_v11 }
 0x59e   : > { %v2467_v55 = vadd.f32 %v2466_v63, %v2465_v33 }
 0x5a0   : > { %v2517_v8 = vsel %vm696_vm0, %v2516_v18, %v2467_v55 }
 0x5a1   : > { %2486 = vrot.lane.b32.xlu0 %v2461_v11, %s5848_s29 }
 0x5a5   : > { %2504 = vrot.lane.b32.xlu1 %v2467_v55, %s5847_s16  ;;  %2484 = vrot.lane.b32.xlu2 %v2473_v46, %s5846_s2 }
 0x5ad   : > { %2506 = vrot.lane.b32.xlu1 %v2479_v56, %s5847_s16  ;;  %2498 = vrot.lane.b32.xlu2 %v2479_v56, %s5846_s2 }
 0x5b5   : > { %2496 = vrot.lane.b32.xlu1 %v2467_v55, %s5846_s2  ;;  %2500 = vrot.lane.b32.xlu2 %v2467_v55, %s5848_s29 }
 0x5f7   : > { %v2483_v37 = vpop.permute.xlu2 %2482 }
 0x5fb   : > { %v2493_v51 = vpop.permute.xlu0 %2492 }
 0x5fc   : > { %v2514_v27 = vrot.slane %v2493_v51, 7 }
 0x5ff   : > { %v2485_v9 = vpop.permute.xlu2 %2484 }
 0x600   : > { %v2510_v57 = vrot.slane %v2485_v9, 7 }
 0x602   : > { %v2511_v54 = vsel %vm696_vm0, %v2510_v57, %v2483_v37 }
 0x603   : > { %v2489_v39 = vpop.permute.xlu0 %2488 }
 0x604   : > { %v2512_v38 = vrot.slane %v2489_v39, 7 }
 0x607   : > { %v2499_v44 = vpop.permute.xlu2 %2498 }
 0x608   : > { %v2518_v13 = vrot.slane %v2499_v44, 7 }
 0x60b   : > { %v2503_v15 = vpop.permute.xlu0 %2502 }
 0x60c   : > { %v2520_v60 = vrot.slane %v2503_v15, 7 }
 0x60f   : > { %v2491_v31 = vpop.permute.xlu1 %2490  ;;  %v2501_v3 = vpop.permute.xlu2 %2500 }
 0x610   : > { %v2515_v46 = vsel %vm696_vm0, %v2514_v27, %v2491_v31  ;;  %v2521_v10 = vsel %vm696_vm0, %v2520_v60, %v2501_v3 }
 0x611   : > { %v2538_v59 = vrot.slane %v2515_v46, 4  ;;  %v2544_v0 = vrot.slane %v2521_v10, 4 }
 0x613   : > { %v2487_v16 = vpop.permute.xlu0 %2486  ;;  %v2539_v45 = vsel %vm721_vm1, %v2538_v59, %v2511_v54  ;;  %v2545_v6 = vsel %vm721_vm1, %v2544_v0, %v2517_v8 }
 0x614   : > { %v2513_v53 = vsel %vm696_vm0, %v2512_v38, %v2487_v16  ;;  %v2543_v5 = vperm.slane %v2539_v45, %v6155_v52  ;;  %v2549_v26 = vperm.slane %v2545_v6, %v6155_v52 }
 0x615   : > { %v2532_v61 = vrot.slane %v2513_v53, 4 }
 0x616   : > { %v2556_v2 = vrot.slane %v2543_v5, 4 }
 0x617   : > { %v2505_v30 = vpop.permute.xlu1 %2504  ;;  %v2533_v4 = vsel %vm721_vm1, %v2532_v61, %v2509_v20 }
 0x618   : > { %v2537_v42 = vperm.slane %v2533_v4, %v6155_v52 }
 0x61a   : > { %v2557_v62 = vsel %vm721_vm1, %v2556_v2, %v2537_v42 }
 0x61b   : > { %v2561_v25 = vperm.slane %v2557_v62, %v6170_v14 }
 0x61d   : > { %v2570_v28 = vrot.slane %v2561_v25, 4 }
 0x61f   : > { %v2507_v48 = vpop.permute.xlu1 %2506 }
 0x620   : > { %v2522_v34 = vrot.slane %v2507_v48, 7 }
 0x622   : > { %v2523_v21 = vsel %vm696_vm0, %v2522_v34, %v2505_v30 }
 0x623   : > { %v2550_v23 = vrot.slane %v2523_v21, 4 }
 0x627   : > { %v2497_v24 = vpop.permute.xlu1 %2496 }
 0x628   : > { %v2519_v47 = vsel %vm696_vm0, %v2518_v13, %v2497_v24 }
 0x629   : > { %v2551_v58 = vsel %vm721_vm1, %v2550_v23, %v2519_v47 }
 0x62a   : > { %v2555_v50 = vperm.slane %v2551_v58, %v6155_v52 }
 0x62c   : > { %v2562_v12 = vrot.slane %v2555_v50, 4 }
 0x62e   : > { %v2563_v56 = vsel %vm721_vm1, %v2562_v12, %v2549_v26 }
 0x62f   : > { %v2567_v29 = vperm.slane %v2563_v56, %v6170_v14 }
 0x631   : > { %v2568_v32 = vrot.slane %v2567_v29, 4  ;;  %v2571_v33 = vsel %vm721_vm1, %v2567_v29, %v2570_v28 }
 0x632   : > { %v2579_v11 = vsel %vm761_vm2, %v2571_v33, 0.0 }
 0x633   : > { %v2569_v1 = vsel %vm721_vm1, %v2568_v32, %v2561_v25  ;;  %v2580_v63 = vrot.slane %v2579_v11, 4 }
 0x634   : > { %v2572_v20 = vsel %vm761_vm2, %v2569_v1, 0.0 }
 0x635   : > { %v2573_v55 = vrot.slane %v2572_v20, 4  ;;  %v2581_v18 = vadd.f32 %v2580_v63, %v2579_v11 }
 0x637   : > { %v2574_v8 = vadd.f32 %v2573_v55, %v2572_v20  ;;  %v2582_v51 = vrot.slane %v2581_v18, 2 }
 0x639   : > { %v2575_v37 = vrot.slane %v2574_v8, 2  ;;  %v2583_v39 = vadd.f32 %v2582_v51, %v2581_v18 }
 0x63b   : > { %v2576_v9 = vadd.f32 %v2575_v37, %v2574_v8  ;;  %v2584_v15 = vrot.slane %v2583_v39, 1 }
 0x63d   : > { %v2577_v31 = vrot.slane %v2576_v9, 1  ;;  %v2585_v41 = vadd.f32 %v2584_v15, %v2583_v39 }
 0x63f   : > { %v2578_v40 = vadd.f32 %v2577_v31, %v2576_v9 }
 0x641   : > { %v2592_v43 = vsel %vm696_vm0, %v2585_v41, %v2578_v40 }
 0x642   : > { %4650 = vmatmul.msk.f32.vlgmr.msrb.gmra.mxu3 %vm761_vm2, %v2592_v43 }
 0x6c5   : > { %v2612_v44 = vpop.f32.mrf.mxu3 }
 0x6c6   : > { %v2616_v35 = vrot.slane %v2612_v44, 1  ;;  %v2617_v27 = vperm.slane %v2612_v44, 0 }
 0x6c8   : > { %v2618_v16 = vperm.slane %v2616_v35, 0  ;;  %v2621_v30 = vrot.slane %v2617_v27, 4  ;;  %v2626_v38 = vperm.slane %v2617_v27, %v6155_v52 }
 0x6ca   : > { %v2622_v46 = vsel %vm721_vm1, 0.0, %v2621_v30  ;;  %v2631_v57 = vrot.slane %v2626_v38, 4  ;;  %v2659_v53 = vrot.slane %v2618_v16, 4  ;;  %v2664_v59 = vperm.slane %v2618_v16, %v6155_v52 }
 0x6cb   : > { %v6745_v61 = vperm.slane %v2626_v38, %v6170_v14  ;;  %v2630_v54 = vperm.slane %v2622_v46, %v6155_v52 }
 0x6cc   : > { %v2660_v45 = vsel %vm721_vm1, 0.0, %v2659_v53  ;;  %v2632_v3 = vsel %vm721_vm1, 0.0, %v2631_v57  ;;  %v2674_v48 = vperm.slane %v2664_v59, %v6170_v14  ;;  %v2669_v5 = vrot.slane %v2664_v59, 4 }
 0x6cd   : > { %v2668_v60 = vperm.slane %v2660_v45, %v6155_v52  ;;  %v2651_v34 = vrot.slane %v6745_v61, 4  ;;  %v2640_v4 = vperm.slane %v2632_v3, %v6170_v14  ;;  %v6760_v13 = vperm.slane %v2630_v54, %v6170_v14 }
 0x6ce   : > { %v2689_v10 = vrot.slane %v2674_v48, 4  ;;  %v2670_v23 = vsel %vm721_vm1, 0.0, %v2669_v5  ;;  %v2641_v25 = vrot.slane %v2630_v54, 4 }
 0x6cf   : > { %v2652_v42 = vsel %vm721_vm1, 0.0, %v2651_v34  ;;  %2707 = vrot.lane.b32.xlu2 %v2640_v4, %s5848_s29  ;;  %v2684_v21 = vperm.slane %v2668_v60, %v6170_v14  ;;  %v2679_v2 = vrot.slane %v2668_v60, 4  ;;  %v2655_v62 = vrot.slane %v6760_v13, 4 }
 0x6d0   : > { %2699 = vrot.lane.b32.xlu1 %v2652_v42, %s5847_s16  ;;  %v2690_v0 = vsel %vm721_vm1, 0.0, %v2689_v10  ;;  %v2678_v6 = vperm.slane %v2670_v23, %v6170_v14  ;;  %v2642_v28 = vsel %vm721_vm1, 0.0, %v2641_v25  ;;  %v2653_v1 = vrot.slane %v2640_v4, 4 }
 0x6d1   : > { %2701 = vrot.lane.b32.xlu0 %v2690_v0, %s5847_s16  ;;  %v2693_v24 = vrot.slane %v2684_v21, 4  ;;  %v2680_v47 = vsel %vm721_vm1, 0.0, %v2679_v2  ;;  %v2656_v26 = vsel %vm721_vm1, 0.0, %v2655_v62  ;;  %v2650_v32 = vperm.slane %v2642_v28, %v6170_v14 }
 0x6d2   : > { %v2688_v50 = vperm.slane %v2680_v47, %v6170_v14  ;;  %v2691_v12 = vrot.slane %v2678_v6, 4  ;;  %v2654_v20 = vsel %vm721_vm1, 0.0, %v2653_v1 }
 0x6d3   : > { %v2694_v58 = vsel %vm721_vm1, 0.0, %v2693_v24  ;;  %v2657_v11 = vrot.slane %v2650_v32, 4 }
 0x6d4   : > { %v2695_v56 = vrot.slane %v2688_v50, 4  ;;  %v2692_v29 = vsel %vm721_vm1, 0.0, %v2691_v12 }
 0x6d5   : > { %v2658_v63 = vsel %vm721_vm1, 0.0, %v2657_v11 }
 0x6d6   : > { %v2696_v33 = vsel %vm721_vm1, 0.0, %v2695_v56 }
 0x6d7   : > { %2709 = vrot.lane.b32.xlu2 %v2678_v6, %s5848_s29 }
 0x6d8   : > { %2725 = vrot.lane.b32.xlu1 %v2694_v58, %s5847_s16 }
 0x6d9   : > { %2723 = vrot.lane.b32.xlu0 %v2656_v26, %s5847_s16 }
 0x6df   : > { %2717 = vrot.lane.b32.xlu2 %v2692_v29, %s5846_s2 }
 0x6e0   : > { %2741 = vrot.lane.b32.xlu1 %v2696_v33, %s5846_s2 }
 0x6e1   : > { %2733 = vrot.lane.b32.xlu0 %v2688_v50, %s5848_s29 }
 0x6e7   : > { %2739 = vrot.lane.b32.xlu2 %v2658_v63, %s5846_s2 }
 0x6e8   : > { %2715 = vrot.lane.b32.xlu1 %v2654_v20, %s5846_s2 }
 0x6e9   : > { %2731 = vrot.lane.b32.xlu0 %v2650_v32, %s5848_s29 }
 0x729   : > { %v2708_v55 = vpop.permute.xlu2 %2707 }
 0x731   : > { %v2710_v18 = vpop.permute.xlu2 %2709 }
 0x739   : > { %v2718_v39 = vpop.permute.xlu2 %2717 }
 0x742   : > { %v2700_v8 = vpop.permute.xlu1 %2699 }
 0x743   : > { %v2702_v51 = vpop.permute.xlu0 %2701  ;;  %v2745_v45 = vsel %vm761_vm2, %v6745_v61, %v2700_v8 }
 0x744   : > { %v2746_v37 = vsel %vm761_vm2, %v2674_v48, %v2702_v51  ;;  %v2747_v34 = vsel %vm937_vm4, %v2745_v45, %v2708_v55 }
 0x745   : > { %v2748_v9 = vsel %vm937_vm4, %v2746_v37, %v2710_v18 }
 0x746   : > { %v2750_v15 = vsel %vm940_vm3, %v2748_v9, %v2718_v39 }
 0x747   : > { %v2759_v31 = vperm.slane %v2750_v15, 0 }
 0x749   : > { %v6789_v40 = vsub.f32 %v6674_v36, %v2759_v31 }
 0x74a   : > { %v2726_v41 = vpop.permute.xlu1 %2725 }
 0x74b   : > { %v2767_v43 = vmul.f32 %v6789_v40, %v6789_v40  ;;  %v2724_v44 = vpop.permute.xlu0 %2723  ;;  %v2752_v38 = vsel %vm761_vm2, %v2684_v21, %v2726_v41  ;;  %v2740_v21 = vpop.permute.xlu2 %2739 }
 0x74c   : > { %v2751_v5 = vsel %vm761_vm2, %v6760_v13, %v2724_v44 }
 0x74d   : > { %v2781_v35 = vrot.slane %v2767_v43, 4 }
 0x74f   : > { %v2782_v27 = vadd.f32 %v2781_v35, %v2767_v43 }
 0x751   : > { %v2783_v16 = vrot.slane %v2782_v27, 2 }
 0x752   : > { %v2742_v30 = vpop.permute.xlu1 %2741 }
 0x753   : > { %v2734_v46 = vpop.permute.xlu0 %2733  ;;  %v2784_v57 = vadd.f32 %v2783_v16, %v2782_v27 }
 0x754   : > { %v2754_v53 = vsel %vm937_vm4, %v2752_v38, %v2734_v46 }
 0x755   : > { %v2756_v59 = vsel %vm940_vm3, %v2754_v53, %v2742_v30  ;;  %v2785_v54 = vrot.slane %v2784_v57, 1 }
 0x756   : > { %v2760_v36 = vperm.slane %v2756_v59, 0 }
 0x757   : > { %v2786_v3 = vadd.f32 %v2785_v54, %v2784_v57 }
 0x758   : > { %v6799_v48 = vsub.f32 %v6685_v19, %v2760_v36 }
 0x759   : > { %2805 = vrot.lane.b32.xlu0 %v2786_v3, %s5847_s16  ;;  %v2821_v20 = vrot.slane %v2786_v3, 7 }
 0x75a   : > { %v2768_v60 = vmul.f32 %v6799_v48, %v6799_v48  ;;  %v2716_v4 = vpop.permute.xlu1 %2715 }
 0x75b   : > { %v2749_v10 = vsel %vm940_vm3, %v2747_v34, %v2716_v4  ;;  %v2732_v42 = vpop.permute.xlu0 %2731 }
 0x75c   : > { %v2787_v61 = vrot.slane %v2768_v60, 4  ;;  %v2757_v0 = vperm.slane %v2749_v10, 0  ;;  %v2753_v19 = vsel %vm937_vm4, %v2751_v5, %v2732_v42 }
 0x75d   : > { %v2755_v2 = vsel %vm940_vm3, %v2753_v19, %v2740_v21 }
 0x75e   : > { %v2788_v23 = vadd.f32 %v2787_v61, %v2768_v60  ;;  %v6811_v24 = vsub.f32 %v6695_v7, %v2757_v0  ;;  %v2758_v62 = vperm.slane %v2755_v2, 0 }
 0x760   : > { %v2765_v47 = vmul.f32 %v6811_v24, %v6811_v24  ;;  %v6816_v13 = vsub.f32 %v6700_v49, %v2758_v62  ;;  %v2789_v6 = vrot.slane %v2788_v23, 2 }
 0x761   : > { %2801 = vrot.lane.b32.xlu0 %v2786_v3, %s5848_s29 }
 0x762   : > { %v2769_v58 = vrot.slane %v2765_v47, 4  ;;  %v2766_v50 = vmul.f32 %v6816_v13, %v6816_v13  ;;  %v2790_v25 = vadd.f32 %v2789_v6, %v2788_v23 }
 0x764   : > { %v2770_v26 = vadd.f32 %v2769_v58, %v2765_v47  ;;  %v2775_v12 = vrot.slane %v2766_v50, 4  ;;  %v2791_v56 = vrot.slane %v2790_v25, 1 }
 0x766   : > { %v2771_v7 = vrot.slane %v2770_v26, 2  ;;  %v2776_v28 = vadd.f32 %v2775_v12, %v2766_v50  ;;  %v2792_v29 = vadd.f32 %v2791_v56, %v2790_v25 }
 0x768   : > { %v2772_v32 = vadd.f32 %v2771_v7, %v2770_v26  ;;  %v2777_v33 = vrot.slane %v2776_v28, 2  ;;  %v2829_v18 = vrot.slane %v2792_v29, 7 }
 0x769   : > { %2815 = vrot.lane.b32.xlu0 %v2792_v29, %s5848_s29 }
 0x76a   : > { %v2773_v49 = vrot.slane %v2772_v32, 1  ;;  %v2778_v11 = vadd.f32 %v2777_v33, %v2776_v28 }
 0x76c   : > { %v2774_v1 = vadd.f32 %v2773_v49, %v2772_v32  ;;  %v2779_v63 = vrot.slane %v2778_v11, 1 }
 0x76e   : > { %2795 = vrot.lane.b32.xlu2 %v2774_v1, %s5846_s2  ;;  %2803 = vrot.lane.b32.xlu1 %v2774_v1, %s5847_s16  ;;  %v2780_v55 = vadd.f32 %v2779_v63, %v2778_v11  ;;  %v2822_v8 = vsel %vm696_vm0, %v2821_v20, %v2774_v1 }
 0x770   : > { %v2830_v51 = vsel %vm696_vm0, %v2829_v18, %v2780_v55 }
 0x771   : > { %2799 = vrot.lane.b32.xlu0 %v2774_v1, %s5848_s29 }
 0x776   : > { %2797 = vrot.lane.b32.xlu2 %v2786_v3, %s5846_s2  ;;  %2817 = vrot.lane.b32.xlu1 %v2780_v55, %s5847_s16 }
 0x77e   : > { %2811 = vrot.lane.b32.xlu2 %v2792_v29, %s5846_s2  ;;  %2819 = vrot.lane.b32.xlu1 %v2792_v29, %s5847_s16 }
 0x786   : > { %2813 = vrot.lane.b32.xlu2 %v2780_v55, %s5848_s29  ;;  %2809 = vrot.lane.b32.xlu1 %v2780_v55, %s5846_s2 }
 0x7c8   : > { %v2796_v39 = vpop.permute.xlu2 %2795 }
 0x7cb   : > { %v2806_v37 = vpop.permute.xlu0 %2805 }
 0x7cc   : > { %v2827_v44 = vrot.slane %v2806_v37, 7 }
 0x7d0   : > { %v2798_v15 = vpop.permute.xlu2 %2797 }
 0x7d1   : > { %v2823_v38 = vrot.slane %v2798_v15, 7 }
 0x7d3   : > { %v2802_v9 = vpop.permute.xlu0 %2801  ;;  %v2824_v59 = vsel %vm696_vm0, %v2823_v38, %v2796_v39  ;;  %v5396_v38 = vld [vmem:[#allocation17] ss:$0 sm:$0xff] }
 0x7d4   : > { %v2825_v16 = vrot.slane %v2802_v9, 7 }
 0x7d8   : > { %v2812_v43 = vpop.permute.xlu2 %2811 }
 0x7d9   : > { %v2831_v61 = vrot.slane %v2812_v43, 7 }
 0x7db   : > { %v2816_v31 = vpop.permute.xlu0 %2815 }
 0x7dc   : > { %v2833_v3 = vrot.slane %v2816_v31, 7 }
 0x7e0   : > { %v2804_v41 = vpop.permute.xlu1 %2803  ;;  %v2814_v54 = vpop.permute.xlu2 %2813 }
 0x7e1   : > { %v2828_v30 = vsel %vm696_vm0, %v2827_v44, %v2804_v41  ;;  %v2834_v4 = vsel %vm696_vm0, %v2833_v3, %v2814_v54 }
 0x7e2   : > { %v2851_v57 = vrot.slane %v2828_v30, 4  ;;  %v2857_v21 = vrot.slane %v2834_v4, 4 }
 0x7e3   : > { %v2800_v35 = vpop.permute.xlu0 %2799 }
 0x7e4   : > { %v2826_v46 = vsel %vm696_vm0, %v2825_v16, %v2800_v35  ;;  %v2852_v36 = vsel %vm721_vm1, %v2851_v57, %v2824_v59  ;;  %v2858_v47 = vsel %vm721_vm1, %v2857_v21, %v2830_v51 }
 0x7e5   : > { %v2845_v53 = vrot.slane %v2826_v46, 4  ;;  %v2856_v5 = vperm.slane %v2852_v36, %v6155_v52  ;;  %v2862_v25 = vperm.slane %v2858_v47, %v6155_v52 }
 0x7e7   : > { %v2846_v34 = vsel %vm721_vm1, %v2845_v53, %v2822_v8  ;;  %v2869_v0 = vrot.slane %v2856_v5, 4 }
 0x7e8   : > { %v2818_v27 = vpop.permute.xlu1 %2817  ;;  %v2850_v10 = vperm.slane %v2846_v34, %v6155_v52 }
 0x7ea   : > { %v2870_v23 = vsel %vm721_vm1, %v2869_v0, %v2850_v10 }
 0x7eb   : > { %v2874_v50 = vperm.slane %v2870_v23, %v6170_v14 }
 0x7ed   : > { %v2883_v56 = vrot.slane %v2874_v50, 4 }
 0x7f0   : > { %v2820_v45 = vpop.permute.xlu1 %2819 }
 0x7f1   : > { %v2835_v60 = vrot.slane %v2820_v45, 7 }
 0x7f3   : > { %v2836_v42 = vsel %vm696_vm0, %v2835_v60, %v2818_v27 }
 0x7f4   : > { %v2863_v19 = vrot.slane %v2836_v42, 4 }
 0x7f8   : > { %v2810_v2 = vpop.permute.xlu1 %2809 }
 0x7f9   : > { %v2832_v62 = vsel %vm696_vm0, %v2831_v61, %v2810_v2 }
 0x7fa   : > { %v2864_v6 = vsel %vm721_vm1, %v2863_v19, %v2832_v62 }
 0x7fb   : > { %v2868_v58 = vperm.slane %v2864_v6, %v6155_v52 }
 0x7fd   : > { %v2875_v26 = vrot.slane %v2868_v58, 4 }
 0x7ff   : > { %v2876_v12 = vsel %vm721_vm1, %v2875_v26, %v2862_v25 }
 0x800   : > { %v2880_v7 = vperm.slane %v2876_v12, %v6170_v14 }
 0x802   : > { %v2881_v28 = vrot.slane %v2880_v7, 4  ;;  %v2884_v29 = vsel %vm721_vm1, %v2880_v7, %v2883_v56 }
 0x803   : > { %v2892_v32 = vsel %vm761_vm2, %v2884_v29, 0.0 }
 0x804   : > { %v2882_v33 = vsel %vm721_vm1, %v2881_v28, %v2874_v50  ;;  %v2893_v49 = vrot.slane %v2892_v32, 4 }
 0x805   : > { %v2885_v11 = vsel %vm761_vm2, %v2882_v33, 0.0 }
 0x806   : > { %v2886_v1 = vrot.slane %v2885_v11, 4  ;;  %v2894_v63 = vadd.f32 %v2893_v49, %v2892_v32 }
 0x808   : > { %v2887_v20 = vadd.f32 %v2886_v1, %v2885_v11  ;;  %v2895_v55 = vrot.slane %v2894_v63, 2 }
 0x80a   : > { %v2888_v18 = vrot.slane %v2887_v20, 2  ;;  %v2896_v8 = vadd.f32 %v2895_v55, %v2894_v63 }
 0x80c   : > { %v2889_v51 = vadd.f32 %v2888_v18, %v2887_v20  ;;  %v2897_v37 = vrot.slane %v2896_v8, 1 }
 0x80e   : > { %v2890_v39 = vrot.slane %v2889_v51, 1  ;;  %v2898_v15 = vadd.f32 %v2897_v37, %v2896_v8 }
 0x810   : > { %v2891_v9 = vadd.f32 %v2890_v39, %v2889_v51 }
 0x812   : > { %v2901_v31 = vsel %vm696_vm0, %v2898_v15, %v2891_v9 }
 0x813   : > { %4651 = vmatmul.msk.f32.vlgmr.msrb.gmra.mxu0 %vm761_vm2, %v2901_v31 }
 0x890   : > { %v2921_v41 = vpop.f32.mrf.mxu0 }
 0x891   : > { %v2922_v43 = vadd.f32 1e-06, %v2921_v41 }
 0x893   : > { %5423 = vrsqrt.f32 %v2922_v43  ;;  %vm2930_vm10 = vweird.f32 %v2922_v43 }
 0x899   : > { %v5424_v44 = vpop.eup %5423 }
 0x89a   : > { %v2925_v35 = vmul.f32 %v5424_v44, %v2922_v43  ;;  %vm2931_vm7 = vweird.f32 %v5424_v44  ;;  %v6912_v43 = vld [vmem:[%s7208_s22] sm:$0x3] }
 0x89b   : > { %vm2932_vm11 = vmor %vm2930_vm10, %vm2931_vm7 }
 0x89c   : > { %v2926_v27 = vmul.f32 %v5424_v44, %v2925_v35 }
 0x89e   : > { %v2927_v16 = vmul.f32 0.5, %v2926_v27 }
 0x8a0   : > { %v2928_v30 = vsub.f32 1.5, %v2927_v16 }
 0x8a2   : > { %v2929_v46 = vmul.f32 %v5424_v44, %v2928_v30  ;;  %v3089_v30 = vperm.slane %v6912_v43, 0 }
 0x8a4   : > { %v2933_v57 = vsel %vm2932_vm11, %v5424_v44, %v2929_v46  ;;  %v4714_v46 = vld [vmem:[#allocation18 + $0x170] sm:$0xf] }
 0x8a5   : > { %v2937_v53 = vmul.f32 %v5396_v38, %v2933_v57  ;;  %v5193_v57 = vld [vmem:[#allocation18 + $0x174] sm:$0xf0] }
 0x8a7   : > { %v2939_v59 = vrot.slane %v2937_v53, 1  ;;  %v2940_v54 = vperm.slane %v2937_v53, 0  ;;  %v4778_v53 = vld [vmem:[#allocation18 + $0x1f0] sm:$0xf] }
 0x8a9   : > { %v2949_v36 = vperm.slane %v2940_v54, %v6155_v52  ;;  %v2944_v45 = vrot.slane %v2940_v54, 4  ;;  %v2941_v3 = vperm.slane %v2939_v59, 0 }
 0x8ab   : > { %v2959_v60 = vperm.slane %v2949_v36, %v6170_v14  ;;  %v2954_v34 = vrot.slane %v2949_v36, 4  ;;  %v2987_v4 = vperm.slane %v2941_v3, %v6155_v52  ;;  %v2945_v5 = vsel %vm721_vm1, 0.0, %v2944_v45 }
 0x8ac   : > { %v2953_v10 = vperm.slane %v2945_v5, %v6155_v52  ;;  %v2982_v42 = vrot.slane %v2941_v3, 4  ;;  %v4715_v45 = vor.u32 %v5193_v57, %v4714_v46  ;;  %v5209_v3 = vld [vmem:[#allocation18 + $0x1f4] sm:$0xf0]  ;;  %v4754_v46 = vld [vmem:[#allocation18 + $0x1c0] sm:$0xf] }
 0x8ad   : > { %v2974_v21 = vrot.slane %v2959_v60, 4  ;;  %v2955_v61 = vsel %vm721_vm1, 0.0, %v2954_v34  ;;  %v2992_v0 = vrot.slane %v2987_v4, 4  ;;  %v6867_v47 = vperm.slane %v2987_v4, %v6170_v14  ;;  %v4716_v34 = vld [vmem:[#allocation18 + $0x178] sm:$0xf0] }
 0x8ae   : > { %v2963_v19 = vperm.slane %v2955_v61, %v6170_v14  ;;  %v2964_v62 = vrot.slane %v2953_v10, 4  ;;  %v2983_v58 = vsel %vm721_vm1, 0.0, %v2982_v42  ;;  %v6874_v50 = vperm.slane %v2953_v10, %v6170_v14  ;;  %v5208_v10 = vld [vmem:[#allocation18 + $0x1f4] sm:$0xf]  ;;  %v4780_v42 = vld [vmem:[#allocation18 + $0x1f8] sm:$0xf0]  ;;  %3470 = vmatpush.bf16.msrb.mxu1 %v4715_v45 }
 0x8af   : > { %v2975_v2 = vsel %vm721_vm1, 0.0, %v2974_v21  ;;  %v2993_v23 = vsel %vm721_vm1, 0.0, %v2992_v0  ;;  %v3012_v26 = vrot.slane %v6867_v47, 4  ;;  %v2991_v12 = vperm.slane %v2983_v58, %v6155_v52  ;;  %v4706_v61 = vld [vmem:[#allocation18 + $0x160] sm:$0xf] }
 0x8b0   : > { %3022 = vrot.lane.b32.xlu0 %v2975_v2, %s5847_s16  ;;  %3030 = vrot.lane.b32.xlu1 %v2963_v19, %s5848_s29  ;;  %v3001_v6 = vperm.slane %v2993_v23, %v6170_v14  ;;  %v2965_v25 = vsel %vm721_vm1, 0.0, %v2964_v62  ;;  %v2978_v56 = vrot.slane %v6874_v50, 4  ;;  %v2976_v11 = vrot.slane %v2963_v19, 4  ;;  %v5191_v0 = vld [vmem:[#allocation18 + $0x164] sm:$0xf0] }
 0x8b1   : > { %v2973_v7 = vperm.slane %v2965_v25, %v6170_v14  ;;  %v3013_v28 = vsel %vm721_vm1, 0.0, %v3012_v26  ;;  %v6884_v29 = vperm.slane %v2991_v12, %v6170_v14  ;;  %v3002_v32 = vrot.slane %v2991_v12, 4  ;;  %v4770_v19 = vld [vmem:[#allocation18 + $0x1e0] sm:$0xf]  ;;  %v5207_v23 = vld [vmem:[#allocation18 + $0x1e4] sm:$0xf0] }
 0x8b2   : > { %3032 = vrot.lane.b32.xlu2 %v3001_v6, %s5848_s29  ;;  %v2979_v33 = vsel %vm721_vm1, 0.0, %v2978_v56  ;;  %v2977_v20 = vsel %vm721_vm1, 0.0, %v2976_v11  ;;  %v3014_v55 = vrot.slane %v3001_v6, 4  ;;  %v4779_v4 = vor.u32 %v5209_v3, %v4778_v53  ;;  %v5190_v62 = vld [vmem:[#allocation18 + $0x164] sm:$0xf] }
 0x8b3   : > { %v3016_v52 = vrot.slane %v6884_v29, 4  ;;  %v3003_v49 = vsel %vm721_vm1, 0.0, %v3002_v32  ;;  %v2980_v18 = vrot.slane %v2973_v7, 4  ;;  %v4783_v21 = vor.u32 %v5208_v10, %v4780_v42  ;;  %v4708_v6 = vld [vmem:[#allocation18 + $0x168] sm:$0xf0] }
 0x8b4   : > { %v3011_v1 = vperm.slane %v3003_v49, %v6170_v14  ;;  %v3015_v51 = vsel %vm721_vm1, 0.0, %v3014_v55  ;;  %3484 = vmatpush.bf16.msra.mxu2 %v4779_v4  ;;  %v4707_v2 = vor.u32 %v5191_v0, %v4706_v61  ;;  %v4771_v58 = vor.u32 %v5207_v23, %v4770_v19  ;;  %v5206_v26 = vld [vmem:[#allocation18 + $0x1e4] sm:$0xf]  ;;  %v4772_v12 = vld [vmem:[#allocation18 + $0x1e8] sm:$0xf0] }
 0x8b5   : > { %v3017_v63 = vsel %vm721_vm1, 0.0, %v3016_v52  ;;  %v2981_v37 = vsel %vm721_vm1, 0.0, %v2980_v18  ;;  %3512 = vmatpush.bf16.msra.mxu0 %v4783_v21  ;;  %v4711_v25 = vor.u32 %v5190_v62, %v4708_v6  ;;  %v4775_v56 = vor.u32 %v5206_v26, %v4772_v12  ;;  %v4762_v32 = vld [vmem:[#allocation18 + $0x1d0] sm:$0xf]  ;;  %v5205_v11 = vld [vmem:[#allocation18 + $0x1d4] sm:$0xf0] }
 0x8b6   : > { %v3018_v8 = vrot.slane %v3011_v1, 4  ;;  %3471 = vmatpush.bf16.msrb.mxu1 %v4707_v2  ;;  %v4763_v55 = vor.u32 %v5205_v11, %v4762_v32  ;;  %v5203_v57 = vld [vmem:[#allocation18 + $0x1c4] sm:$0xf0]  ;;  %v5186_v3 = vld [vmem:[#allocation18 + $0x144] sm:$0xf] }
 0x8b7   : > { %v4692_v4 = vld [vmem:[#allocation18 + $0x148] sm:$0xf0]  ;;  %v5185_v61 = vld [vmem:[#allocation18 + $0x134] sm:$0xf0]  ;;  %v5184_v6 = vld [vmem:[#allocation18 + $0x134] sm:$0xf] }
 0x8b8   : > { %3054 = vrot.lane.b32.xlu0 %v2973_v7, %s5848_s29  ;;  %3024 = vrot.lane.b32.xlu1 %v3013_v28, %s5847_s16  ;;  %v3019_v14 = vsel %vm721_vm1, 0.0, %v3018_v8  ;;  %v4698_v7 = vld [vmem:[#allocation18 + $0x150] sm:$0xf]  ;;  %v5189_v28 = vld [vmem:[#allocation18 + $0x154] sm:$0xf0]  ;;  %v4695_v21 = vor.u32 %v5186_v3, %v4692_v4 }
 0x8b9   : > { %3485 = vmatpush.bf16.msra.mxu2 %v4771_v58  ;;  %3513 = vmatpush.bf16.msra.mxu0 %v4775_v56  ;;  %v4699_v49 = vor.u32 %v5189_v28, %v4698_v7  ;;  %v5204_v8 = vld [vmem:[#allocation18 + $0x1d4] sm:$0xf]  ;;  %v4756_v10 = vld [vmem:[#allocation18 + $0x1c8] sm:$0xf0]  ;;  %v5201_v62 = vld [vmem:[#allocation18 + $0x1b4] sm:$0xf0] }
 0x8ba   : > { %3046 = vrot.lane.b32.xlu2 %v2979_v33, %s5847_s16  ;;  %v4684_v26 = vld [vmem:[#allocation18 + $0x138] sm:$0xf0]  ;;  %v5183_v11 = vld [vmem:[#allocation18 + $0x124] sm:$0xf0]  ;;  %v5196_v4 = vld [vmem:[#allocation18 + $0x194] sm:$0xf] }
 0x8bb   : > { %3472 = vmatpush.bf16.msrb.mxu1 %v4699_v49  ;;  %v4748_v12 = vld [vmem:[#allocation18 + $0x1b8] sm:$0xf0]  ;;  %v4687_v32 = vor.u32 %v5184_v6, %v4684_v26  ;;  %v4674_v49 = vld [vmem:[#allocation18 + $0x120] sm:$0xf]  ;;  %v4724_v26 = vld [vmem:[#allocation18 + $0x188] sm:$0xf0] }
 0x8bd   : > { %3486 = vmatpush.bf16.msra.mxu2 %v4763_v55 }
 0x8c0   : > { %3048 = vrot.lane.b32.xlu0 %v3017_v63, %s5847_s16  ;;  %3056 = vrot.lane.b32.xlu1 %v3011_v1, %s5848_s29  ;;  %v5188_v1 = vld [vmem:[#allocation18 + $0x154] sm:$0xf]  ;;  %v4700_v63 = vld [vmem:[#allocation18 + $0x158] sm:$0xf0]  ;;  %s614_s16 = scalar_lea.vmem [#allocation20], %s4243_s4 }
 0x8c1   : > { %v4703_v18 = vor.u32 %v5188_v1, %v4700_v63  ;;  %v4738_v1 = vld [vmem:[#allocation18 + $0x1a0] sm:$0xf]  ;;  %s4055_s21 = sshll.u32 %s614_s16, 4  ;;  %s4056_s21 = int_to_ptr.vmem [resolvable:$true] %s4055_s21 }
 0x8c2   : > { %3038 = vrot.lane.b32.xlu2 %v2977_v20, %s5846_s2 }
 0x8c8   : > { %3040 = vrot.lane.b32.xlu0 %v3015_v51, %s5846_s2  ;;  %3062 = vrot.lane.b32.xlu1 %v2981_v37, %s5846_s2  ;;  %v4764_v51 = vld [vmem:[#allocation18 + $0x1d8] sm:$0xf0] }
 0x8ca   : > { %3064 = vrot.lane.b32.xlu2 %v3019_v14, %s5846_s2  ;;  %s5243_s2 = sshll.u32 %s5948_s15, 5 }
 0x8cb   : > { %s4054_s15 = scalar_lea.hbm %s7224_s24, %s5243_s2 }
 0x8cc   : > { %s4057_s4 = sshll.u32 %s4054_s15, 4  ;;  %s4058_s4 = int_to_ptr.hbm [resolvable:$true] %s4057_s4 }
 0x8cd   : > { %s5759_s3 = sshra.s32 %s4058_s4, 4  ;;  %s5760_s3 = int_to_ptr.hbm [resolvable:$true] %s5759_s3 }
 0x8ce   : > { %s5761_s20 = scalar_lea.hbm %s5760_s3, 32  ;;  %p5766_p7 = scmp.lt.s32.totalorder %s5760_s3, %s7224_s24 }
 0x8cf   : > { %p5762_p3 = scmp.ne.s32.totalorder %s5760_s3, %s5761_s20  ;;  %p5767_p8 = scmp.lt.s32.totalorder %s5765_s10, %s5761_s20 }
 0x8d1   : > { %p5763_p4 = pnand %p5762_p3, %p6046_p0  ;;  %p5768_p9 = por %p5767_p8, %p5766_p7 }
 0x8d3   : > { %p5764_p13 = pneg %p5763_p4 }
 0x8d5   : > { %p5769_p10 = pnand %p5768_p9, %p5764_p13 }
 0x90c   : > { %v6904_v39 = vpop.permute.xlu2 %3032 }
 0x914   : > { %v6906_v9 = vpop.permute.xlu2 %3046 }
 0x915   : > { %v3074_v42 = vsel %vm761_vm2, %v6874_v50, %v6906_v9  ;;  %v4746_v9 = vld [vmem:[#allocation18 + $0x1b0] sm:$0xf] }
 0x91c   : > { %v3039_v44 = vpop.permute.xlu2 %3038 }
 0x922   : > { %v3023_v15 = vpop.permute.xlu0 %3022  ;;  %v3031_v31 = vpop.permute.xlu1 %3030 }
 0x923   : > { %v3068_v41 = vsel %vm761_vm2, %v2959_v60, %v3023_v15  ;;  %v5192_v60 = vld [vmem:[#allocation18 + $0x174] sm:$0xf] }
 0x924   : > { %v3070_v35 = vsel %vm937_vm4, %v3068_v41, %v3031_v31  ;;  %v4719_v5 = vor.u32 %v5192_v60, %v4716_v34  ;;  %v3065_v14 = vpop.permute.xlu2 %3064  ;;  %v4767_v31 = vor.u32 %v5204_v8, %v4764_v51  ;;  %v4755_v34 = vor.u32 %v5203_v57, %v4754_v46  ;;  %v5182_v8 = vld [vmem:[#allocation18 + $0x124] sm:$0xf]  ;;  %v4676_v51 = vld [vmem:[#allocation18 + $0x128] sm:$0xf0]  ;;  %v4730_v46 = vld [vmem:[#allocation18 + $0x190] sm:$0xf] }
 0x925   : > { %v3072_v27 = vsel %vm940_vm3, %v3070_v35, %v3039_v44  ;;  %v4690_v35 = vld [vmem:[#allocation18 + $0x140] sm:$0xf] }
 0x926   : > { %v3080_v16 = vperm.slane %v3072_v27, 0  ;;  %3498 = vmatpush.bf16.msra.mxu3 %v4719_v5  ;;  %v5187_v27 = vld [vmem:[#allocation18 + $0x144] sm:$0xf0]  ;;  %3514 = vmatpush.bf16.msra.mxu0 %v4767_v31  ;;  %v5202_v5 = vld [vmem:[#allocation18 + $0x1c4] sm:$0xf] }
 0x927   : > { %3487 = vmatpush.bf16.msra.mxu2 %v4755_v34  ;;  %v5198_v31 = vld [vmem:[#allocation18 + $0x1a4] sm:$0xf]  ;;  %v4668_v34 = vld [vmem:[#allocation18 + $0x118] sm:$0xf0] }
 0x928   : > { %v3084_v38 = vmul.f32 %v3080_v16, %v6811_v24 }
 0x92a   : > { %v6918_v59 = vpop.permute.xlu0 %3054  ;;  %v6920_v54 = vpop.permute.xlu1 %3024  ;;  %v6924_v36 = vadd.f32 %v3089_v30, %v3084_v38  ;;  %3499 = vmatpush.bf16.msra.mxu3 %v4711_v25  ;;  %v4691_v38 = vor.u32 %v5187_v27, %v4690_v35 }
 0x92b   : > { %v3069_v53 = vsel %vm761_vm2, %v6867_v47, %v6920_v54  ;;  %v4759_v47 = vor.u32 %v5202_v5, %v4756_v10  ;;  %v4682_v54 = vld [vmem:[#allocation18 + $0x130] sm:$0xf]  ;;  %v3076_v0 = vsel %vm937_vm4, %v3074_v42, %v6918_v59  ;;  %v4747_v59 = vor.u32 %v5201_v62, %v4746_v9  ;;  %v5195_v9 = vld [vmem:[#allocation18 + $0x184] sm:$0xf0]  ;;  %v5178_v62 = vld [vmem:[#allocation18 + $0x104] sm:$0xf] }
 0x92c   : > { %v4652_v24 = vmul.f32 -1.442695, %v6924_v36  ;;  %3473 = vmatpush.bf16.msrb.mxu1 %v4691_v38  ;;  %v4683_v50 = vor.u32 %v5185_v61, %v4682_v54  ;;  %v5181_v38 = vld [vmem:[#allocation18 + $0x114] sm:$0xf0]  ;;  %v5174_v10 = vld [vmem:[#allocation18 + $0xe4] sm:$0xf] }
 0x92d   : > { %3515 = vmatpush.bf16.msra.mxu0 %v4759_v47  ;;  %3488 = vmatpush.bf16.msra.mxu2 %v4747_v59  ;;  %v4732_v47 = vld [vmem:[#allocation18 + $0x198] sm:$0xf0]  ;;  %v5194_v59 = vld [vmem:[#allocation18 + $0x184] sm:$0xf] }
 0x92e   : > { %5425 = vpow2.f32 %v4652_v24  ;;  %3500 = vmatpush.bf16.msra.mxu3 %v4703_v18  ;;  %v5199_v18 = vld [vmem:[#allocation18 + $0x1a4] sm:$0xf0]  ;;  %v4735_v61 = vor.u32 %v5196_v4, %v4732_v47  ;;  %v4826_v47 = vld [vmem:[#allocation18 + $0x50] sm:$0xf] }
 0x930   : > { %3474 = vmatpush.bf16.msrb.mxu1 %v4683_v50 }
 0x932   : > { %v3049_v33 = vpop.permute.xlu0 %3048  ;;  %v3057_v52 = vpop.permute.xlu1 %3056  ;;  %3501 = vmatpush.bf16.msra.mxu3 %v4695_v21 }
 0x933   : > { %v3075_v20 = vsel %vm761_vm2, %v6884_v29, %v3049_v33  ;;  %v3090_v29 = vperm.slane %v6912_v43, 1 }
 0x934   : > { %v5426_v37 = vpop.eup %5425  ;;  %v3077_v15 = vsel %vm937_vm4, %v3075_v20, %v3057_v52 }
 0x935   : > { %v3079_v41 = vsel %vm940_vm3, %v3077_v15, %v3065_v14  ;;  %v6931_v44 = vadd.f32 1.0, %v5426_v37  ;;  %v4675_v37 = vor.u32 %v5183_v11, %v4674_v49  ;;  %v4739_v14 = vor.u32 %v5199_v18, %v4738_v1  ;;  %v5160_v1 = vld [vmem:[#allocation18 + $0x74] sm:$0xf] }
 0x936   : > { %v3083_v16 = vperm.slane %v3079_v41, 0  ;;  %3502 = vmatpush.bf16.msra.mxu3 %v4687_v32  ;;  %v4679_v15 = vor.u32 %v5182_v8, %v4676_v51  ;;  %v4740_v41 = vld [vmem:[#allocation18 + $0x1a8] sm:$0xf0]  ;;  %v4906_v32 = vld [vmem:[#allocation18 + $0xf0] sm:$0xf] }
 0x937   : > { %5427 = vrcp.f32 %v6931_v44  ;;  %v3122_v45 = vand.u32 2147483647, %v6931_v44  ;;  %v3124_v24 = vand.u32 2147483648, %v6931_v44  ;;  %3475 = vmatpush.bf16.msrb.mxu1 %v4675_v37  ;;  %3489 = vmatpush.bf16.msra.mxu2 %v4739_v14  ;;  %vm3118_vm1 = vweird.f32 %v6931_v44  ;;  %v5176_v8 = vld [vmem:[#allocation18 + $0xf4] sm:$0xf] }
 0x938   : > { %v3087_v60 = vmul.f32 %v3083_v16, %v6799_v48  ;;  %v3071_v48 = vsel %vm937_vm4, %v3069_v53, %v6904_v39  ;;  %v5200_v39 = vld [vmem:[#allocation18 + $0x1b4] sm:$0xf]  ;;  %v4666_v16 = vld [vmem:[#allocation18 + $0x110] sm:$0xf]  ;;  %v4908_v51 = vld [vmem:[#allocation18 + $0xf8] sm:$0xf0] }
 0x939   : > { %v4751_v52 = vor.u32 %v5200_v39, %v4748_v12  ;;  %v3125_v42 = vor.u32 1.1754944e-38, %v3124_v24  ;;  %v4842_v12 = vld [vmem:[#allocation18 + $0x70] sm:$0xf]  ;;  %v4911_v14 = vor.u32 %v5176_v8, %v4908_v51  ;;  %v5170_v8 = vld [vmem:[#allocation18 + $0xc4] sm:$0xf] }
 0x93a   : > { %v3041_v19 = vpop.permute.xlu0 %3040  ;;  %v3063_v2 = vpop.permute.xlu1 %3062  ;;  %v6950_v23 = vadd.f32 %v3090_v29, %v3087_v60  ;;  %v5197_v60 = vld [vmem:[#allocation18 + $0x194] sm:$0xf0]  ;;  %3503 = vmatpush.bf16.msra.mxu3 %v4679_v15  ;;  %v4834_v15 = vld [vmem:[#allocation18 + $0x60] sm:$0xf] }
 0x93b   : > { %v3073_v58 = vsel %vm940_vm3, %v3071_v48, %v3041_v19  ;;  %v3078_v25 = vsel %vm940_vm3, %v3076_v0, %v3063_v2  ;;  %3516 = vmatpush.bf16.msra.mxu0 %v4751_v52  ;;  %v4731_v43 = vor.u32 %v5197_v60, %v4730_v46  ;;  %v4658_v0 = vld [vmem:[#allocation18 + $0x100] sm:$0xf]  ;;  %v5179_v48 = vld [vmem:[#allocation18 + $0x104] sm:$0xf0]  ;;  %vm3123_vm3 = vcmp.eq.f32.partialorder %v3122_v45, 8.507059e+37 }
 0x93c   : > { %v3082_v56 = vperm.slane %v3073_v58, 0  ;;  %v3081_v7 = vperm.slane %v3078_v25, 0  ;;  %v4655_v28 = vmul.f32 -1.442695, %v6950_v23  ;;  %v4722_v19 = vld [vmem:[#allocation18 + $0x180] sm:$0xf]  ;;  %v4659_v24 = vor.u32 %v5179_v48, %v4658_v0 }
 0x93d   : > { %v6955_v33 = vpop.eup %5427  ;;  %3490 = vmatpush.bf16.msra.mxu2 %v4731_v43  ;;  %v4723_v58 = vor.u32 %v5195_v9, %v4722_v19  ;;  %v4660_v25 = vld [vmem:[#allocation18 + $0x108] sm:$0xf0]  ;;  %v5158_v43 = vld [vmem:[#allocation18 + $0x64] sm:$0xf]  ;;  %v4828_v9 = vld [vmem:[#allocation18 + $0x58] sm:$0xf0] }
 0x93e   : > { %v3114_v63 = vmul.f32 %v6955_v33, %v6931_v44  ;;  %v3086_v20 = vmul.f32 %v3082_v56, %v6789_v40  ;;  %v3085_v55 = vmul.f32 %v3081_v7, %v6816_v13  ;;  %5429 = vpow2.f32 %v4655_v28  ;;  %v5161_v44 = vld [vmem:[#allocation18 + $0x74] sm:$0xf0] }
 0x93f   : > { %v4743_v13 = vor.u32 %v5198_v31, %v4740_v41  ;;  %vm3119_vm0 = vweird.f32 %v6955_v33  ;;  %v4663_v56 = vor.u32 %v5178_v62, %v4660_v25  ;;  %v4727_v7 = vor.u32 %v5194_v59, %v4724_v26  ;;  %v5172_v59 = vld [vmem:[#allocation18 + $0xd4] sm:$0xf]  ;;  %v4892_v26 = vld [vmem:[#allocation18 + $0xd8] sm:$0xf0] }
 0x940   : > { %v3115_v35 = vsub.f32 1.0, %v3114_v63  ;;  %v6963_v27 = vadd.f32 %v3089_v30, %v3086_v20  ;;  %v6967_v40 = vadd.f32 %v3090_v29, %v3085_v55  ;;  %v4667_v30 = vor.u32 %v5181_v38, %v4666_v16  ;;  %v5180_v29 = vld [vmem:[#allocation18 + $0x114] sm:$0xf]  ;;  %vm6977_vm2 = vmor %vm3118_vm1, %vm3119_vm0  ;;  %v4844_v63 = vld [vmem:[#allocation18 + $0x78] sm:$0xf0] }
 0x941   : > { %3517 = vmatpush.bf16.msra.mxu0 %v4743_v13  ;;  %v4671_v21 = vor.u32 %v5180_v29, %v4668_v34  ;;  %v4843_v28 = vor.u32 %v5161_v44, %v4842_v12  ;;  %3491 = vmatpush.bf16.msra.mxu2 %v4723_v58  ;;  %v4847_v18 = vor.u32 %v5160_v1, %v4844_v63  ;;  %v4836_v29 = vld [vmem:[#allocation18 + $0x68] sm:$0xf0]  ;;  %v5154_v1 = vld [vmem:[#allocation18 + $0x44] sm:$0xf]  ;;  %v4786_v63 = vld [vmem:[#allocation18] sm:$0xf] }
 0x942   : > { %v3116_v57 = vmul.f32 %v6955_v33, %v3115_v35  ;;  %v4654_v53 = vmul.f32 -1.442695, %v6963_v27  ;;  %v4653_v3 = vmul.f32 -1.442695, %v6967_v40  ;;  %3476 = vmatpush.bf16.msrb.mxu1 %v4667_v30  ;;  %v5159_v35 = vld [vmem:[#allocation18 + $0x64] sm:$0xf0] }
 0x943   : > { %3504 = vmatpush.bf16.msra.mxu3 %v4671_v21  ;;  %v4835_v30 = vor.u32 %v5159_v35, %v4834_v15  ;;  %v4810_v35 = vld [vmem:[#allocation18 + $0x30] sm:$0xf] }
 0x944   : > { %v3117_v5 = vadd.f32 %v6955_v33, %v3116_v57  ;;  %5431 = vpow2.f32 %v4654_v53  ;;  %v5430_v54 = vpop.eup %5429  ;;  %v4898_v57 = vld [vmem:[#allocation18 + $0xe0] sm:$0xf]  ;;  %v5175_v53 = vld [vmem:[#allocation18 + $0xe4] sm:$0xf0] }
 0x945   : > { %5433 = vpow2.f32 %v4653_v3  ;;  %v6988_v50 = vadd.f32 1.0, %v5430_v54  ;;  %3518 = vmatpush.bf16.msra.mxu0 %v4735_v61  ;;  %v4899_v60 = vor.u32 %v5175_v53, %v4898_v57  ;;  %v5157_v54 = vld [vmem:[#allocation18 + $0x54] sm:$0xf0]  ;;  %v4890_v61 = vld [vmem:[#allocation18 + $0xd0] sm:$0xf] }
 0x946   : > { %v3121_v2 = vsel %vm6977_vm2, %v6955_v33, %v3117_v5  ;;  %3477 = vmatpush.bf16.msrb.mxu1 %v4659_v24  ;;  %v5177_v33 = vld [vmem:[#allocation18 + $0xf4] sm:$0xf0]  ;;  %v4839_v5 = vor.u32 %v5158_v43, %v4836_v29  ;;  %v4827_v19 = vor.u32 %v5157_v54, %v4826_v47  ;;  %v5156_v24 = vld [vmem:[#allocation18 + $0x54] sm:$0xf]  ;;  %v4874_v53 = vld [vmem:[#allocation18 + $0xb0] sm:$0xf] }
 0x947   : > { %v3126_v6 = vsel %vm3123_vm3, %v3125_v42, %v3121_v2  ;;  %5435 = vrcp.f32 %v6988_v50  ;;  %v3167_v45 = vand.u32 2147483647, %v6988_v50  ;;  %v4907_v11 = vor.u32 %v5177_v33, %v4906_v32  ;;  %3505 = vmatpush.bf16.msra.mxu3 %v4663_v56  ;;  %v4900_v42 = vld [vmem:[#allocation18 + $0xe8] sm:$0xf0]  ;;  %v5173_v2 = vld [vmem:[#allocation18 + $0xd4] sm:$0xf0] }
 0x948   : > { %v3173_v39 = vmul.f32 %v3126_v6, %v6924_v36  ;;  %v3169_v55 = vand.u32 2147483648, %v6988_v50  ;;  %v4903_v21 = vor.u32 %v5174_v10, %v4900_v42  ;;  %vm3163_vm12 = vweird.f32 %v6988_v50  ;;  %v4812_v43 = vld [vmem:[#allocation18 + $0x38] sm:$0xf0]  ;;  %v5168_v29 = vld [vmem:[#allocation18 + $0xb4] sm:$0xf] }
 0x949   : > { %3519 = vmatpush.bf16.msra.mxu0 %v4727_v7  ;;  %3710 = vmatpush.bf16.msrb.mxu2 %v4907_v11  ;;  %vm7006_vm4 = vcmp.eq.f32.partialorder %v3167_v45, 8.507059e+37  ;;  %v4891_v58 = vor.u32 %v5173_v2, %v4890_v61  ;;  %v4831_v25 = vor.u32 %v5156_v24, %v4828_v9  ;;  %v4895_v56 = vor.u32 %v5172_v59, %v4892_v26  ;;  %v5155_v7 = vld [vmem:[#allocation18 + $0x44] sm:$0xf0]  ;;  %v4802_v47 = vld [vmem:[#allocation18 + $0x20] sm:$0xf] }
 0x94a   : > { %v5432_v52 = vpop.eup %5431  ;;  %v3181_v49 = vrot.slane %v3173_v39, 7  ;;  %3696 = vmatpush.bf16.msra.mxu1 %v4843_v28  ;;  %v7010_v46 = vor.u32 1.1754944e-38, %v3169_v55  ;;  %v4818_v39 = vld [vmem:[#allocation18 + $0x40] sm:$0xf]  ;;  %v5171_v11 = vld [vmem:[#allocation18 + $0xc4] sm:$0xf0] }
 0x94b   : > { %v5434_v20 = vpop.eup %5433  ;;  %v6993_v36 = vadd.f32 1.0, %v5432_v52  ;;  %3724 = vmatpush.bf16.msrb.mxu3 %v4847_v18  ;;  %v4882_v28 = vld [vmem:[#allocation18 + $0xc0] sm:$0xf]  ;;  %v4820_v18 = vld [vmem:[#allocation18 + $0x48] sm:$0xf0] }
 0x94c   : > { %3189 = vst [vmem:[#allocation2] sm:$0xfe] %v3181_v49  ;;  %v6996_v37 = vadd.f32 1.0, %v5434_v20  ;;  %v4883_v55 = vor.u32 %v5171_v11, %v4882_v28  ;;  %v4823_v15 = vor.u32 %v5154_v1, %v4820_v18  ;;  %v5151_v54 = vld [vmem:[#allocation18 + $0x24] sm:$0xf0] }
 0x94d   : > { %3191 = vst [vmem:[#allocation2 + $0x10] sm:$0x1] %v3181_v49  ;;  %5437 = vrcp.f32 %v6993_v36  ;;  %v6999_v31 = vpop.eup %5435  ;;  %v3152_v41 = vand.u32 2147483647, %v6993_v36  ;;  %3738 = vmatpush.bf16.msrb.mxu0 %v4911_v14  ;;  %v3154_v13 = vand.u32 2147483648, %v6993_v36  ;;  %3711 = vmatpush.bf16.msrb.mxu2 %v4899_v60  ;;  %vm3148_vm15 = vweird.f32 %v6993_v36 }
 0x94e   : > { %5439 = vrcp.f32 %v6996_v37  ;;  %v3159_v16 = vmul.f32 %v6999_v31, %v6988_v50  ;;  %v3137_v3 = vand.u32 2147483647, %v6996_v37  ;;  %v3139_v34 = vand.u32 2147483648, %v6996_v37  ;;  %3697 = vmatpush.bf16.msra.mxu1 %v4835_v30  ;;  %v5152_v30 = vld [vmem:[#allocation18 + $0x34] sm:$0xf] }
 0x94f   : > { %vm3164_vm13 = vweird.f32 %v6999_v31  ;;  %3725 = vmatpush.bf16.msrb.mxu3 %v4839_v5  ;;  %vm7024_vm8 = vcmp.eq.f32.partialorder %v3152_v41, 8.507059e+37  ;;  %v3155_v33 = vor.u32 1.1754944e-38, %v3154_v13  ;;  %v4819_v49 = vor.u32 %v5155_v7, %v4818_v39  ;;  %v4884_v41 = vld [vmem:[#allocation18 + $0xc8] sm:$0xf0]  ;;  %v5153_v13 = vld [vmem:[#allocation18 + $0x34] sm:$0xf0] }
 0x950   : > { %v3160_v4 = vsub.f32 1.0, %v3159_v16  ;;  %vm7036_vm6 = vmor %vm3163_vm12, %vm3164_vm13  ;;  %vm7046_vm10 = vcmp.eq.f32.partialorder %v3137_v3, 8.507059e+37  ;;  %v4887_v57 = vor.u32 %v5170_v8, %v4884_v41  ;;  %v5169_v3 = vld [vmem:[#allocation18 + $0xb4] sm:$0xf0]  ;;  %vm3133_vm0 = vweird.f32 %v6996_v37  ;;  %v5167_v2 = vld [vmem:[#allocation18 + $0xa4] sm:$0xf0] }
 0x951   : > { %3739 = vmatpush.bf16.msrb.mxu0 %v4903_v21  ;;  %3712 = vmatpush.bf16.msrb.mxu2 %v4891_v58  ;;  %v4811_v38 = vor.u32 %v5153_v13, %v4810_v35  ;;  %v3140_v10 = vor.u32 1.1754944e-38, %v3139_v34  ;;  %v4815_v21 = vor.u32 %v5152_v30, %v4812_v43  ;;  %v5150_v24 = vld [vmem:[#allocation18 + $0x24] sm:$0xf]  ;;  %v4803_v34 = vor.u32 %v5151_v54, %v4802_v47  ;;  %v4868_v26 = vld [vmem:[#allocation18 + $0xa8] sm:$0xf0] }
 0x952   : > { %v3161_v48 = vmul.f32 %v6999_v31, %v3160_v4  ;;  %3698 = vmatpush.bf16.msra.mxu1 %v4827_v19  ;;  %v4876_v4 = vld [vmem:[#allocation18 + $0xb8] sm:$0xf0]  ;;  %v4866_v19 = vld [vmem:[#allocation18 + $0xa0] sm:$0xf]  ;;  %v5166_v58 = vld [vmem:[#allocation18 + $0xa4] sm:$0xf] }
 0x953   : > { %v7014_v0 = vpop.eup %5437  ;;  %3726 = vmatpush.bf16.msrb.mxu3 %v4831_v25  ;;  %v4867_v59 = vor.u32 %v5167_v2, %v4866_v19  ;;  %v4794_v39 = vld [vmem:[#allocation18 + $0x10] sm:$0xf]  ;;  %v4871_v28 = vor.u32 %v5166_v58, %v4868_v26  ;;  %v5164_v52 = vld [vmem:[#allocation18 + $0x94] sm:$0xf]  ;;  %v5146_v18 = vld [vmem:[#allocation18 + $0x4] sm:$0xf] }
 0x954   : > { %v7019_v62 = vpop.eup %5439  ;;  %v3144_v6 = vmul.f32 %v7014_v0, %v6993_v36  ;;  %vm3149_vm14 = vweird.f32 %v7014_v0  ;;  %v3162_v45 = vadd.f32 %v6999_v31, %v3161_v48  ;;  %v4879_v48 = vor.u32 %v5168_v29, %v4876_v4  ;;  %v4850_v36 = vld [vmem:[#allocation18 + $0x80] sm:$0xf]  ;;  %v4852_v41 = vld [vmem:[#allocation18 + $0x88] sm:$0xf0]  ;;  %v3197_v30 = vld [vmem:[#allocation2] sm:$0xff] }
 0x955   : > { %v3129_v44 = vmul.f32 %v7019_v62, %v6996_v37  ;;  %vm7042_vm7 = vmor %vm3148_vm15, %vm3149_vm14  ;;  %vm3134_vm11 = vweird.f32 %v7019_v62  ;;  %3740 = vmatpush.bf16.msrb.mxu0 %v4895_v56  ;;  %3713 = vmatpush.bf16.msrb.mxu2 %v4883_v55  ;;  %v5165_v56 = vld [vmem:[#allocation18 + $0x94] sm:$0xf0]  ;;  %v5163_v55 = vld [vmem:[#allocation18 + $0x84] sm:$0xf0] }
 0x956   : > { %v3145_v32 = vsub.f32 1.0, %v3144_v6  ;;  %v3166_v50 = vsel %vm7036_vm6, %v6999_v31, %v3162_v45  ;;  %3699 = vmatpush.bf16.msra.mxu1 %v4819_v49  ;;  %vm7065_vm1 = vmor %vm3133_vm0, %vm3134_vm11  ;;  %v4804_v6 = vld [vmem:[#allocation18 + $0x28] sm:$0xf0]  ;;  %v4858_v45 = vld [vmem:[#allocation18 + $0x90] sm:$0xf] }
 0x957   : > { %v3130_v20 = vsub.f32 1.0, %v3129_v44  ;;  %v3171_v14 = vsel %vm7006_vm4, %v7010_v46, %v3166_v50  ;;  %v4875_v46 = vor.u32 %v5169_v3, %v4874_v53  ;;  %3727 = vmatpush.bf16.msrb.mxu3 %v4823_v15  ;;  %v4807_v44 = vor.u32 %v5150_v24, %v4804_v6  ;;  %v4860_v49 = vld [vmem:[#allocation18 + $0x98] sm:$0xf0]  ;;  %v5162_v15 = vld [vmem:[#allocation18 + $0x84] sm:$0xf] }
 0x958   : > { %v3146_v51 = vmul.f32 %v7014_v0, %v3145_v32  ;;  %v3176_v31 = vmul.f32 %v3171_v14, %v6950_v23  ;;  %v4796_v32 = vld [vmem:[#allocation18 + $0x18] sm:$0xf0]  ;;  %v4859_v1 = vor.u32 %v5165_v56, %v4858_v45  ;;  %v4863_v50 = vor.u32 %v5164_v52, %v4860_v49  ;;  %v4788_v14 = vld [vmem:[#allocation18 + $0x8] sm:$0xf0]  ;;  %v5225_v26 = vld [vmem:[#allocation18 + $0x274] sm:$0xf0] }
 0x959   : > { %v3131_v16 = vmul.f32 %v7019_v62, %v3130_v20  ;;  %3741 = vmatpush.bf16.msrb.mxu0 %v4887_v57  ;;  %3714 = vmatpush.bf16.msrb.mxu2 %v4875_v46  ;;  %v5147_v20 = vld [vmem:[#allocation18 + $0x4] sm:$0xf0]  ;;  %v4791_v35 = vor.u32 %v5146_v18, %v4788_v14  ;;  %v4855_v13 = vor.u32 %v5162_v15, %v4852_v41  ;;  %v3199_v46 = vld [vmem:[#allocation2 + $0x10] sm:$0x3]  ;;  %v5030_v18 = vld [vmem:[#allocation18 + $0x2e8] sm:$0xf0] }
 0x95a   : > { %v3147_v60 = vadd.f32 %v7014_v0, %v3146_v51  ;;  %v3184_v42 = vrot.slane %v3176_v31, 7  ;;  %3700 = vmatpush.bf16.msra.mxu1 %v4811_v38  ;;  %v4787_v8 = vor.u32 %v5147_v20, %v4786_v63  ;;  %v4851_v51 = vor.u32 %v5163_v55, %v4850_v36  ;;  %v5028_v20 = vld [vmem:[#allocation18 + $0x2e0] sm:$0xf]  ;;  %v5239_v36 = vld [vmem:[#allocation18 + $0x2e4] sm:$0xf0] }
 0x95b   : > { %v3132_v5 = vadd.f32 %v7019_v62, %v3131_v16  ;;  %3728 = vmatpush.bf16.msrb.mxu3 %v4815_v21  ;;  %v5238_v55 = vld [vmem:[#allocation18 + $0x2e4] sm:$0xf]  ;;  %v4956_v14 = vld [vmem:[#allocation18 + $0x250] sm:$0xf]  ;;  %v5221_v15 = vld [vmem:[#allocation18 + $0x254] sm:$0xf0] }
 0x95c   : > { %v3151_v61 = vsel %vm7042_vm7, %v7014_v0, %v3147_v60  ;;  %3194 = vst [vmem:[#allocation2 + $0x28] sm:$0xfe] %v3184_v42 }
 0x95d   : > { %v3156_v9 = vsel %vm7024_vm8, %v3155_v33, %v3151_v61  ;;  %v3136_v37 = vsel %vm7065_vm1, %v7019_v62, %v3132_v5  ;;  %3196 = vst [vmem:[#allocation2 + $0x38] sm:$0x1] %v3184_v42  ;;  %v5149_v62 = vld [vmem:[#allocation18 + $0x14] sm:$0xf0]  ;;  %3742 = vmatpush.bf16.msrb.mxu0 %v4879_v48  ;;  %3715 = vmatpush.bf16.msrb.mxu2 %v4867_v59  ;;  %v4972_v59 = vld [vmem:[#allocation18 + $0x270] sm:$0xf] }
 0x95e   : > { %v3175_v25 = vmul.f32 %v3156_v9, %v6963_v27  ;;  %v3141_v0 = vsel %vm7046_vm10, %v3140_v10, %v3136_v37  ;;  %v5148_v27 = vld [vmem:[#allocation18 + $0x14] sm:$0xf]  ;;  %3701 = vmatpush.bf16.msra.mxu1 %v4803_v34  ;;  %v4795_v11 = vor.u32 %v5149_v62, %v4794_v39  ;;  %v4973_v52 = vor.u32 %v5225_v26, %v4972_v59  ;;  %v5004_v59 = vld [vmem:[#allocation18 + $0x2b0] sm:$0xf]  ;;  %v5233_v26 = vld [vmem:[#allocation18 + $0x2b4] sm:$0xf0] }
 0x95f   : > { %v3174_v12 = vmul.f32 %v3141_v0, %v6967_v40  ;;  %3729 = vmatpush.bf16.msrb.mxu3 %v4807_v44  ;;  %v4799_v40 = vor.u32 %v5148_v27, %v4796_v32  ;;  %v5241_v44 = vld [vmem:[#allocation18 + $0x2f4] sm:$0xf0]  ;;  %v5224_v62 = vld [vmem:[#allocation18 + $0x274] sm:$0xf]  ;;  %v5038_v27 = vld [vmem:[#allocation18 + $0x2f8] sm:$0xf0] }
 0x960   : > { %v3183_v7 = vrot.slane %v3175_v25, 7 }
 0x961   : > { %v3182_v33 = vrot.slane %v3174_v12, 7  ;;  %3743 = vmatpush.bf16.msrb.mxu0 %v4871_v28  ;;  %3716 = vmatpush.bf16.msrb.mxu2 %v4859_v1  ;;  %v5036_v12 = vld [vmem:[#allocation18 + $0x2f0] sm:$0xf]  ;;  %v5240_v28 = vld [vmem:[#allocation18 + $0x2f4] sm:$0xf] }
 0x962   : > { %3193 = vst [vmem:[#allocation2 + $0x20] sm:$0xfe] %v3183_v7  ;;  %3702 = vmatpush.bf16.msra.mxu1 %v4795_v11  ;;  %v5037_v49 = vor.u32 %v5241_v44, %v5036_v12  ;;  %v4964_v11 = vld [vmem:[#allocation18 + $0x260] sm:$0xf]  ;;  %v5223_v1 = vld [vmem:[#allocation18 + $0x264] sm:$0xf0] }
 0x963   : > { %3195 = vst [vmem:[#allocation2 + $0x30] sm:$0x1] %v3183_v7  ;;  %3730 = vmatpush.bf16.msrb.mxu3 %v4799_v40  ;;  %v3202_v31 = vld [vmem:[#allocation2 + $0x28] sm:$0xff]  ;;  %v5041_v40 = vor.u32 %v5240_v28, %v5038_v27  ;;  %v5232_v44 = vld [vmem:[#allocation18 + $0x2b4] sm:$0xf]  ;;  %v5005_v28 = vor.u32 %v5233_v26, %v5004_v59 }
 0x964   : > { %3190 = vst [vmem:[#allocation2 + $0x8] sm:$0xfe] %v3182_v33  ;;  %v3204_v53 = vld [vmem:[#allocation2 + $0x38] sm:$0x3]  ;;  %v4974_v7 = vld [vmem:[#allocation18 + $0x278] sm:$0xf0] }
 0x965   : > { %3192 = vst [vmem:[#allocation2 + $0x18] sm:$0x1] %v3182_v33  ;;  %3744 = vmatpush.bf16.msrb.mxu0 %v4863_v50  ;;  %3717 = vmatpush.bf16.msrb.mxu2 %v4851_v51  ;;  %v4977_v63 = vor.u32 %v5224_v62, %v4974_v7  ;;  %v4966_v50 = vld [vmem:[#allocation18 + $0x268] sm:$0xf0]  ;;  %v5029_v51 = vor.u32 %v5239_v36, %v5028_v20  ;;  %v4942_v12 = vld [vmem:[#allocation18 + $0x238] sm:$0xf0] }
 0x966   : > { %3703 = vmatpush.bf16.msra.mxu1 %v4787_v8  ;;  %v4965_v8 = vor.u32 %v5223_v1, %v4964_v11  ;;  %v4969_v41 = vor.u32 %v5222_v17, %v4966_v50  ;;  %v5006_v62 = vld [vmem:[#allocation18 + $0x2b8] sm:$0xf0]  ;;  %v4932_v27 = vld [vmem:[#allocation18 + $0x220] sm:$0xf]  ;;  %v5231_v11 = vld [vmem:[#allocation18 + $0x2a4] sm:$0xf0] }
 0x967   : > { %3731 = vmatpush.bf16.msrb.mxu3 %v4791_v35  ;;  %v5033_v35 = vor.u32 %v5238_v55, %v5030_v18  ;;  %v5214_v1 = vld [vmem:[#allocation18 + $0x224] sm:$0xf]  ;;  %v4998_v20 = vld [vmem:[#allocation18 + $0x2a8] sm:$0xf0]  ;;  %v4924_v18 = vld [vmem:[#allocation18 + $0x210] sm:$0xf] }
 0x969   : > { %v3201_v16 = vld [vmem:[#allocation2 + $0x20] sm:$0xff]  ;;  %3745 = vmatpush.bf16.msrb.mxu0 %v4855_v13  ;;  %v5020_v13 = vld [vmem:[#allocation18 + $0x2d0] sm:$0xf] }
 0x96a   : > { %v3203_v57 = vld [vmem:[#allocation2 + $0x30] sm:$0x3]  ;;  %v7083_v3 = vpack.c.bf16 %v3202_v31, %v3201_v16  ;;  %v5237_v16 = vld [vmem:[#allocation18 + $0x2d4] sm:$0xf0]  ;;  %v5220_v31 = vld [vmem:[#allocation18 + $0x254] sm:$0xf] }
 0x96b   : > { %v3198_v60 = vld [vmem:[#allocation2 + $0x8] sm:$0xff]  ;;  %v7085_v38 = vpack.c.bf16 %v3204_v53, %v3203_v57  ;;  %v5236_v53 = vld [vmem:[#allocation18 + $0x2d4] sm:$0xf] }
 0x96c   : > { %v3200_v43 = vld [vmem:[#allocation2 + $0x18] sm:$0x3]  ;;  %v7087_v29 = vpack.c.bf16 %v3198_v60, %v3197_v30  ;;  %v3256_v4 = vshrl.u32 %v7083_v3, 16  ;;  %v3259_v5 = vshll.u32 %v7083_v3, 16  ;;  %v4958_v57 = vld [vmem:[#allocation18 + $0x258] sm:$0xf0]  ;;  %v4957_v60 = vor.u32 %v5221_v15, %v4956_v14 }
 0x96d   : > { %v7091_v23 = vpack.c.bf16 %v3200_v43, %v3199_v46  ;;  %v3265_v10 = vshll.u32 %v7085_v38, 16  ;;  %v5022_v30 = vld [vmem:[#allocation18 + $0x2d8] sm:$0xf0]  ;;  %v5021_v46 = vor.u32 %v5237_v16, %v5020_v13  ;;  %v4948_v43 = vld [vmem:[#allocation18 + $0x240] sm:$0xf] }
 0x96e   : > { %v3242_v42 = vshrl.u32 %v7087_v29, 16  ;;  %v3245_v21 = vshll.u32 %v7087_v29, 16  ;;  %v3258_v47 = vrot.slane %v3256_v4, 4  ;;  %v3261_v54 = vrot.slane %v3259_v5, 5  ;;  %v5219_v4 = vld [vmem:[#allocation18 + $0x244] sm:$0xf0] }
 0x96f   : > { %v3251_v19 = vshll.u32 %v7091_v23, 16  ;;  %v3267_v37 = vrot.slane %v3265_v10, 5  ;;  %v4961_v5 = vor.u32 %v5220_v31, %v4958_v57  ;;  %v5025_v10 = vor.u32 %v5236_v53, %v5022_v30  ;;  %v4926_v13 = vld [vmem:[#allocation18 + $0x218] sm:$0xf0]  ;;  %v5228_v16 = vld [vmem:[#allocation18 + $0x294] sm:$0xf] }
 0x970   : > { %v3244_v61 = vrot.slane %v3242_v42, 4  ;;  %v3247_v48 = vrot.slane %v3245_v21, 5  ;;  %v3262_v2 = vor.u32 %v3261_v54, %v3258_v47  ;;  %v5012_v42 = vld [vmem:[#allocation18 + $0x2c0] sm:$0xf]  ;;  %v5235_v21 = vld [vmem:[#allocation18 + $0x2c4] sm:$0xf0] }
 0x971   : > { %v3253_v6 = vrot.slane %v3251_v19, 5  ;;  %v5218_v47 = vld [vmem:[#allocation18 + $0x244] sm:$0xf]  ;;  %v4950_v54 = vld [vmem:[#allocation18 + $0x248] sm:$0xf0]  ;;  %v3528_v19 = vunpack.c.l.b16 %v7087_v29  ;;  %v4912_v36 = vrot.slane %v7087_v29, 9 }
 0x972   : > { %v3248_v24 = vor.u32 %v3247_v48, %v3244_v61  ;;  %v3263_v9 = vrot.slane %v3262_v2, 4  ;;  %v5234_v61 = vld [vmem:[#allocation18 + $0x2c4] sm:$0xf]  ;;  %v5014_v48 = vld [vmem:[#allocation18 + $0x2c8] sm:$0xf0]  ;;  %v3530_v2 = vunpack.c.l.b16 %v7083_v3  ;;  %v3756_v17 = vrot.slane %v7091_v23, 5 }
 0x973   : > { %v4990_v31 = vld [vmem:[#allocation18 + $0x298] sm:$0xf0]  ;;  %v3760_v23 = vrot.slane %v7085_v38, 5  ;;  %v4916_v30 = vld [vmem:[#allocation18 + $0x200] sm:$0xf] }
 0x974   : > { %v3249_v34 = vrot.slane %v3248_v24, 4  ;;  %v3268_v58 = vsel %vm6539_vm5, %v3263_v9, %v3267_v37  ;;  %v4949_v24 = vor.u32 %v5219_v4, %v4948_v43  ;;  %v5013_v9 = vor.u32 %v5235_v21, %v5012_v42  ;;  %v4980_v4 = vld [vmem:[#allocation18 + $0x280] sm:$0xf]  ;;  %v4918_v21 = vld [vmem:[#allocation18 + $0x208] sm:$0xf0] }
 0x975   : > { %v3304_v25 = vunpack.c.l.b16 %v3268_v58  ;;  %v3305_v0 = vunpack.c.h.b16 %v3268_v58  ;;  %v3529_v37 = vunpack.c.h.b16 %v7087_v29  ;;  %v5217_v58 = vld [vmem:[#allocation18 + $0x234] sm:$0xf0]  ;;  %v4913_v29 = vrot.slane %v7083_v3, 9 }
 0x976   : > { %v3254_v39 = vsel %vm6539_vm5, %v3249_v34, %v3253_v6  ;;  %v3531_v34 = vunpack.c.h.b16 %v7083_v3  ;;  %v4940_v6 = vld [vmem:[#allocation18 + $0x230] sm:$0xf]  ;;  %v4993_v43 = vor.u32 %v5228_v16, %v4990_v31  ;;  %v3757_v42 = vsel %vm6576_vm9, %v4912_v36, %v3756_v17  ;;  %v5226_v3 = vld [vmem:[#allocation18 + $0x284] sm:$0xf] }
 0x977   : > { %v3302_v45 = vunpack.c.l.b16 %v3254_v39  ;;  %v3303_v56 = vunpack.c.h.b16 %v3254_v39  ;;  %v5216_v39 = vld [vmem:[#allocation18 + $0x234] sm:$0xf]  ;;  %v4941_v7 = vor.u32 %v5217_v58, %v4940_v6  ;;  %v3761_v38 = vsel %vm6576_vm9, %v4913_v29, %v3760_v23 }
 0x978   : > { %v5441_v23 = vld [vmem:[%s6085_s23] sm:$0xff] }
 0x979   : > { %v3306_v32 = vpack.c.b16 %v3304_v25, %v3302_v45  ;;  %v3307_v33 = vpack.c.b16 %v3305_v0, %v3303_v56  ;;  %v4953_v25 = vor.u32 %v5218_v47, %v4950_v54  ;;  %v5017_v0 = vor.u32 %v5234_v61, %v5014_v48  ;;  %v4982_v47 = vld [vmem:[#allocation18 + $0x288] sm:$0xf0] }
 0x97a   : > { %v3532_v45 = vpack.c.b16 %v3530_v2, %v3528_v19  ;;  %v3533_v56 = vpack.c.b16 %v3531_v34, %v3529_v37  ;;  %v3795_v48 = vunpack.c.l.b16 %v3757_v42  ;;  %v3796_v19 = vunpack.c.h.b16 %v3757_v42 }
 0x97b   : > { %3478 = vmatmul.bf16.vlgmr.msrb.gmra.mxu1 %v3306_v32  ;;  %3492 = vmatmul.bf16.vlgmr.msra.gmra.mxu2 %v3307_v33  ;;  %v3798_v37 = vunpack.c.h.b16 %v3761_v38 }
 0x97c   : > { %3506 = vmatmul.bf16.vlgmr.msra.gmra.mxu3 %v3306_v32  ;;  %3520 = vmatmul.bf16.vlgmr.msra.gmra.mxu0 %v3307_v33  ;;  %v5215_v32 = vld [vmem:[#allocation18 + $0x224] sm:$0xf0]  ;;  %v4945_v33 = vor.u32 %v5216_v39, %v4942_v12 }
 0x97d   : > { %3963 = vmatpush.bf16.msrb.mxu1 %v4973_v52  ;;  %3977 = vmatpush.bf16.msra.mxu2 %v5037_v49  ;;  %v5009_v52 = vor.u32 %v5232_v44, %v5006_v62  ;;  %v4996_v49 = vld [vmem:[#allocation18 + $0x2a0] sm:$0xf]  ;;  %v4933_v50 = vor.u32 %v5215_v32, %v4932_v27  ;;  %v3800_v6 = vpack.c.b16 %v3798_v37, %v3796_v19  ;;  %v5444_v19 = vld [vmem:[%s6085_s23 + $0x18] sm:$0xff] }
 0x97e   : > { %3991 = vmatpush.bf16.msra.mxu3 %v4977_v63  ;;  %4005 = vmatpush.bf16.msra.mxu0 %v5041_v40  ;;  %v4934_v63 = vld [vmem:[#allocation18 + $0x228] sm:$0xf0]  ;;  %v5230_v40 = vld [vmem:[#allocation18 + $0x2a4] sm:$0xf]  ;;  %v4997_v55 = vor.u32 %v5231_v11, %v4996_v49 }
 0x97f   : > { %v4937_v14 = vor.u32 %v5214_v1, %v4934_v63  ;;  %v5001_v15 = vor.u32 %v5230_v40, %v4998_v20  ;;  %v4023_v1 = vld [vmem:[%s7223_s5] sm:$0x3] }
 0x981   : > { %3964 = vmatpush.bf16.msrb.mxu1 %v4965_v8  ;;  %3978 = vmatpush.bf16.msra.mxu2 %v5029_v51  ;;  %v5213_v8 = vld [vmem:[#allocation18 + $0x214] sm:$0xf0]  ;;  %v4988_v51 = vld [vmem:[#allocation18 + $0x290] sm:$0xf] }
 0x982   : > { %3992 = vmatpush.bf16.msra.mxu3 %v4969_v41  ;;  %4006 = vmatpush.bf16.msra.mxu0 %v5033_v35  ;;  %v5229_v41 = vld [vmem:[#allocation18 + $0x294] sm:$0xf0]  ;;  %v5212_v35 = vld [vmem:[#allocation18 + $0x214] sm:$0xf]  ;;  %v4925_v57 = vor.u32 %v5213_v8, %v4924_v18 }
 0x983   : > { %v4989_v53 = vor.u32 %v5229_v41, %v4988_v51  ;;  %v4026_v51 = vperm.slane %v4023_v1, 1 }
 0x985   : > { %3965 = vmatpush.bf16.msrb.mxu1 %v4957_v60  ;;  %3979 = vmatpush.bf16.msra.mxu2 %v5021_v46  ;;  %v5211_v60 = vld [vmem:[#allocation18 + $0x204] sm:$0xf0]  ;;  %v4929_v46 = vor.u32 %v5212_v35, %v4926_v13 }
 0x986   : > { %3993 = vmatpush.bf16.msra.mxu3 %v4961_v5  ;;  %4007 = vmatpush.bf16.msra.mxu0 %v5025_v10  ;;  %v5227_v5 = vld [vmem:[#allocation18 + $0x284] sm:$0xf0]  ;;  %v5210_v10 = vld [vmem:[#allocation18 + $0x204] sm:$0xf]  ;;  %v4917_v54 = vor.u32 %v5211_v60, %v4916_v30 }
 0x987   : > { %v4981_v61 = vor.u32 %v5227_v5, %v4980_v4  ;;  %v4921_v2 = vor.u32 %v5210_v10, %v4918_v21 }
 0x989   : > { %3966 = vmatpush.bf16.msrb.mxu1 %v4949_v24  ;;  %3980 = vmatpush.bf16.msra.mxu2 %v5013_v9  ;;  %v4985_v24 = vor.u32 %v5226_v3, %v4982_v47  ;;  %v3797_v9 = vunpack.c.l.b16 %v3761_v38 }
 0x98a   : > { %3994 = vmatpush.bf16.msra.mxu3 %v4953_v25  ;;  %4008 = vmatpush.bf16.msra.mxu0 %v5017_v0 }
 0x98b   : > { %3704 = vmatmul.bf16.vlgmr.msra.gmra.mxu1 %v3532_v45  ;;  %3718 = vmatmul.bf16.vlgmr.msrb.gmra.mxu2 %v3533_v56  ;;  %v3799_v34 = vpack.c.b16 %v3797_v9, %v3795_v48 }
 0x98c   : > { %3732 = vmatmul.bf16.vlgmr.msrb.gmra.mxu3 %v3532_v45  ;;  %3746 = vmatmul.bf16.vlgmr.msrb.gmra.mxu0 %v3533_v56 }
 0x98d   : > { %3967 = vmatpush.bf16.msrb.mxu1 %v4941_v7  ;;  %3981 = vmatpush.bf16.msra.mxu2 %v5005_v28 }
 0x98e   : > { %3995 = vmatpush.bf16.msra.mxu3 %v4945_v33  ;;  %4009 = vmatpush.bf16.msra.mxu0 %v5009_v52 }
 0x991   : > { %3968 = vmatpush.bf16.msrb.mxu1 %v4933_v50  ;;  %3982 = vmatpush.bf16.msra.mxu2 %v4997_v55  ;;  %v4025_v50 = vperm.slane %v4023_v1, 0 }
 0x992   : > { %3996 = vmatpush.bf16.msra.mxu3 %v4937_v14  ;;  %4010 = vmatpush.bf16.msra.mxu0 %v5001_v15 }
 0x995   : > { %3969 = vmatpush.bf16.msrb.mxu1 %v4925_v57  ;;  %3983 = vmatpush.bf16.msra.mxu2 %v4989_v53  ;;  %v5442_v53 = vld [vmem:[%s6085_s23 + $0x8] sm:$0xff] }
 0x996   : > { %3997 = vmatpush.bf16.msra.mxu3 %v4929_v46  ;;  %4011 = vmatpush.bf16.msra.mxu0 %v4993_v43 }
 0x999   : > { %3970 = vmatpush.bf16.msrb.mxu1 %v4917_v54  ;;  %3984 = vmatpush.bf16.msra.mxu2 %v4981_v61  ;;  %v5443_v61 = vld [vmem:[%s6085_s23 + $0x10] sm:$0xff] }
 0x99a   : > { %3998 = vmatpush.bf16.msra.mxu3 %v4921_v2  ;;  %4012 = vmatpush.bf16.msra.mxu0 %v4985_v24 }
 0x99c   : > { %3971 = vmatmul.bf16.vlgmr.msrb.gmra.mxu1 %v3799_v34  ;;  %3985 = vmatmul.bf16.vlgmr.msra.gmra.mxu2 %v3800_v6 }
 0x99d   : > { %3999 = vmatmul.bf16.vlgmr.msra.gmra.mxu3 %v3799_v34  ;;  %4013 = vmatmul.bf16.vlgmr.msra.gmra.mxu0 %v3800_v6 }
 0x9f8   : > { %v3479_v22 = vpop.f32.mrf.mxu1 }
 0x9f9   : > { %v3521_v58 = vpop.f32.mrf.mxu0 }
 0x9fe   : > { %v3493_v25 = vpop.f32.mrf.mxu2 }
 0x9ff   : > { %v3507_v0 = vpop.f32.mrf.mxu3  ;;  %v3494_v52 = vadd.f32 %v3493_v25, %v3479_v22 }
 0xa00   : > { %v3481_v59 = vpop.f32.mrf.mxu1  ;;  %v3522_v33 = vadd.f32 %v3521_v58, %v3507_v0 }
 0xa01   : > { %v3523_v26 = vpop.f32.mrf.mxu0 }
 0xa06   : > { %v3495_v39 = vpop.f32.mrf.mxu2 }
 0xa07   : > { %v3509_v12 = vpop.f32.mrf.mxu3  ;;  %v3496_v35 = vadd.f32 %v3495_v39, %v3481_v59 }
 0xa08   : > { %v3705_v44 = vpop.f32.mrf.mxu1  ;;  %v3524_v15 = vadd.f32 %v3523_v26, %v3509_v12 }
 0xa09   : > { %v3747_v62 = vpop.f32.mrf.mxu0  ;;  %v3706_v63 = vadd.f32 %v3705_v44, %v3494_v52 }
 0xa0e   : > { %v3719_v45 = vpop.f32.mrf.mxu2 }
 0xa0f   : > { %v3733_v56 = vpop.f32.mrf.mxu3  ;;  %v3720_v36 = vadd.f32 %v3719_v45, %v3706_v63 }
 0xa10   : > { %v3707_v7 = vpop.f32.mrf.mxu1  ;;  %v3734_v49 = vadd.f32 %v3733_v56, %v3522_v33 }
 0xa11   : > { %v3749_v28 = vpop.f32.mrf.mxu0  ;;  %v3708_v29 = vadd.f32 %v3707_v7, %v3496_v35 }
 0xa12   : > { %v3748_v18 = vadd.f32 %v3747_v62, %v3734_v49 }
 0xa16   : > { %v3721_v27 = vpop.f32.mrf.mxu2 }
 0xa17   : > { %v3735_v32 = vpop.f32.mrf.mxu3  ;;  %v3722_v43 = vadd.f32 %v3721_v27, %v3708_v29 }
 0xa18   : > { %v3736_v16 = vadd.f32 %v3735_v32, %v3524_v15 }
 0xa19   : > { %v3972_v11 = vpop.f32.mrf.mxu1 }
 0xa1a   : > { %v4014_v40 = vpop.f32.mrf.mxu0  ;;  %v3750_v42 = vadd.f32 %v3749_v28, %v3736_v16 }
 0xa1f   : > { %v3986_v20 = vpop.f32.mrf.mxu2 }
 0xa20   : > { %v3987_v17 = vadd.f32 %v3986_v20, %v3972_v11  ;;  %v4000_v55 = vpop.f32.mrf.mxu3 }
 0xa21   : > { %v4015_v8 = vadd.f32 %v4014_v40, %v4000_v55  ;;  %v3974_v60 = vpop.f32.mrf.mxu1 }
 0xa22   : > { %v4019_v14 = vadd.f32 %v3987_v17, %v3720_v36  ;;  %v4016_v4 = vpop.f32.mrf.mxu0 }
 0xa23   : > { %v4020_v41 = vadd.f32 %v4015_v8, %v3748_v18 }
 0xa24   : > { %v4029_v13 = vadd.f32 %v4025_v50, %v4019_v14 }
 0xa25   : > { %v4030_v31 = vadd.f32 %v4026_v51, %v4020_v41 }
 0xa26   : > { %v4033_v57 = vadd.f32 %v5441_v23, %v4029_v13 }
 0xa27   : > { %v4034_v30 = vadd.f32 %v5442_v53, %v4030_v31  ;;  %v3988_v46 = vpop.f32.mrf.mxu2 }
 0xa28   : > { %4037 = vst [vmem:[%s614_s16] sm:$0xff] %v4033_v57  ;;  %v3989_v5 = vadd.f32 %v3988_v46, %v3974_v60  ;;  %v4002_v10 = vpop.f32.mrf.mxu3 }
 0xa29   : > { %4038 = vst [vmem:[%s614_s16 + $0x8] sm:$0xff] %v4034_v30  ;;  %v4017_v21 = vadd.f32 %v4016_v4, %v4002_v10 }
 0xa2a   : > { %v4021_v3 = vadd.f32 %v3989_v5, %v3722_v43 }
 0xa2b   : > { %v4022_v47 = vadd.f32 %v4017_v21, %v3750_v42 }
 0xa2c   : > { %v4031_v38 = vadd.f32 %v4025_v50, %v4021_v3 }
 0xa2d   : > { %v4032_v54 = vadd.f32 %v4026_v51, %v4022_v47 }
 0xa2e   : > { %v4035_v48 = vadd.f32 %v5443_v61, %v4031_v38 }
 0xa2f   : > { %v4036_v2 = vadd.f32 %v5444_v19, %v4032_v54 }
 0xa30   : > { %4039 = vst [vmem:[%s614_s16 + $0x10] sm:$0xff] %v4035_v48 }
 0xa31   : > { %4040 = vst [vmem:[%s614_s16 + $0x18] sm:$0xff] %v4036_v2 }
 0xa32   : > { %5772 = shalt.err (!%p5769_p10)
}
 0xa33   : > { %s5852_s14 = smov 256   ;;  %s5853_s23 = smov 16  }
 0xa34   : > { %5282 = dma.vmem_to_hbm [thread:$0]  (%p6046_p0), %s4056_s21, 512, %s4058_s4, %s4042_s13, %s5852_s14, %s5852_s14, %s5853_s23  }
 0xa35 PF: > { %s4072_s16 = sand.u32 1, %s5819_s25   ;;  %p7225_p11 = scmp.ge.s32.totalorder %s5831_s28, 2 }
 0xa36   : > { %s4073_s29 = scalar_lea.sflag [#allocation5], %s4072_s16 }
 0xa37   : > { %p5317_p12 = pnand %p7225_p11, %p6052_p6 }
 0xa39   : > { %p5318_p2 = pneg %p5317_p12 }
 0xa3b   : > { %5814 = dma.done.wait (%p5318_p2), %s4073_s29, 512  }
 0xa3c   : > { %5816 = vsyncadd (%p5318_p2), %s4073_s29, 4294966784  ;;  %p31_p5 = scmp.ge.s32.totalorder %s6022_s12, 4   ;;  %s7226_s25 = smov %s5823_s26 }
 0xa3d   : > { %s7227_s26 = smov %s5827_s27  ;;  %s7228_s27 = smov %s6034_s1 }
 0xa3e   : > { %s7229_s28 = smov %s6022_s12  ;;  %33 = sbr.rel (!%p31_p5) target bundleno = 19 (0x13), region = 164 }
 0xa43   :  { %4079 = vsyncpa [#allocation4], 1 }
 0xa44   :  { %4081 = vsyncpa [#allocation4 + $0x1], 1 }
 0xa45   :  { %4082 = vsyncpa [#allocation7], 1 }
 0xa46   :  { %4083 = vsyncpa [#allocation10], 1 }
 0xa47   :  { %4084 = vsyncpa [#allocation13], 1 }
 0xa48   :  { %4085 = vsyncpa [#allocation16], 1 }
 0xa49   :  { %4086 = vsyncpa [#allocation19], 1 }
 0xa4a   :  { %4087 = vsyncpa [#allocation5], 1 }
 0xa4b   :  { %4089 = vsyncpa [#allocation5 + $0x1], 1 }

</bundles_post_ra>
